<compile_context>
chip_gen: v5e
topology: v5e:2x2
jax: 0.10.0
libtpu: 0.0.40
codegen_flags: <defaults>
</compile_context>

<pallas_src>
import functools

import jax
import jax.numpy as jnp
from jax.experimental import pallas as pl
from jax.experimental.pallas import tpu as pltpu


def _make_conv_kernel(c_in, c_out, kh, kw, oh, ow):
    """Fused direct-conv kernel: one batch image per grid step."""

    def kernel(x_ref, w_ref, b_ref, o_ref):
        # x_ref: (1, c_in, H, W)        VMEM
        # w_ref: (c_out*c_in*kh*kw,)    SMEM scalar table, PyTorch OIHW order
        # b_ref: (c_out,)               SMEM
        # o_ref: (1, c_out, oh, ow)     VMEM  (written directly in NCHW)
        accs = [jnp.zeros((oh, ow), jnp.float32) for _ in range(c_out)]
        # 27 shifted-slice taps, each reused across all output channels.
        for ci in range(c_in):
            for dh in range(kh):
                for dw in range(kw):
                    xs = x_ref[0, ci, dh:dh + oh, dw:dw + ow]        # (oh, ow)
                    for co in range(c_out):
                        w = w_ref[((co * c_in + ci) * kh + dh) * kw + dw]
                        accs[co] = accs[co] + w * xs
        for co in range(c_out):
            o_ref[0, co, :, :] = accs[co] + b_ref[co]

    return kernel


@functools.partial(jax.jit, static_argnames=("stride", "padding"))
def conv2d_pallas(x, weight, bias, stride=1, padding=0):
    """x: (N, C_in, H, W) f32; weight: (C_out, C_in, KH, KW); bias: (C_out,)."""
    if stride != 1:
        raise NotImplementedError("MyConv2 uses stride=1")
    N, C_in, H, W = x.shape
    C_out, _, KH, KW = weight.shape
    if padding:
        x = jnp.pad(x, ((0, 0), (0, 0), (padding, padding), (padding, padding)))
        H += 2 * padding
        W += 2 * padding
    OH = H - KH + 1
    OW = W - KW + 1

    x = x.astype(jnp.float32)
    w_flat = weight.reshape(-1).astype(jnp.float32)   # OIHW, row-major
    b = bias.astype(jnp.float32)

    kernel = _make_conv_kernel(C_in, C_out, KH, KW, OH, OW)

    flops = 2 * N * OH * OW * C_out * C_in * KH * KW
    bytes_accessed = 4 * (x.size + w_flat.size + b.size + N * C_out * OH * OW)

    return pl.pallas_call(
        kernel,
        out_shape=jax.ShapeDtypeStruct((N, C_out, OH, OW), jnp.float32),
        grid=(N,),
        in_specs=[
            # One full image per grid step; (H, W) == full array dims so the
            # (8,128) block constraint is satisfied without any padding.
            pl.BlockSpec((1, C_in, H, W), lambda n: (n, 0, 0, 0)),
            pl.BlockSpec(memory_space=pltpu.MemorySpace.SMEM),   # weights
            pl.BlockSpec(memory_space=pltpu.MemorySpace.SMEM),   # bias
        ],
        out_specs=pl.BlockSpec((1, C_out, OH, OW), lambda n: (n, 0, 0, 0)),
        compiler_params=pltpu.CompilerParams(
            dimension_semantics=("parallel",)),
        cost_estimate=pl.CostEstimate(
            flops=flops, transcendentals=0, bytes_accessed=bytes_accessed),
    )(x, w_flat, b)


class MyConv2Pallas:
    """Mirror of the PyTorch MyConv2 module (Conv2d(3, 6, 3, stride=1, padding=0))."""

    def __init__(self, key):
        kw_key, kb_key = jax.random.split(key)
        c_out, c_in, kh, kw = 6, 3, 3, 3
        fan_in = c_in * kh * kw
        bound = 1.0 / (fan_in ** 0.5)
        # Deterministic synthetic init (uniform, like PyTorch's default bound).
        self.weight = jax.random.uniform(
            kw_key, (c_out, c_in, kh, kw), jnp.float32, -bound, bound)
        self.bias = jax.random.uniform(
            kb_key, (c_out,), jnp.float32, -bound, bound)

    def __call__(self, x):
        return conv2d_pallas(x, self.weight, self.bias, stride=1, padding=0)


if __name__ == "__main__":
    key = jax.random.PRNGKey(0)
    k_params, k_x = jax.random.split(key)

    model = MyConv2Pallas(k_params)
    x = jax.random.normal(k_x, (2, 3, 16, 16), jnp.float32)  # NCHW, like PyTorch

    y = jax.block_until_ready(model(x))
    assert y.shape == (2, 6, 14, 14), y.shape

    # Sanity check against XLA's native convolution (same semantics as torch Conv2d).
    y_ref = jax.lax.conv_general_dilated(
        x, model.weight, window_strides=(1, 1), padding="VALID",
        dimension_numbers=("NCHW", "OIHW", "NCHW"),
    ) + model.bias[None, :, None, None]
    assert jnp.allclose(y, y_ref, atol=1e-4, rtol=1e-4), float(
        jnp.max(jnp.abs(y - y_ref)))

    print("KERNEL_OK")
</pallas_src>

<mosaic_0001>
module attributes {stable_mosaic.version = 11 : i64} {
  func.func @kernel(%arg0: i32, %arg1: memref<1x3x16x16xf32, #tpu.memory_space<vmem>>, %arg2: memref<162xf32, #tpu.memory_space<smem>>, %arg3: memref<6xf32, #tpu.memory_space<smem>>, %arg4: memref<1x6x14x14xf32, #tpu.memory_space<vmem>>) attributes {dimension_semantics = [#tpu.dimension_semantics<parallel>], iteration_bounds = array<i64: 2>, scalar_prefetch = 0 : i64, scratch_operands = 0 : i64, tpu.core_type = #tpu.core_type<tc>, window_params = [{transform_indices = @transform_0, window_bounds = array<i64: 1, 3, 16, 16>}, {transform_indices = @transform_1, window_bounds = array<i64: 162>}, {transform_indices = @transform_2, window_bounds = array<i64: 6>}, {transform_indices = @transform_3, window_bounds = array<i64: 1, 6, 14, 14>}]} {
    %cst = arith.constant 0.000000e+00 : f32
    %0 = vector.broadcast %cst : f32 to vector<14x14xf32>
    %cst_0 = arith.constant 0.000000e+00 : f32
    %1 = vector.broadcast %cst_0 : f32 to vector<14x14xf32>
    %cst_1 = arith.constant 0.000000e+00 : f32
    %2 = vector.broadcast %cst_1 : f32 to vector<14x14xf32>
    %cst_2 = arith.constant 0.000000e+00 : f32
    %3 = vector.broadcast %cst_2 : f32 to vector<14x14xf32>
    %cst_3 = arith.constant 0.000000e+00 : f32
    %4 = vector.broadcast %cst_3 : f32 to vector<14x14xf32>
    %cst_4 = arith.constant 0.000000e+00 : f32
    %5 = vector.broadcast %cst_4 : f32 to vector<14x14xf32>
    %c0 = arith.constant 0 : index
    %c0_5 = arith.constant 0 : index
    %c0_6 = arith.constant 0 : index
    %c0_7 = arith.constant 0 : index
    %6 = vector.load %arg1[%c0, %c0_5, %c0_6, %c0_7] : memref<1x3x16x16xf32, #tpu.memory_space<vmem>>, vector<1x1x14x14xf32>
    %7 = vector.shape_cast %6 : vector<1x1x14x14xf32> to vector<14x14xf32>
    %c0_8 = arith.constant 0 : index
    %8 = memref.load %arg2[%c0_8] : memref<162xf32, #tpu.memory_space<smem>>
    %9 = vector.broadcast %8 : f32 to vector<14x14xf32>
    %10 = arith.mulf %9, %7 : vector<14x14xf32>
    %11 = arith.addf %0, %10 : vector<14x14xf32>
    %c27 = arith.constant 27 : index
    %12 = memref.load %arg2[%c27] : memref<162xf32, #tpu.memory_space<smem>>
    %13 = vector.broadcast %12 : f32 to vector<14x14xf32>
    %14 = arith.mulf %13, %7 : vector<14x14xf32>
    %15 = arith.addf %1, %14 : vector<14x14xf32>
    %c54 = arith.constant 54 : index
    %16 = memref.load %arg2[%c54] : memref<162xf32, #tpu.memory_space<smem>>
    %17 = vector.broadcast %16 : f32 to vector<14x14xf32>
    %18 = arith.mulf %17, %7 : vector<14x14xf32>
    %19 = arith.addf %2, %18 : vector<14x14xf32>
    %c81 = arith.constant 81 : index
    %20 = memref.load %arg2[%c81] : memref<162xf32, #tpu.memory_space<smem>>
    %21 = vector.broadcast %20 : f32 to vector<14x14xf32>
    %22 = arith.mulf %21, %7 : vector<14x14xf32>
    %23 = arith.addf %3, %22 : vector<14x14xf32>
    %c108 = arith.constant 108 : index
    %24 = memref.load %arg2[%c108] : memref<162xf32, #tpu.memory_space<smem>>
    %25 = vector.broadcast %24 : f32 to vector<14x14xf32>
    %26 = arith.mulf %25, %7 : vector<14x14xf32>
    %27 = arith.addf %4, %26 : vector<14x14xf32>
    %c135 = arith.constant 135 : index
    %28 = memref.load %arg2[%c135] : memref<162xf32, #tpu.memory_space<smem>>
    %29 = vector.broadcast %28 : f32 to vector<14x14xf32>
    %30 = arith.mulf %29, %7 : vector<14x14xf32>
    %31 = arith.addf %5, %30 : vector<14x14xf32>
    %c0_9 = arith.constant 0 : index
    %c0_10 = arith.constant 0 : index
    %c0_11 = arith.constant 0 : index
    %c1 = arith.constant 1 : index
    %32 = vector.load %arg1[%c0_9, %c0_10, %c0_11, %c1] : memref<1x3x16x16xf32, #tpu.memory_space<vmem>>, vector<1x1x14x14xf32>
    %33 = vector.shape_cast %32 : vector<1x1x14x14xf32> to vector<14x14xf32>
    %c1_12 = arith.constant 1 : index
    %34 = memref.load %arg2[%c1_12] : memref<162xf32, #tpu.memory_space<smem>>
    %35 = vector.broadcast %34 : f32 to vector<14x14xf32>
    %36 = arith.mulf %35, %33 : vector<14x14xf32>
    %37 = arith.addf %11, %36 : vector<14x14xf32>
    %c28 = arith.constant 28 : index
    %38 = memref.load %arg2[%c28] : memref<162xf32, #tpu.memory_space<smem>>
    %39 = vector.broadcast %38 : f32 to vector<14x14xf32>
    %40 = arith.mulf %39, %33 : vector<14x14xf32>
    %41 = arith.addf %15, %40 : vector<14x14xf32>
    %c55 = arith.constant 55 : index
    %42 = memref.load %arg2[%c55] : memref<162xf32, #tpu.memory_space<smem>>
    %43 = vector.broadcast %42 : f32 to vector<14x14xf32>
    %44 = arith.mulf %43, %33 : vector<14x14xf32>
    %45 = arith.addf %19, %44 : vector<14x14xf32>
    %c82 = arith.constant 82 : index
    %46 = memref.load %arg2[%c82] : memref<162xf32, #tpu.memory_space<smem>>
    %47 = vector.broadcast %46 : f32 to vector<14x14xf32>
    %48 = arith.mulf %47, %33 : vector<14x14xf32>
    %49 = arith.addf %23, %48 : vector<14x14xf32>
    %c109 = arith.constant 109 : index
    %50 = memref.load %arg2[%c109] : memref<162xf32, #tpu.memory_space<smem>>
    %51 = vector.broadcast %50 : f32 to vector<14x14xf32>
    %52 = arith.mulf %51, %33 : vector<14x14xf32>
    %53 = arith.addf %27, %52 : vector<14x14xf32>
    %c136 = arith.constant 136 : index
    %54 = memref.load %arg2[%c136] : memref<162xf32, #tpu.memory_space<smem>>
    %55 = vector.broadcast %54 : f32 to vector<14x14xf32>
    %56 = arith.mulf %55, %33 : vector<14x14xf32>
    %57 = arith.addf %31, %56 : vector<14x14xf32>
    %c0_13 = arith.constant 0 : index
    %c0_14 = arith.constant 0 : index
    %c0_15 = arith.constant 0 : index
    %c2 = arith.constant 2 : index
    %58 = vector.load %arg1[%c0_13, %c0_14, %c0_15, %c2] : memref<1x3x16x16xf32, #tpu.memory_space<vmem>>, vector<1x1x14x14xf32>
    %59 = vector.shape_cast %58 : vector<1x1x14x14xf32> to vector<14x14xf32>
    %c2_16 = arith.constant 2 : index
    %60 = memref.load %arg2[%c2_16] : memref<162xf32, #tpu.memory_space<smem>>
    %61 = vector.broadcast %60 : f32 to vector<14x14xf32>
    %62 = arith.mulf %61, %59 : vector<14x14xf32>
    %63 = arith.addf %37, %62 : vector<14x14xf32>
    %c29 = arith.constant 29 : index
    %64 = memref.load %arg2[%c29] : memref<162xf32, #tpu.memory_space<smem>>
    %65 = vector.broadcast %64 : f32 to vector<14x14xf32>
    %66 = arith.mulf %65, %59 : vector<14x14xf32>
    %67 = arith.addf %41, %66 : vector<14x14xf32>
    %c56 = arith.constant 56 : index
    %68 = memref.load %arg2[%c56] : memref<162xf32, #tpu.memory_space<smem>>
    %69 = vector.broadcast %68 : f32 to vector<14x14xf32>
    %70 = arith.mulf %69, %59 : vector<14x14xf32>
    %71 = arith.addf %45, %70 : vector<14x14xf32>
    %c83 = arith.constant 83 : index
    %72 = memref.load %arg2[%c83] : memref<162xf32, #tpu.memory_space<smem>>
    %73 = vector.broadcast %72 : f32 to vector<14x14xf32>
    %74 = arith.mulf %73, %59 : vector<14x14xf32>
    %75 = arith.addf %49, %74 : vector<14x14xf32>
    %c110 = arith.constant 110 : index
    %76 = memref.load %arg2[%c110] : memref<162xf32, #tpu.memory_space<smem>>
    %77 = vector.broadcast %76 : f32 to vector<14x14xf32>
    %78 = arith.mulf %77, %59 : vector<14x14xf32>
    %79 = arith.addf %53, %78 : vector<14x14xf32>
    %c137 = arith.constant 137 : index
    %80 = memref.load %arg2[%c137] : memref<162xf32, #tpu.memory_space<smem>>
    %81 = vector.broadcast %80 : f32 to vector<14x14xf32>
    %82 = arith.mulf %81, %59 : vector<14x14xf32>
    %83 = arith.addf %57, %82 : vector<14x14xf32>
    %c0_17 = arith.constant 0 : index
    %c0_18 = arith.constant 0 : index
    %c1_19 = arith.constant 1 : index
    %c0_20 = arith.constant 0 : index
    %84 = vector.load %arg1[%c0_17, %c0_18, %c1_19, %c0_20] : memref<1x3x16x16xf32, #tpu.memory_space<vmem>>, vector<1x1x14x14xf32>
    %85 = vector.shape_cast %84 : vector<1x1x14x14xf32> to vector<14x14xf32>
    %c3 = arith.constant 3 : index
    %86 = memref.load %arg2[%c3] : memref<162xf32, #tpu.memory_space<smem>>
    %87 = vector.broadcast %86 : f32 to vector<14x14xf32>
    %88 = arith.mulf %87, %85 : vector<14x14xf32>
    %89 = arith.addf %63, %88 : vector<14x14xf32>
    %c30 = arith.constant 30 : index
    %90 = memref.load %arg2[%c30] : memref<162xf32, #tpu.memory_space<smem>>
    %91 = vector.broadcast %90 : f32 to vector<14x14xf32>
    %92 = arith.mulf %91, %85 : vector<14x14xf32>
    %93 = arith.addf %67, %92 : vector<14x14xf32>
    %c57 = arith.constant 57 : index
    %94 = memref.load %arg2[%c57] : memref<162xf32, #tpu.memory_space<smem>>
    %95 = vector.broadcast %94 : f32 to vector<14x14xf32>
    %96 = arith.mulf %95, %85 : vector<14x14xf32>
    %97 = arith.addf %71, %96 : vector<14x14xf32>
    %c84 = arith.constant 84 : index
    %98 = memref.load %arg2[%c84] : memref<162xf32, #tpu.memory_space<smem>>
    %99 = vector.broadcast %98 : f32 to vector<14x14xf32>
    %100 = arith.mulf %99, %85 : vector<14x14xf32>
    %101 = arith.addf %75, %100 : vector<14x14xf32>
    %c111 = arith.constant 111 : index
    %102 = memref.load %arg2[%c111] : memref<162xf32, #tpu.memory_space<smem>>
    %103 = vector.broadcast %102 : f32 to vector<14x14xf32>
    %104 = arith.mulf %103, %85 : vector<14x14xf32>
    %105 = arith.addf %79, %104 : vector<14x14xf32>
    %c138 = arith.constant 138 : index
    %106 = memref.load %arg2[%c138] : memref<162xf32, #tpu.memory_space<smem>>
    %107 = vector.broadcast %106 : f32 to vector<14x14xf32>
    %108 = arith.mulf %107, %85 : vector<14x14xf32>
    %109 = arith.addf %83, %108 : vector<14x14xf32>
    %c0_21 = arith.constant 0 : index
    %c0_22 = arith.constant 0 : index
    %c1_23 = arith.constant 1 : index
    %c1_24 = arith.constant 1 : index
    %110 = vector.load %arg1[%c0_21, %c0_22, %c1_23, %c1_24] : memref<1x3x16x16xf32, #tpu.memory_space<vmem>>, vector<1x1x14x14xf32>
    %111 = vector.shape_cast %110 : vector<1x1x14x14xf32> to vector<14x14xf32>
    %c4 = arith.constant 4 : index
    %112 = memref.load %arg2[%c4] : memref<162xf32, #tpu.memory_space<smem>>
    %113 = vector.broadcast %112 : f32 to vector<14x14xf32>
    %114 = arith.mulf %113, %111 : vector<14x14xf32>
    %115 = arith.addf %89, %114 : vector<14x14xf32>
    %c31 = arith.constant 31 : index
    %116 = memref.load %arg2[%c31] : memref<162xf32, #tpu.memory_space<smem>>
    %117 = vector.broadcast %116 : f32 to vector<14x14xf32>
    %118 = arith.mulf %117, %111 : vector<14x14xf32>
    %119 = arith.addf %93, %118 : vector<14x14xf32>
    %c58 = arith.constant 58 : index
    %120 = memref.load %arg2[%c58] : memref<162xf32, #tpu.memory_space<smem>>
    %121 = vector.broadcast %120 : f32 to vector<14x14xf32>
    %122 = arith.mulf %121, %111 : vector<14x14xf32>
    %123 = arith.addf %97, %122 : vector<14x14xf32>
    %c85 = arith.constant 85 : index
    %124 = memref.load %arg2[%c85] : memref<162xf32, #tpu.memory_space<smem>>
    %125 = vector.broadcast %124 : f32 to vector<14x14xf32>
    %126 = arith.mulf %125, %111 : vector<14x14xf32>
    %127 = arith.addf %101, %126 : vector<14x14xf32>
    %c112 = arith.constant 112 : index
    %128 = memref.load %arg2[%c112] : memref<162xf32, #tpu.memory_space<smem>>
    %129 = vector.broadcast %128 : f32 to vector<14x14xf32>
    %130 = arith.mulf %129, %111 : vector<14x14xf32>
    %131 = arith.addf %105, %130 : vector<14x14xf32>
    %c139 = arith.constant 139 : index
    %132 = memref.load %arg2[%c139] : memref<162xf32, #tpu.memory_space<smem>>
    %133 = vector.broadcast %132 : f32 to vector<14x14xf32>
    %134 = arith.mulf %133, %111 : vector<14x14xf32>
    %135 = arith.addf %109, %134 : vector<14x14xf32>
    %c0_25 = arith.constant 0 : index
    %c0_26 = arith.constant 0 : index
    %c1_27 = arith.constant 1 : index
    %c2_28 = arith.constant 2 : index
    %136 = vector.load %arg1[%c0_25, %c0_26, %c1_27, %c2_28] : memref<1x3x16x16xf32, #tpu.memory_space<vmem>>, vector<1x1x14x14xf32>
    %137 = vector.shape_cast %136 : vector<1x1x14x14xf32> to vector<14x14xf32>
    %c5 = arith.constant 5 : index
    %138 = memref.load %arg2[%c5] : memref<162xf32, #tpu.memory_space<smem>>
    %139 = vector.broadcast %138 : f32 to vector<14x14xf32>
    %140 = arith.mulf %139, %137 : vector<14x14xf32>
    %141 = arith.addf %115, %140 : vector<14x14xf32>
    %c32 = arith.constant 32 : index
    %142 = memref.load %arg2[%c32] : memref<162xf32, #tpu.memory_space<smem>>
    %143 = vector.broadcast %142 : f32 to vector<14x14xf32>
    %144 = arith.mulf %143, %137 : vector<14x14xf32>
    %145 = arith.addf %119, %144 : vector<14x14xf32>
    %c59 = arith.constant 59 : index
    %146 = memref.load %arg2[%c59] : memref<162xf32, #tpu.memory_space<smem>>
    %147 = vector.broadcast %146 : f32 to vector<14x14xf32>
    %148 = arith.mulf %147, %137 : vector<14x14xf32>
    %149 = arith.addf %123, %148 : vector<14x14xf32>
    %c86 = arith.constant 86 : index
    %150 = memref.load %arg2[%c86] : memref<162xf32, #tpu.memory_space<smem>>
    %151 = vector.broadcast %150 : f32 to vector<14x14xf32>
    %152 = arith.mulf %151, %137 : vector<14x14xf32>
    %153 = arith.addf %127, %152 : vector<14x14xf32>
    %c113 = arith.constant 113 : index
    %154 = memref.load %arg2[%c113] : memref<162xf32, #tpu.memory_space<smem>>
    %155 = vector.broadcast %154 : f32 to vector<14x14xf32>
    %156 = arith.mulf %155, %137 : vector<14x14xf32>
    %157 = arith.addf %131, %156 : vector<14x14xf32>
    %c140 = arith.constant 140 : index
    %158 = memref.load %arg2[%c140] : memref<162xf32, #tpu.memory_space<smem>>
    %159 = vector.broadcast %158 : f32 to vector<14x14xf32>
    %160 = arith.mulf %159, %137 : vector<14x14xf32>
    %161 = arith.addf %135, %160 : vector<14x14xf32>
    %c0_29 = arith.constant 0 : index
    %c0_30 = arith.constant 0 : index
    %c2_31 = arith.constant 2 : index
    %c0_32 = arith.constant 0 : index
    %162 = vector.load %arg1[%c0_29, %c0_30, %c2_31, %c0_32] : memref<1x3x16x16xf32, #tpu.memory_space<vmem>>, vector<1x1x14x14xf32>
    %163 = vector.shape_cast %162 : vector<1x1x14x14xf32> to vector<14x14xf32>
    %c6 = arith.constant 6 : index
    %164 = memref.load %arg2[%c6] : memref<162xf32, #tpu.memory_space<smem>>
    %165 = vector.broadcast %164 : f32 to vector<14x14xf32>
    %166 = arith.mulf %165, %163 : vector<14x14xf32>
    %167 = arith.addf %141, %166 : vector<14x14xf32>
    %c33 = arith.constant 33 : index
    %168 = memref.load %arg2[%c33] : memref<162xf32, #tpu.memory_space<smem>>
    %169 = vector.broadcast %168 : f32 to vector<14x14xf32>
    %170 = arith.mulf %169, %163 : vector<14x14xf32>
    %171 = arith.addf %145, %170 : vector<14x14xf32>
    %c60 = arith.constant 60 : index
    %172 = memref.load %arg2[%c60] : memref<162xf32, #tpu.memory_space<smem>>
    %173 = vector.broadcast %172 : f32 to vector<14x14xf32>
    %174 = arith.mulf %173, %163 : vector<14x14xf32>
    %175 = arith.addf %149, %174 : vector<14x14xf32>
    %c87 = arith.constant 87 : index
    %176 = memref.load %arg2[%c87] : memref<162xf32, #tpu.memory_space<smem>>
    %177 = vector.broadcast %176 : f32 to vector<14x14xf32>
    %178 = arith.mulf %177, %163 : vector<14x14xf32>
    %179 = arith.addf %153, %178 : vector<14x14xf32>
    %c114 = arith.constant 114 : index
    %180 = memref.load %arg2[%c114] : memref<162xf32, #tpu.memory_space<smem>>
    %181 = vector.broadcast %180 : f32 to vector<14x14xf32>
    %182 = arith.mulf %181, %163 : vector<14x14xf32>
    %183 = arith.addf %157, %182 : vector<14x14xf32>
    %c141 = arith.constant 141 : index
    %184 = memref.load %arg2[%c141] : memref<162xf32, #tpu.memory_space<smem>>
    %185 = vector.broadcast %184 : f32 to vector<14x14xf32>
    %186 = arith.mulf %185, %163 : vector<14x14xf32>
    %187 = arith.addf %161, %186 : vector<14x14xf32>
    %c0_33 = arith.constant 0 : index
    %c0_34 = arith.constant 0 : index
    %c2_35 = arith.constant 2 : index
    %c1_36 = arith.constant 1 : index
    %188 = vector.load %arg1[%c0_33, %c0_34, %c2_35, %c1_36] : memref<1x3x16x16xf32, #tpu.memory_space<vmem>>, vector<1x1x14x14xf32>
    %189 = vector.shape_cast %188 : vector<1x1x14x14xf32> to vector<14x14xf32>
    %c7 = arith.constant 7 : index
    %190 = memref.load %arg2[%c7] : memref<162xf32, #tpu.memory_space<smem>>
    %191 = vector.broadcast %190 : f32 to vector<14x14xf32>
    %192 = arith.mulf %191, %189 : vector<14x14xf32>
    %193 = arith.addf %167, %192 : vector<14x14xf32>
    %c34 = arith.constant 34 : index
    %194 = memref.load %arg2[%c34] : memref<162xf32, #tpu.memory_space<smem>>
    %195 = vector.broadcast %194 : f32 to vector<14x14xf32>
    %196 = arith.mulf %195, %189 : vector<14x14xf32>
    %197 = arith.addf %171, %196 : vector<14x14xf32>
    %c61 = arith.constant 61 : index
    %198 = memref.load %arg2[%c61] : memref<162xf32, #tpu.memory_space<smem>>
    %199 = vector.broadcast %198 : f32 to vector<14x14xf32>
    %200 = arith.mulf %199, %189 : vector<14x14xf32>
    %201 = arith.addf %175, %200 : vector<14x14xf32>
    %c88 = arith.constant 88 : index
    %202 = memref.load %arg2[%c88] : memref<162xf32, #tpu.memory_space<smem>>
    %203 = vector.broadcast %202 : f32 to vector<14x14xf32>
    %204 = arith.mulf %203, %189 : vector<14x14xf32>
    %205 = arith.addf %179, %204 : vector<14x14xf32>
    %c115 = arith.constant 115 : index
    %206 = memref.load %arg2[%c115] : memref<162xf32, #tpu.memory_space<smem>>
    %207 = vector.broadcast %206 : f32 to vector<14x14xf32>
    %208 = arith.mulf %207, %189 : vector<14x14xf32>
    %209 = arith.addf %183, %208 : vector<14x14xf32>
    %c142 = arith.constant 142 : index
    %210 = memref.load %arg2[%c142] : memref<162xf32, #tpu.memory_space<smem>>
    %211 = vector.broadcast %210 : f32 to vector<14x14xf32>
    %212 = arith.mulf %211, %189 : vector<14x14xf32>
    %213 = arith.addf %187, %212 : vector<14x14xf32>
    %c0_37 = arith.constant 0 : index
    %c0_38 = arith.constant 0 : index
    %c2_39 = arith.constant 2 : index
    %c2_40 = arith.constant 2 : index
    %214 = vector.load %arg1[%c0_37, %c0_38, %c2_39, %c2_40] : memref<1x3x16x16xf32, #tpu.memory_space<vmem>>, vector<1x1x14x14xf32>
    %215 = vector.shape_cast %214 : vector<1x1x14x14xf32> to vector<14x14xf32>
    %c8 = arith.constant 8 : index
    %216 = memref.load %arg2[%c8] : memref<162xf32, #tpu.memory_space<smem>>
    %217 = vector.broadcast %216 : f32 to vector<14x14xf32>
    %218 = arith.mulf %217, %215 : vector<14x14xf32>
    %219 = arith.addf %193, %218 : vector<14x14xf32>
    %c35 = arith.constant 35 : index
    %220 = memref.load %arg2[%c35] : memref<162xf32, #tpu.memory_space<smem>>
    %221 = vector.broadcast %220 : f32 to vector<14x14xf32>
    %222 = arith.mulf %221, %215 : vector<14x14xf32>
    %223 = arith.addf %197, %222 : vector<14x14xf32>
    %c62 = arith.constant 62 : index
    %224 = memref.load %arg2[%c62] : memref<162xf32, #tpu.memory_space<smem>>
    %225 = vector.broadcast %224 : f32 to vector<14x14xf32>
    %226 = arith.mulf %225, %215 : vector<14x14xf32>
    %227 = arith.addf %201, %226 : vector<14x14xf32>
    %c89 = arith.constant 89 : index
    %228 = memref.load %arg2[%c89] : memref<162xf32, #tpu.memory_space<smem>>
    %229 = vector.broadcast %228 : f32 to vector<14x14xf32>
    %230 = arith.mulf %229, %215 : vector<14x14xf32>
    %231 = arith.addf %205, %230 : vector<14x14xf32>
    %c116 = arith.constant 116 : index
    %232 = memref.load %arg2[%c116] : memref<162xf32, #tpu.memory_space<smem>>
    %233 = vector.broadcast %232 : f32 to vector<14x14xf32>
    %234 = arith.mulf %233, %215 : vector<14x14xf32>
    %235 = arith.addf %209, %234 : vector<14x14xf32>
    %c143 = arith.constant 143 : index
    %236 = memref.load %arg2[%c143] : memref<162xf32, #tpu.memory_space<smem>>
    %237 = vector.broadcast %236 : f32 to vector<14x14xf32>
    %238 = arith.mulf %237, %215 : vector<14x14xf32>
    %239 = arith.addf %213, %238 : vector<14x14xf32>
    %c0_41 = arith.constant 0 : index
    %c1_42 = arith.constant 1 : index
    %c0_43 = arith.constant 0 : index
    %c0_44 = arith.constant 0 : index
    %240 = vector.load %arg1[%c0_41, %c1_42, %c0_43, %c0_44] : memref<1x3x16x16xf32, #tpu.memory_space<vmem>>, vector<1x1x14x14xf32>
    %241 = vector.shape_cast %240 : vector<1x1x14x14xf32> to vector<14x14xf32>
    %c9 = arith.constant 9 : index
    %242 = memref.load %arg2[%c9] : memref<162xf32, #tpu.memory_space<smem>>
    %243 = vector.broadcast %242 : f32 to vector<14x14xf32>
    %244 = arith.mulf %243, %241 : vector<14x14xf32>
    %245 = arith.addf %219, %244 : vector<14x14xf32>
    %c36 = arith.constant 36 : index
    %246 = memref.load %arg2[%c36] : memref<162xf32, #tpu.memory_space<smem>>
    %247 = vector.broadcast %246 : f32 to vector<14x14xf32>
    %248 = arith.mulf %247, %241 : vector<14x14xf32>
    %249 = arith.addf %223, %248 : vector<14x14xf32>
    %c63 = arith.constant 63 : index
    %250 = memref.load %arg2[%c63] : memref<162xf32, #tpu.memory_space<smem>>
    %251 = vector.broadcast %250 : f32 to vector<14x14xf32>
    %252 = arith.mulf %251, %241 : vector<14x14xf32>
    %253 = arith.addf %227, %252 : vector<14x14xf32>
    %c90 = arith.constant 90 : index
    %254 = memref.load %arg2[%c90] : memref<162xf32, #tpu.memory_space<smem>>
    %255 = vector.broadcast %254 : f32 to vector<14x14xf32>
    %256 = arith.mulf %255, %241 : vector<14x14xf32>
    %257 = arith.addf %231, %256 : vector<14x14xf32>
    %c117 = arith.constant 117 : index
    %258 = memref.load %arg2[%c117] : memref<162xf32, #tpu.memory_space<smem>>
    %259 = vector.broadcast %258 : f32 to vector<14x14xf32>
    %260 = arith.mulf %259, %241 : vector<14x14xf32>
    %261 = arith.addf %235, %260 : vector<14x14xf32>
    %c144 = arith.constant 144 : index
    %262 = memref.load %arg2[%c144] : memref<162xf32, #tpu.memory_space<smem>>
    %263 = vector.broadcast %262 : f32 to vector<14x14xf32>
    %264 = arith.mulf %263, %241 : vector<14x14xf32>
    %265 = arith.addf %239, %264 : vector<14x14xf32>
    %c0_45 = arith.constant 0 : index
    %c1_46 = arith.constant 1 : index
    %c0_47 = arith.constant 0 : index
    %c1_48 = arith.constant 1 : index
    %266 = vector.load %arg1[%c0_45, %c1_46, %c0_47, %c1_48] : memref<1x3x16x16xf32, #tpu.memory_space<vmem>>, vector<1x1x14x14xf32>
    %267 = vector.shape_cast %266 : vector<1x1x14x14xf32> to vector<14x14xf32>
    %c10 = arith.constant 10 : index
    %268 = memref.load %arg2[%c10] : memref<162xf32, #tpu.memory_space<smem>>
    %269 = vector.broadcast %268 : f32 to vector<14x14xf32>
    %270 = arith.mulf %269, %267 : vector<14x14xf32>
    %271 = arith.addf %245, %270 : vector<14x14xf32>
    %c37 = arith.constant 37 : index
    %272 = memref.load %arg2[%c37] : memref<162xf32, #tpu.memory_space<smem>>
    %273 = vector.broadcast %272 : f32 to vector<14x14xf32>
    %274 = arith.mulf %273, %267 : vector<14x14xf32>
    %275 = arith.addf %249, %274 : vector<14x14xf32>
    %c64 = arith.constant 64 : index
    %276 = memref.load %arg2[%c64] : memref<162xf32, #tpu.memory_space<smem>>
    %277 = vector.broadcast %276 : f32 to vector<14x14xf32>
    %278 = arith.mulf %277, %267 : vector<14x14xf32>
    %279 = arith.addf %253, %278 : vector<14x14xf32>
    %c91 = arith.constant 91 : index
    %280 = memref.load %arg2[%c91] : memref<162xf32, #tpu.memory_space<smem>>
    %281 = vector.broadcast %280 : f32 to vector<14x14xf32>
    %282 = arith.mulf %281, %267 : vector<14x14xf32>
    %283 = arith.addf %257, %282 : vector<14x14xf32>
    %c118 = arith.constant 118 : index
    %284 = memref.load %arg2[%c118] : memref<162xf32, #tpu.memory_space<smem>>
    %285 = vector.broadcast %284 : f32 to vector<14x14xf32>
    %286 = arith.mulf %285, %267 : vector<14x14xf32>
    %287 = arith.addf %261, %286 : vector<14x14xf32>
    %c145 = arith.constant 145 : index
    %288 = memref.load %arg2[%c145] : memref<162xf32, #tpu.memory_space<smem>>
    %289 = vector.broadcast %288 : f32 to vector<14x14xf32>
    %290 = arith.mulf %289, %267 : vector<14x14xf32>
    %291 = arith.addf %265, %290 : vector<14x14xf32>
    %c0_49 = arith.constant 0 : index
    %c1_50 = arith.constant 1 : index
    %c0_51 = arith.constant 0 : index
    %c2_52 = arith.constant 2 : index
    %292 = vector.load %arg1[%c0_49, %c1_50, %c0_51, %c2_52] : memref<1x3x16x16xf32, #tpu.memory_space<vmem>>, vector<1x1x14x14xf32>
    %293 = vector.shape_cast %292 : vector<1x1x14x14xf32> to vector<14x14xf32>
    %c11 = arith.constant 11 : index
    %294 = memref.load %arg2[%c11] : memref<162xf32, #tpu.memory_space<smem>>
    %295 = vector.broadcast %294 : f32 to vector<14x14xf32>
    %296 = arith.mulf %295, %293 : vector<14x14xf32>
    %297 = arith.addf %271, %296 : vector<14x14xf32>
    %c38 = arith.constant 38 : index
    %298 = memref.load %arg2[%c38] : memref<162xf32, #tpu.memory_space<smem>>
    %299 = vector.broadcast %298 : f32 to vector<14x14xf32>
    %300 = arith.mulf %299, %293 : vector<14x14xf32>
    %301 = arith.addf %275, %300 : vector<14x14xf32>
    %c65 = arith.constant 65 : index
    %302 = memref.load %arg2[%c65] : memref<162xf32, #tpu.memory_space<smem>>
    %303 = vector.broadcast %302 : f32 to vector<14x14xf32>
    %304 = arith.mulf %303, %293 : vector<14x14xf32>
    %305 = arith.addf %279, %304 : vector<14x14xf32>
    %c92 = arith.constant 92 : index
    %306 = memref.load %arg2[%c92] : memref<162xf32, #tpu.memory_space<smem>>
    %307 = vector.broadcast %306 : f32 to vector<14x14xf32>
    %308 = arith.mulf %307, %293 : vector<14x14xf32>
    %309 = arith.addf %283, %308 : vector<14x14xf32>
    %c119 = arith.constant 119 : index
    %310 = memref.load %arg2[%c119] : memref<162xf32, #tpu.memory_space<smem>>
    %311 = vector.broadcast %310 : f32 to vector<14x14xf32>
    %312 = arith.mulf %311, %293 : vector<14x14xf32>
    %313 = arith.addf %287, %312 : vector<14x14xf32>
    %c146 = arith.constant 146 : index
    %314 = memref.load %arg2[%c146] : memref<162xf32, #tpu.memory_space<smem>>
    %315 = vector.broadcast %314 : f32 to vector<14x14xf32>
    %316 = arith.mulf %315, %293 : vector<14x14xf32>
    %317 = arith.addf %291, %316 : vector<14x14xf32>
    %c0_53 = arith.constant 0 : index
    %c1_54 = arith.constant 1 : index
    %c1_55 = arith.constant 1 : index
    %c0_56 = arith.constant 0 : index
    %318 = vector.load %arg1[%c0_53, %c1_54, %c1_55, %c0_56] : memref<1x3x16x16xf32, #tpu.memory_space<vmem>>, vector<1x1x14x14xf32>
    %319 = vector.shape_cast %318 : vector<1x1x14x14xf32> to vector<14x14xf32>
    %c12 = arith.constant 12 : index
    %320 = memref.load %arg2[%c12] : memref<162xf32, #tpu.memory_space<smem>>
    %321 = vector.broadcast %320 : f32 to vector<14x14xf32>
    %322 = arith.mulf %321, %319 : vector<14x14xf32>
    %323 = arith.addf %297, %322 : vector<14x14xf32>
    %c39 = arith.constant 39 : index
    %324 = memref.load %arg2[%c39] : memref<162xf32, #tpu.memory_space<smem>>
    %325 = vector.broadcast %324 : f32 to vector<14x14xf32>
    %326 = arith.mulf %325, %319 : vector<14x14xf32>
    %327 = arith.addf %301, %326 : vector<14x14xf32>
    %c66 = arith.constant 66 : index
    %328 = memref.load %arg2[%c66] : memref<162xf32, #tpu.memory_space<smem>>
    %329 = vector.broadcast %328 : f32 to vector<14x14xf32>
    %330 = arith.mulf %329, %319 : vector<14x14xf32>
    %331 = arith.addf %305, %330 : vector<14x14xf32>
    %c93 = arith.constant 93 : index
    %332 = memref.load %arg2[%c93] : memref<162xf32, #tpu.memory_space<smem>>
    %333 = vector.broadcast %332 : f32 to vector<14x14xf32>
    %334 = arith.mulf %333, %319 : vector<14x14xf32>
    %335 = arith.addf %309, %334 : vector<14x14xf32>
    %c120 = arith.constant 120 : index
    %336 = memref.load %arg2[%c120] : memref<162xf32, #tpu.memory_space<smem>>
    %337 = vector.broadcast %336 : f32 to vector<14x14xf32>
    %338 = arith.mulf %337, %319 : vector<14x14xf32>
    %339 = arith.addf %313, %338 : vector<14x14xf32>
    %c147 = arith.constant 147 : index
    %340 = memref.load %arg2[%c147] : memref<162xf32, #tpu.memory_space<smem>>
    %341 = vector.broadcast %340 : f32 to vector<14x14xf32>
    %342 = arith.mulf %341, %319 : vector<14x14xf32>
    %343 = arith.addf %317, %342 : vector<14x14xf32>
    %c0_57 = arith.constant 0 : index
    %c1_58 = arith.constant 1 : index
    %c1_59 = arith.constant 1 : index
    %c1_60 = arith.constant 1 : index
    %344 = vector.load %arg1[%c0_57, %c1_58, %c1_59, %c1_60] : memref<1x3x16x16xf32, #tpu.memory_space<vmem>>, vector<1x1x14x14xf32>
    %345 = vector.shape_cast %344 : vector<1x1x14x14xf32> to vector<14x14xf32>
    %c13 = arith.constant 13 : index
    %346 = memref.load %arg2[%c13] : memref<162xf32, #tpu.memory_space<smem>>
    %347 = vector.broadcast %346 : f32 to vector<14x14xf32>
    %348 = arith.mulf %347, %345 : vector<14x14xf32>
    %349 = arith.addf %323, %348 : vector<14x14xf32>
    %c40 = arith.constant 40 : index
    %350 = memref.load %arg2[%c40] : memref<162xf32, #tpu.memory_space<smem>>
    %351 = vector.broadcast %350 : f32 to vector<14x14xf32>
    %352 = arith.mulf %351, %345 : vector<14x14xf32>
    %353 = arith.addf %327, %352 : vector<14x14xf32>
    %c67 = arith.constant 67 : index
    %354 = memref.load %arg2[%c67] : memref<162xf32, #tpu.memory_space<smem>>
    %355 = vector.broadcast %354 : f32 to vector<14x14xf32>
    %356 = arith.mulf %355, %345 : vector<14x14xf32>
    %357 = arith.addf %331, %356 : vector<14x14xf32>
    %c94 = arith.constant 94 : index
    %358 = memref.load %arg2[%c94] : memref<162xf32, #tpu.memory_space<smem>>
    %359 = vector.broadcast %358 : f32 to vector<14x14xf32>
    %360 = arith.mulf %359, %345 : vector<14x14xf32>
    %361 = arith.addf %335, %360 : vector<14x14xf32>
    %c121 = arith.constant 121 : index
    %362 = memref.load %arg2[%c121] : memref<162xf32, #tpu.memory_space<smem>>
    %363 = vector.broadcast %362 : f32 to vector<14x14xf32>
    %364 = arith.mulf %363, %345 : vector<14x14xf32>
    %365 = arith.addf %339, %364 : vector<14x14xf32>
    %c148 = arith.constant 148 : index
    %366 = memref.load %arg2[%c148] : memref<162xf32, #tpu.memory_space<smem>>
    %367 = vector.broadcast %366 : f32 to vector<14x14xf32>
    %368 = arith.mulf %367, %345 : vector<14x14xf32>
    %369 = arith.addf %343, %368 : vector<14x14xf32>
    %c0_61 = arith.constant 0 : index
    %c1_62 = arith.constant 1 : index
    %c1_63 = arith.constant 1 : index
    %c2_64 = arith.constant 2 : index
    %370 = vector.load %arg1[%c0_61, %c1_62, %c1_63, %c2_64] : memref<1x3x16x16xf32, #tpu.memory_space<vmem>>, vector<1x1x14x14xf32>
    %371 = vector.shape_cast %370 : vector<1x1x14x14xf32> to vector<14x14xf32>
    %c14 = arith.constant 14 : index
    %372 = memref.load %arg2[%c14] : memref<162xf32, #tpu.memory_space<smem>>
    %373 = vector.broadcast %372 : f32 to vector<14x14xf32>
    %374 = arith.mulf %373, %371 : vector<14x14xf32>
    %375 = arith.addf %349, %374 : vector<14x14xf32>
    %c41 = arith.constant 41 : index
    %376 = memref.load %arg2[%c41] : memref<162xf32, #tpu.memory_space<smem>>
    %377 = vector.broadcast %376 : f32 to vector<14x14xf32>
    %378 = arith.mulf %377, %371 : vector<14x14xf32>
    %379 = arith.addf %353, %378 : vector<14x14xf32>
    %c68 = arith.constant 68 : index
    %380 = memref.load %arg2[%c68] : memref<162xf32, #tpu.memory_space<smem>>
    %381 = vector.broadcast %380 : f32 to vector<14x14xf32>
    %382 = arith.mulf %381, %371 : vector<14x14xf32>
    %383 = arith.addf %357, %382 : vector<14x14xf32>
    %c95 = arith.constant 95 : index
    %384 = memref.load %arg2[%c95] : memref<162xf32, #tpu.memory_space<smem>>
    %385 = vector.broadcast %384 : f32 to vector<14x14xf32>
    %386 = arith.mulf %385, %371 : vector<14x14xf32>
    %387 = arith.addf %361, %386 : vector<14x14xf32>
    %c122 = arith.constant 122 : index
    %388 = memref.load %arg2[%c122] : memref<162xf32, #tpu.memory_space<smem>>
    %389 = vector.broadcast %388 : f32 to vector<14x14xf32>
    %390 = arith.mulf %389, %371 : vector<14x14xf32>
    %391 = arith.addf %365, %390 : vector<14x14xf32>
    %c149 = arith.constant 149 : index
    %392 = memref.load %arg2[%c149] : memref<162xf32, #tpu.memory_space<smem>>
    %393 = vector.broadcast %392 : f32 to vector<14x14xf32>
    %394 = arith.mulf %393, %371 : vector<14x14xf32>
    %395 = arith.addf %369, %394 : vector<14x14xf32>
    %c0_65 = arith.constant 0 : index
    %c1_66 = arith.constant 1 : index
    %c2_67 = arith.constant 2 : index
    %c0_68 = arith.constant 0 : index
    %396 = vector.load %arg1[%c0_65, %c1_66, %c2_67, %c0_68] : memref<1x3x16x16xf32, #tpu.memory_space<vmem>>, vector<1x1x14x14xf32>
    %397 = vector.shape_cast %396 : vector<1x1x14x14xf32> to vector<14x14xf32>
    %c15 = arith.constant 15 : index
    %398 = memref.load %arg2[%c15] : memref<162xf32, #tpu.memory_space<smem>>
    %399 = vector.broadcast %398 : f32 to vector<14x14xf32>
    %400 = arith.mulf %399, %397 : vector<14x14xf32>
    %401 = arith.addf %375, %400 : vector<14x14xf32>
    %c42 = arith.constant 42 : index
    %402 = memref.load %arg2[%c42] : memref<162xf32, #tpu.memory_space<smem>>
    %403 = vector.broadcast %402 : f32 to vector<14x14xf32>
    %404 = arith.mulf %403, %397 : vector<14x14xf32>
    %405 = arith.addf %379, %404 : vector<14x14xf32>
    %c69 = arith.constant 69 : index
    %406 = memref.load %arg2[%c69] : memref<162xf32, #tpu.memory_space<smem>>
    %407 = vector.broadcast %406 : f32 to vector<14x14xf32>
    %408 = arith.mulf %407, %397 : vector<14x14xf32>
    %409 = arith.addf %383, %408 : vector<14x14xf32>
    %c96 = arith.constant 96 : index
    %410 = memref.load %arg2[%c96] : memref<162xf32, #tpu.memory_space<smem>>
    %411 = vector.broadcast %410 : f32 to vector<14x14xf32>
    %412 = arith.mulf %411, %397 : vector<14x14xf32>
    %413 = arith.addf %387, %412 : vector<14x14xf32>
    %c123 = arith.constant 123 : index
    %414 = memref.load %arg2[%c123] : memref<162xf32, #tpu.memory_space<smem>>
    %415 = vector.broadcast %414 : f32 to vector<14x14xf32>
    %416 = arith.mulf %415, %397 : vector<14x14xf32>
    %417 = arith.addf %391, %416 : vector<14x14xf32>
    %c150 = arith.constant 150 : index
    %418 = memref.load %arg2[%c150] : memref<162xf32, #tpu.memory_space<smem>>
    %419 = vector.broadcast %418 : f32 to vector<14x14xf32>
    %420 = arith.mulf %419, %397 : vector<14x14xf32>
    %421 = arith.addf %395, %420 : vector<14x14xf32>
    %c0_69 = arith.constant 0 : index
    %c1_70 = arith.constant 1 : index
    %c2_71 = arith.constant 2 : index
    %c1_72 = arith.constant 1 : index
    %422 = vector.load %arg1[%c0_69, %c1_70, %c2_71, %c1_72] : memref<1x3x16x16xf32, #tpu.memory_space<vmem>>, vector<1x1x14x14xf32>
    %423 = vector.shape_cast %422 : vector<1x1x14x14xf32> to vector<14x14xf32>
    %c16 = arith.constant 16 : index
    %424 = memref.load %arg2[%c16] : memref<162xf32, #tpu.memory_space<smem>>
    %425 = vector.broadcast %424 : f32 to vector<14x14xf32>
    %426 = arith.mulf %425, %423 : vector<14x14xf32>
    %427 = arith.addf %401, %426 : vector<14x14xf32>
    %c43 = arith.constant 43 : index
    %428 = memref.load %arg2[%c43] : memref<162xf32, #tpu.memory_space<smem>>
    %429 = vector.broadcast %428 : f32 to vector<14x14xf32>
    %430 = arith.mulf %429, %423 : vector<14x14xf32>
    %431 = arith.addf %405, %430 : vector<14x14xf32>
    %c70 = arith.constant 70 : index
    %432 = memref.load %arg2[%c70] : memref<162xf32, #tpu.memory_space<smem>>
    %433 = vector.broadcast %432 : f32 to vector<14x14xf32>
    %434 = arith.mulf %433, %423 : vector<14x14xf32>
    %435 = arith.addf %409, %434 : vector<14x14xf32>
    %c97 = arith.constant 97 : index
    %436 = memref.load %arg2[%c97] : memref<162xf32, #tpu.memory_space<smem>>
    %437 = vector.broadcast %436 : f32 to vector<14x14xf32>
    %438 = arith.mulf %437, %423 : vector<14x14xf32>
    %439 = arith.addf %413, %438 : vector<14x14xf32>
    %c124 = arith.constant 124 : index
    %440 = memref.load %arg2[%c124] : memref<162xf32, #tpu.memory_space<smem>>
    %441 = vector.broadcast %440 : f32 to vector<14x14xf32>
    %442 = arith.mulf %441, %423 : vector<14x14xf32>
    %443 = arith.addf %417, %442 : vector<14x14xf32>
    %c151 = arith.constant 151 : index
    %444 = memref.load %arg2[%c151] : memref<162xf32, #tpu.memory_space<smem>>
    %445 = vector.broadcast %444 : f32 to vector<14x14xf32>
    %446 = arith.mulf %445, %423 : vector<14x14xf32>
    %447 = arith.addf %421, %446 : vector<14x14xf32>
    %c0_73 = arith.constant 0 : index
    %c1_74 = arith.constant 1 : index
    %c2_75 = arith.constant 2 : index
    %c2_76 = arith.constant 2 : index
    %448 = vector.load %arg1[%c0_73, %c1_74, %c2_75, %c2_76] : memref<1x3x16x16xf32, #tpu.memory_space<vmem>>, vector<1x1x14x14xf32>
    %449 = vector.shape_cast %448 : vector<1x1x14x14xf32> to vector<14x14xf32>
    %c17 = arith.constant 17 : index
    %450 = memref.load %arg2[%c17] : memref<162xf32, #tpu.memory_space<smem>>
    %451 = vector.broadcast %450 : f32 to vector<14x14xf32>
    %452 = arith.mulf %451, %449 : vector<14x14xf32>
    %453 = arith.addf %427, %452 : vector<14x14xf32>
    %c44 = arith.constant 44 : index
    %454 = memref.load %arg2[%c44] : memref<162xf32, #tpu.memory_space<smem>>
    %455 = vector.broadcast %454 : f32 to vector<14x14xf32>
    %456 = arith.mulf %455, %449 : vector<14x14xf32>
    %457 = arith.addf %431, %456 : vector<14x14xf32>
    %c71 = arith.constant 71 : index
    %458 = memref.load %arg2[%c71] : memref<162xf32, #tpu.memory_space<smem>>
    %459 = vector.broadcast %458 : f32 to vector<14x14xf32>
    %460 = arith.mulf %459, %449 : vector<14x14xf32>
    %461 = arith.addf %435, %460 : vector<14x14xf32>
    %c98 = arith.constant 98 : index
    %462 = memref.load %arg2[%c98] : memref<162xf32, #tpu.memory_space<smem>>
    %463 = vector.broadcast %462 : f32 to vector<14x14xf32>
    %464 = arith.mulf %463, %449 : vector<14x14xf32>
    %465 = arith.addf %439, %464 : vector<14x14xf32>
    %c125 = arith.constant 125 : index
    %466 = memref.load %arg2[%c125] : memref<162xf32, #tpu.memory_space<smem>>
    %467 = vector.broadcast %466 : f32 to vector<14x14xf32>
    %468 = arith.mulf %467, %449 : vector<14x14xf32>
    %469 = arith.addf %443, %468 : vector<14x14xf32>
    %c152 = arith.constant 152 : index
    %470 = memref.load %arg2[%c152] : memref<162xf32, #tpu.memory_space<smem>>
    %471 = vector.broadcast %470 : f32 to vector<14x14xf32>
    %472 = arith.mulf %471, %449 : vector<14x14xf32>
    %473 = arith.addf %447, %472 : vector<14x14xf32>
    %c0_77 = arith.constant 0 : index
    %c2_78 = arith.constant 2 : index
    %c0_79 = arith.constant 0 : index
    %c0_80 = arith.constant 0 : index
    %474 = vector.load %arg1[%c0_77, %c2_78, %c0_79, %c0_80] : memref<1x3x16x16xf32, #tpu.memory_space<vmem>>, vector<1x1x14x14xf32>
    %475 = vector.shape_cast %474 : vector<1x1x14x14xf32> to vector<14x14xf32>
    %c18 = arith.constant 18 : index
    %476 = memref.load %arg2[%c18] : memref<162xf32, #tpu.memory_space<smem>>
    %477 = vector.broadcast %476 : f32 to vector<14x14xf32>
    %478 = arith.mulf %477, %475 : vector<14x14xf32>
    %479 = arith.addf %453, %478 : vector<14x14xf32>
    %c45 = arith.constant 45 : index
    %480 = memref.load %arg2[%c45] : memref<162xf32, #tpu.memory_space<smem>>
    %481 = vector.broadcast %480 : f32 to vector<14x14xf32>
    %482 = arith.mulf %481, %475 : vector<14x14xf32>
    %483 = arith.addf %457, %482 : vector<14x14xf32>
    %c72 = arith.constant 72 : index
    %484 = memref.load %arg2[%c72] : memref<162xf32, #tpu.memory_space<smem>>
    %485 = vector.broadcast %484 : f32 to vector<14x14xf32>
    %486 = arith.mulf %485, %475 : vector<14x14xf32>
    %487 = arith.addf %461, %486 : vector<14x14xf32>
    %c99 = arith.constant 99 : index
    %488 = memref.load %arg2[%c99] : memref<162xf32, #tpu.memory_space<smem>>
    %489 = vector.broadcast %488 : f32 to vector<14x14xf32>
    %490 = arith.mulf %489, %475 : vector<14x14xf32>
    %491 = arith.addf %465, %490 : vector<14x14xf32>
    %c126 = arith.constant 126 : index
    %492 = memref.load %arg2[%c126] : memref<162xf32, #tpu.memory_space<smem>>
    %493 = vector.broadcast %492 : f32 to vector<14x14xf32>
    %494 = arith.mulf %493, %475 : vector<14x14xf32>
    %495 = arith.addf %469, %494 : vector<14x14xf32>
    %c153 = arith.constant 153 : index
    %496 = memref.load %arg2[%c153] : memref<162xf32, #tpu.memory_space<smem>>
    %497 = vector.broadcast %496 : f32 to vector<14x14xf32>
    %498 = arith.mulf %497, %475 : vector<14x14xf32>
    %499 = arith.addf %473, %498 : vector<14x14xf32>
    %c0_81 = arith.constant 0 : index
    %c2_82 = arith.constant 2 : index
    %c0_83 = arith.constant 0 : index
    %c1_84 = arith.constant 1 : index
    %500 = vector.load %arg1[%c0_81, %c2_82, %c0_83, %c1_84] : memref<1x3x16x16xf32, #tpu.memory_space<vmem>>, vector<1x1x14x14xf32>
    %501 = vector.shape_cast %500 : vector<1x1x14x14xf32> to vector<14x14xf32>
    %c19 = arith.constant 19 : index
    %502 = memref.load %arg2[%c19] : memref<162xf32, #tpu.memory_space<smem>>
    %503 = vector.broadcast %502 : f32 to vector<14x14xf32>
    %504 = arith.mulf %503, %501 : vector<14x14xf32>
    %505 = arith.addf %479, %504 : vector<14x14xf32>
    %c46 = arith.constant 46 : index
    %506 = memref.load %arg2[%c46] : memref<162xf32, #tpu.memory_space<smem>>
    %507 = vector.broadcast %506 : f32 to vector<14x14xf32>
    %508 = arith.mulf %507, %501 : vector<14x14xf32>
    %509 = arith.addf %483, %508 : vector<14x14xf32>
    %c73 = arith.constant 73 : index
    %510 = memref.load %arg2[%c73] : memref<162xf32, #tpu.memory_space<smem>>
    %511 = vector.broadcast %510 : f32 to vector<14x14xf32>
    %512 = arith.mulf %511, %501 : vector<14x14xf32>
    %513 = arith.addf %487, %512 : vector<14x14xf32>
    %c100 = arith.constant 100 : index
    %514 = memref.load %arg2[%c100] : memref<162xf32, #tpu.memory_space<smem>>
    %515 = vector.broadcast %514 : f32 to vector<14x14xf32>
    %516 = arith.mulf %515, %501 : vector<14x14xf32>
    %517 = arith.addf %491, %516 : vector<14x14xf32>
    %c127 = arith.constant 127 : index
    %518 = memref.load %arg2[%c127] : memref<162xf32, #tpu.memory_space<smem>>
    %519 = vector.broadcast %518 : f32 to vector<14x14xf32>
    %520 = arith.mulf %519, %501 : vector<14x14xf32>
    %521 = arith.addf %495, %520 : vector<14x14xf32>
    %c154 = arith.constant 154 : index
    %522 = memref.load %arg2[%c154] : memref<162xf32, #tpu.memory_space<smem>>
    %523 = vector.broadcast %522 : f32 to vector<14x14xf32>
    %524 = arith.mulf %523, %501 : vector<14x14xf32>
    %525 = arith.addf %499, %524 : vector<14x14xf32>
    %c0_85 = arith.constant 0 : index
    %c2_86 = arith.constant 2 : index
    %c0_87 = arith.constant 0 : index
    %c2_88 = arith.constant 2 : index
    %526 = vector.load %arg1[%c0_85, %c2_86, %c0_87, %c2_88] : memref<1x3x16x16xf32, #tpu.memory_space<vmem>>, vector<1x1x14x14xf32>
    %527 = vector.shape_cast %526 : vector<1x1x14x14xf32> to vector<14x14xf32>
    %c20 = arith.constant 20 : index
    %528 = memref.load %arg2[%c20] : memref<162xf32, #tpu.memory_space<smem>>
    %529 = vector.broadcast %528 : f32 to vector<14x14xf32>
    %530 = arith.mulf %529, %527 : vector<14x14xf32>
    %531 = arith.addf %505, %530 : vector<14x14xf32>
    %c47 = arith.constant 47 : index
    %532 = memref.load %arg2[%c47] : memref<162xf32, #tpu.memory_space<smem>>
    %533 = vector.broadcast %532 : f32 to vector<14x14xf32>
    %534 = arith.mulf %533, %527 : vector<14x14xf32>
    %535 = arith.addf %509, %534 : vector<14x14xf32>
    %c74 = arith.constant 74 : index
    %536 = memref.load %arg2[%c74] : memref<162xf32, #tpu.memory_space<smem>>
    %537 = vector.broadcast %536 : f32 to vector<14x14xf32>
    %538 = arith.mulf %537, %527 : vector<14x14xf32>
    %539 = arith.addf %513, %538 : vector<14x14xf32>
    %c101 = arith.constant 101 : index
    %540 = memref.load %arg2[%c101] : memref<162xf32, #tpu.memory_space<smem>>
    %541 = vector.broadcast %540 : f32 to vector<14x14xf32>
    %542 = arith.mulf %541, %527 : vector<14x14xf32>
    %543 = arith.addf %517, %542 : vector<14x14xf32>
    %c128 = arith.constant 128 : index
    %544 = memref.load %arg2[%c128] : memref<162xf32, #tpu.memory_space<smem>>
    %545 = vector.broadcast %544 : f32 to vector<14x14xf32>
    %546 = arith.mulf %545, %527 : vector<14x14xf32>
    %547 = arith.addf %521, %546 : vector<14x14xf32>
    %c155 = arith.constant 155 : index
    %548 = memref.load %arg2[%c155] : memref<162xf32, #tpu.memory_space<smem>>
    %549 = vector.broadcast %548 : f32 to vector<14x14xf32>
    %550 = arith.mulf %549, %527 : vector<14x14xf32>
    %551 = arith.addf %525, %550 : vector<14x14xf32>
    %c0_89 = arith.constant 0 : index
    %c2_90 = arith.constant 2 : index
    %c1_91 = arith.constant 1 : index
    %c0_92 = arith.constant 0 : index
    %552 = vector.load %arg1[%c0_89, %c2_90, %c1_91, %c0_92] : memref<1x3x16x16xf32, #tpu.memory_space<vmem>>, vector<1x1x14x14xf32>
    %553 = vector.shape_cast %552 : vector<1x1x14x14xf32> to vector<14x14xf32>
    %c21 = arith.constant 21 : index
    %554 = memref.load %arg2[%c21] : memref<162xf32, #tpu.memory_space<smem>>
    %555 = vector.broadcast %554 : f32 to vector<14x14xf32>
    %556 = arith.mulf %555, %553 : vector<14x14xf32>
    %557 = arith.addf %531, %556 : vector<14x14xf32>
    %c48 = arith.constant 48 : index
    %558 = memref.load %arg2[%c48] : memref<162xf32, #tpu.memory_space<smem>>
    %559 = vector.broadcast %558 : f32 to vector<14x14xf32>
    %560 = arith.mulf %559, %553 : vector<14x14xf32>
    %561 = arith.addf %535, %560 : vector<14x14xf32>
    %c75 = arith.constant 75 : index
    %562 = memref.load %arg2[%c75] : memref<162xf32, #tpu.memory_space<smem>>
    %563 = vector.broadcast %562 : f32 to vector<14x14xf32>
    %564 = arith.mulf %563, %553 : vector<14x14xf32>
    %565 = arith.addf %539, %564 : vector<14x14xf32>
    %c102 = arith.constant 102 : index
    %566 = memref.load %arg2[%c102] : memref<162xf32, #tpu.memory_space<smem>>
    %567 = vector.broadcast %566 : f32 to vector<14x14xf32>
    %568 = arith.mulf %567, %553 : vector<14x14xf32>
    %569 = arith.addf %543, %568 : vector<14x14xf32>
    %c129 = arith.constant 129 : index
    %570 = memref.load %arg2[%c129] : memref<162xf32, #tpu.memory_space<smem>>
    %571 = vector.broadcast %570 : f32 to vector<14x14xf32>
    %572 = arith.mulf %571, %553 : vector<14x14xf32>
    %573 = arith.addf %547, %572 : vector<14x14xf32>
    %c156 = arith.constant 156 : index
    %574 = memref.load %arg2[%c156] : memref<162xf32, #tpu.memory_space<smem>>
    %575 = vector.broadcast %574 : f32 to vector<14x14xf32>
    %576 = arith.mulf %575, %553 : vector<14x14xf32>
    %577 = arith.addf %551, %576 : vector<14x14xf32>
    %c0_93 = arith.constant 0 : index
    %c2_94 = arith.constant 2 : index
    %c1_95 = arith.constant 1 : index
    %c1_96 = arith.constant 1 : index
    %578 = vector.load %arg1[%c0_93, %c2_94, %c1_95, %c1_96] : memref<1x3x16x16xf32, #tpu.memory_space<vmem>>, vector<1x1x14x14xf32>
    %579 = vector.shape_cast %578 : vector<1x1x14x14xf32> to vector<14x14xf32>
    %c22 = arith.constant 22 : index
    %580 = memref.load %arg2[%c22] : memref<162xf32, #tpu.memory_space<smem>>
    %581 = vector.broadcast %580 : f32 to vector<14x14xf32>
    %582 = arith.mulf %581, %579 : vector<14x14xf32>
    %583 = arith.addf %557, %582 : vector<14x14xf32>
    %c49 = arith.constant 49 : index
    %584 = memref.load %arg2[%c49] : memref<162xf32, #tpu.memory_space<smem>>
    %585 = vector.broadcast %584 : f32 to vector<14x14xf32>
    %586 = arith.mulf %585, %579 : vector<14x14xf32>
    %587 = arith.addf %561, %586 : vector<14x14xf32>
    %c76 = arith.constant 76 : index
    %588 = memref.load %arg2[%c76] : memref<162xf32, #tpu.memory_space<smem>>
    %589 = vector.broadcast %588 : f32 to vector<14x14xf32>
    %590 = arith.mulf %589, %579 : vector<14x14xf32>
    %591 = arith.addf %565, %590 : vector<14x14xf32>
    %c103 = arith.constant 103 : index
    %592 = memref.load %arg2[%c103] : memref<162xf32, #tpu.memory_space<smem>>
    %593 = vector.broadcast %592 : f32 to vector<14x14xf32>
    %594 = arith.mulf %593, %579 : vector<14x14xf32>
    %595 = arith.addf %569, %594 : vector<14x14xf32>
    %c130 = arith.constant 130 : index
    %596 = memref.load %arg2[%c130] : memref<162xf32, #tpu.memory_space<smem>>
    %597 = vector.broadcast %596 : f32 to vector<14x14xf32>
    %598 = arith.mulf %597, %579 : vector<14x14xf32>
    %599 = arith.addf %573, %598 : vector<14x14xf32>
    %c157 = arith.constant 157 : index
    %600 = memref.load %arg2[%c157] : memref<162xf32, #tpu.memory_space<smem>>
    %601 = vector.broadcast %600 : f32 to vector<14x14xf32>
    %602 = arith.mulf %601, %579 : vector<14x14xf32>
    %603 = arith.addf %577, %602 : vector<14x14xf32>
    %c0_97 = arith.constant 0 : index
    %c2_98 = arith.constant 2 : index
    %c1_99 = arith.constant 1 : index
    %c2_100 = arith.constant 2 : index
    %604 = vector.load %arg1[%c0_97, %c2_98, %c1_99, %c2_100] : memref<1x3x16x16xf32, #tpu.memory_space<vmem>>, vector<1x1x14x14xf32>
    %605 = vector.shape_cast %604 : vector<1x1x14x14xf32> to vector<14x14xf32>
    %c23 = arith.constant 23 : index
    %606 = memref.load %arg2[%c23] : memref<162xf32, #tpu.memory_space<smem>>
    %607 = vector.broadcast %606 : f32 to vector<14x14xf32>
    %608 = arith.mulf %607, %605 : vector<14x14xf32>
    %609 = arith.addf %583, %608 : vector<14x14xf32>
    %c50 = arith.constant 50 : index
    %610 = memref.load %arg2[%c50] : memref<162xf32, #tpu.memory_space<smem>>
    %611 = vector.broadcast %610 : f32 to vector<14x14xf32>
    %612 = arith.mulf %611, %605 : vector<14x14xf32>
    %613 = arith.addf %587, %612 : vector<14x14xf32>
    %c77 = arith.constant 77 : index
    %614 = memref.load %arg2[%c77] : memref<162xf32, #tpu.memory_space<smem>>
    %615 = vector.broadcast %614 : f32 to vector<14x14xf32>
    %616 = arith.mulf %615, %605 : vector<14x14xf32>
    %617 = arith.addf %591, %616 : vector<14x14xf32>
    %c104 = arith.constant 104 : index
    %618 = memref.load %arg2[%c104] : memref<162xf32, #tpu.memory_space<smem>>
    %619 = vector.broadcast %618 : f32 to vector<14x14xf32>
    %620 = arith.mulf %619, %605 : vector<14x14xf32>
    %621 = arith.addf %595, %620 : vector<14x14xf32>
    %c131 = arith.constant 131 : index
    %622 = memref.load %arg2[%c131] : memref<162xf32, #tpu.memory_space<smem>>
    %623 = vector.broadcast %622 : f32 to vector<14x14xf32>
    %624 = arith.mulf %623, %605 : vector<14x14xf32>
    %625 = arith.addf %599, %624 : vector<14x14xf32>
    %c158 = arith.constant 158 : index
    %626 = memref.load %arg2[%c158] : memref<162xf32, #tpu.memory_space<smem>>
    %627 = vector.broadcast %626 : f32 to vector<14x14xf32>
    %628 = arith.mulf %627, %605 : vector<14x14xf32>
    %629 = arith.addf %603, %628 : vector<14x14xf32>
    %c0_101 = arith.constant 0 : index
    %c2_102 = arith.constant 2 : index
    %c2_103 = arith.constant 2 : index
    %c0_104 = arith.constant 0 : index
    %630 = vector.load %arg1[%c0_101, %c2_102, %c2_103, %c0_104] : memref<1x3x16x16xf32, #tpu.memory_space<vmem>>, vector<1x1x14x14xf32>
    %631 = vector.shape_cast %630 : vector<1x1x14x14xf32> to vector<14x14xf32>
    %c24 = arith.constant 24 : index
    %632 = memref.load %arg2[%c24] : memref<162xf32, #tpu.memory_space<smem>>
    %633 = vector.broadcast %632 : f32 to vector<14x14xf32>
    %634 = arith.mulf %633, %631 : vector<14x14xf32>
    %635 = arith.addf %609, %634 : vector<14x14xf32>
    %c51 = arith.constant 51 : index
    %636 = memref.load %arg2[%c51] : memref<162xf32, #tpu.memory_space<smem>>
    %637 = vector.broadcast %636 : f32 to vector<14x14xf32>
    %638 = arith.mulf %637, %631 : vector<14x14xf32>
    %639 = arith.addf %613, %638 : vector<14x14xf32>
    %c78 = arith.constant 78 : index
    %640 = memref.load %arg2[%c78] : memref<162xf32, #tpu.memory_space<smem>>
    %641 = vector.broadcast %640 : f32 to vector<14x14xf32>
    %642 = arith.mulf %641, %631 : vector<14x14xf32>
    %643 = arith.addf %617, %642 : vector<14x14xf32>
    %c105 = arith.constant 105 : index
    %644 = memref.load %arg2[%c105] : memref<162xf32, #tpu.memory_space<smem>>
    %645 = vector.broadcast %644 : f32 to vector<14x14xf32>
    %646 = arith.mulf %645, %631 : vector<14x14xf32>
    %647 = arith.addf %621, %646 : vector<14x14xf32>
    %c132 = arith.constant 132 : index
    %648 = memref.load %arg2[%c132] : memref<162xf32, #tpu.memory_space<smem>>
    %649 = vector.broadcast %648 : f32 to vector<14x14xf32>
    %650 = arith.mulf %649, %631 : vector<14x14xf32>
    %651 = arith.addf %625, %650 : vector<14x14xf32>
    %c159 = arith.constant 159 : index
    %652 = memref.load %arg2[%c159] : memref<162xf32, #tpu.memory_space<smem>>
    %653 = vector.broadcast %652 : f32 to vector<14x14xf32>
    %654 = arith.mulf %653, %631 : vector<14x14xf32>
    %655 = arith.addf %629, %654 : vector<14x14xf32>
    %c0_105 = arith.constant 0 : index
    %c2_106 = arith.constant 2 : index
    %c2_107 = arith.constant 2 : index
    %c1_108 = arith.constant 1 : index
    %656 = vector.load %arg1[%c0_105, %c2_106, %c2_107, %c1_108] : memref<1x3x16x16xf32, #tpu.memory_space<vmem>>, vector<1x1x14x14xf32>
    %657 = vector.shape_cast %656 : vector<1x1x14x14xf32> to vector<14x14xf32>
    %c25 = arith.constant 25 : index
    %658 = memref.load %arg2[%c25] : memref<162xf32, #tpu.memory_space<smem>>
    %659 = vector.broadcast %658 : f32 to vector<14x14xf32>
    %660 = arith.mulf %659, %657 : vector<14x14xf32>
    %661 = arith.addf %635, %660 : vector<14x14xf32>
    %c52 = arith.constant 52 : index
    %662 = memref.load %arg2[%c52] : memref<162xf32, #tpu.memory_space<smem>>
    %663 = vector.broadcast %662 : f32 to vector<14x14xf32>
    %664 = arith.mulf %663, %657 : vector<14x14xf32>
    %665 = arith.addf %639, %664 : vector<14x14xf32>
    %c79 = arith.constant 79 : index
    %666 = memref.load %arg2[%c79] : memref<162xf32, #tpu.memory_space<smem>>
    %667 = vector.broadcast %666 : f32 to vector<14x14xf32>
    %668 = arith.mulf %667, %657 : vector<14x14xf32>
    %669 = arith.addf %643, %668 : vector<14x14xf32>
    %c106 = arith.constant 106 : index
    %670 = memref.load %arg2[%c106] : memref<162xf32, #tpu.memory_space<smem>>
    %671 = vector.broadcast %670 : f32 to vector<14x14xf32>
    %672 = arith.mulf %671, %657 : vector<14x14xf32>
    %673 = arith.addf %647, %672 : vector<14x14xf32>
    %c133 = arith.constant 133 : index
    %674 = memref.load %arg2[%c133] : memref<162xf32, #tpu.memory_space<smem>>
    %675 = vector.broadcast %674 : f32 to vector<14x14xf32>
    %676 = arith.mulf %675, %657 : vector<14x14xf32>
    %677 = arith.addf %651, %676 : vector<14x14xf32>
    %c160 = arith.constant 160 : index
    %678 = memref.load %arg2[%c160] : memref<162xf32, #tpu.memory_space<smem>>
    %679 = vector.broadcast %678 : f32 to vector<14x14xf32>
    %680 = arith.mulf %679, %657 : vector<14x14xf32>
    %681 = arith.addf %655, %680 : vector<14x14xf32>
    %c0_109 = arith.constant 0 : index
    %c2_110 = arith.constant 2 : index
    %c2_111 = arith.constant 2 : index
    %c2_112 = arith.constant 2 : index
    %682 = vector.load %arg1[%c0_109, %c2_110, %c2_111, %c2_112] : memref<1x3x16x16xf32, #tpu.memory_space<vmem>>, vector<1x1x14x14xf32>
    %683 = vector.shape_cast %682 : vector<1x1x14x14xf32> to vector<14x14xf32>
    %c26 = arith.constant 26 : index
    %684 = memref.load %arg2[%c26] : memref<162xf32, #tpu.memory_space<smem>>
    %685 = vector.broadcast %684 : f32 to vector<14x14xf32>
    %686 = arith.mulf %685, %683 : vector<14x14xf32>
    %687 = arith.addf %661, %686 : vector<14x14xf32>
    %c53 = arith.constant 53 : index
    %688 = memref.load %arg2[%c53] : memref<162xf32, #tpu.memory_space<smem>>
    %689 = vector.broadcast %688 : f32 to vector<14x14xf32>
    %690 = arith.mulf %689, %683 : vector<14x14xf32>
    %691 = arith.addf %665, %690 : vector<14x14xf32>
    %c80 = arith.constant 80 : index
    %692 = memref.load %arg2[%c80] : memref<162xf32, #tpu.memory_space<smem>>
    %693 = vector.broadcast %692 : f32 to vector<14x14xf32>
    %694 = arith.mulf %693, %683 : vector<14x14xf32>
    %695 = arith.addf %669, %694 : vector<14x14xf32>
    %c107 = arith.constant 107 : index
    %696 = memref.load %arg2[%c107] : memref<162xf32, #tpu.memory_space<smem>>
    %697 = vector.broadcast %696 : f32 to vector<14x14xf32>
    %698 = arith.mulf %697, %683 : vector<14x14xf32>
    %699 = arith.addf %673, %698 : vector<14x14xf32>
    %c134 = arith.constant 134 : index
    %700 = memref.load %arg2[%c134] : memref<162xf32, #tpu.memory_space<smem>>
    %701 = vector.broadcast %700 : f32 to vector<14x14xf32>
    %702 = arith.mulf %701, %683 : vector<14x14xf32>
    %703 = arith.addf %677, %702 : vector<14x14xf32>
    %c161 = arith.constant 161 : index
    %704 = memref.load %arg2[%c161] : memref<162xf32, #tpu.memory_space<smem>>
    %705 = vector.broadcast %704 : f32 to vector<14x14xf32>
    %706 = arith.mulf %705, %683 : vector<14x14xf32>
    %707 = arith.addf %681, %706 : vector<14x14xf32>
    %c0_113 = arith.constant 0 : index
    %708 = memref.load %arg3[%c0_113] : memref<6xf32, #tpu.memory_space<smem>>
    %709 = vector.broadcast %708 : f32 to vector<14x14xf32>
    %710 = arith.addf %687, %709 : vector<14x14xf32>
    %c0_114 = arith.constant 0 : index
    %c0_115 = arith.constant 0 : index
    %c0_116 = arith.constant 0 : index
    %c0_117 = arith.constant 0 : index
    %711 = vector.load %arg4[%c0_114, %c0_115, %c0_116, %c0_117] : memref<1x6x14x14xf32, #tpu.memory_space<vmem>>, vector<1x1x14x14xf32>
    %712 = vector.shape_cast %711 : vector<1x1x14x14xf32> to vector<14x14xf32>
    %713 = vector.shape_cast %710 : vector<14x14xf32> to vector<1x1x14x14xf32>
    tpu.vector_store %arg4[%c0_114, %c0_115, %c0_116, %c0_117], %713 {strides = array<i32>} : memref<1x6x14x14xf32, #tpu.memory_space<vmem>>, vector<1x1x14x14xf32>,
    %c1_118 = arith.constant 1 : index
    %714 = memref.load %arg3[%c1_118] : memref<6xf32, #tpu.memory_space<smem>>
    %715 = vector.broadcast %714 : f32 to vector<14x14xf32>
    %716 = arith.addf %691, %715 : vector<14x14xf32>
    %c0_119 = arith.constant 0 : index
    %c1_120 = arith.constant 1 : index
    %c0_121 = arith.constant 0 : index
    %c0_122 = arith.constant 0 : index
    %717 = vector.load %arg4[%c0_119, %c1_120, %c0_121, %c0_122] : memref<1x6x14x14xf32, #tpu.memory_space<vmem>>, vector<1x1x14x14xf32>
    %718 = vector.shape_cast %717 : vector<1x1x14x14xf32> to vector<14x14xf32>
    %719 = vector.shape_cast %716 : vector<14x14xf32> to vector<1x1x14x14xf32>
    tpu.vector_store %arg4[%c0_119, %c1_120, %c0_121, %c0_122], %719 {strides = array<i32>} : memref<1x6x14x14xf32, #tpu.memory_space<vmem>>, vector<1x1x14x14xf32>,
    %c2_123 = arith.constant 2 : index
    %720 = memref.load %arg3[%c2_123] : memref<6xf32, #tpu.memory_space<smem>>
    %721 = vector.broadcast %720 : f32 to vector<14x14xf32>
    %722 = arith.addf %695, %721 : vector<14x14xf32>
    %c0_124 = arith.constant 0 : index
    %c2_125 = arith.constant 2 : index
    %c0_126 = arith.constant 0 : index
    %c0_127 = arith.constant 0 : index
    %723 = vector.load %arg4[%c0_124, %c2_125, %c0_126, %c0_127] : memref<1x6x14x14xf32, #tpu.memory_space<vmem>>, vector<1x1x14x14xf32>
    %724 = vector.shape_cast %723 : vector<1x1x14x14xf32> to vector<14x14xf32>
    %725 = vector.shape_cast %722 : vector<14x14xf32> to vector<1x1x14x14xf32>
    tpu.vector_store %arg4[%c0_124, %c2_125, %c0_126, %c0_127], %725 {strides = array<i32>} : memref<1x6x14x14xf32, #tpu.memory_space<vmem>>, vector<1x1x14x14xf32>,
    %c3_128 = arith.constant 3 : index
    %726 = memref.load %arg3[%c3_128] : memref<6xf32, #tpu.memory_space<smem>>
    %727 = vector.broadcast %726 : f32 to vector<14x14xf32>
    %728 = arith.addf %699, %727 : vector<14x14xf32>
    %c0_129 = arith.constant 0 : index
    %c3_130 = arith.constant 3 : index
    %c0_131 = arith.constant 0 : index
    %c0_132 = arith.constant 0 : index
    %729 = vector.load %arg4[%c0_129, %c3_130, %c0_131, %c0_132] : memref<1x6x14x14xf32, #tpu.memory_space<vmem>>, vector<1x1x14x14xf32>
    %730 = vector.shape_cast %729 : vector<1x1x14x14xf32> to vector<14x14xf32>
    %731 = vector.shape_cast %728 : vector<14x14xf32> to vector<1x1x14x14xf32>
    tpu.vector_store %arg4[%c0_129, %c3_130, %c0_131, %c0_132], %731 {strides = array<i32>} : memref<1x6x14x14xf32, #tpu.memory_space<vmem>>, vector<1x1x14x14xf32>,
    %c4_133 = arith.constant 4 : index
    %732 = memref.load %arg3[%c4_133] : memref<6xf32, #tpu.memory_space<smem>>
    %733 = vector.broadcast %732 : f32 to vector<14x14xf32>
    %734 = arith.addf %703, %733 : vector<14x14xf32>
    %c0_134 = arith.constant 0 : index
    %c4_135 = arith.constant 4 : index
    %c0_136 = arith.constant 0 : index
    %c0_137 = arith.constant 0 : index
    %735 = vector.load %arg4[%c0_134, %c4_135, %c0_136, %c0_137] : memref<1x6x14x14xf32, #tpu.memory_space<vmem>>, vector<1x1x14x14xf32>
    %736 = vector.shape_cast %735 : vector<1x1x14x14xf32> to vector<14x14xf32>
    %737 = vector.shape_cast %734 : vector<14x14xf32> to vector<1x1x14x14xf32>
    tpu.vector_store %arg4[%c0_134, %c4_135, %c0_136, %c0_137], %737 {strides = array<i32>} : memref<1x6x14x14xf32, #tpu.memory_space<vmem>>, vector<1x1x14x14xf32>,
    %c5_138 = arith.constant 5 : index
    %738 = memref.load %arg3[%c5_138] : memref<6xf32, #tpu.memory_space<smem>>
    %739 = vector.broadcast %738 : f32 to vector<14x14xf32>
    %740 = arith.addf %707, %739 : vector<14x14xf32>
    %c0_139 = arith.constant 0 : index
    %c5_140 = arith.constant 5 : index
    %c0_141 = arith.constant 0 : index
    %c0_142 = arith.constant 0 : index
    %741 = vector.load %arg4[%c0_139, %c5_140, %c0_141, %c0_142] : memref<1x6x14x14xf32, #tpu.memory_space<vmem>>, vector<1x1x14x14xf32>
    %742 = vector.shape_cast %741 : vector<1x1x14x14xf32> to vector<14x14xf32>
    %743 = vector.shape_cast %740 : vector<14x14xf32> to vector<1x1x14x14xf32>
    tpu.vector_store %arg4[%c0_139, %c5_140, %c0_141, %c0_142], %743 {strides = array<i32>} : memref<1x6x14x14xf32, #tpu.memory_space<vmem>>, vector<1x1x14x14xf32>,
    return
  }
  func.func @transform_0(%arg0: i32) -> (i32, i32, i32, i32) {
    %c0_i32 = arith.constant 0 : i32
    %c0_i32_0 = arith.constant 0 : i32
    %c0_i32_1 = arith.constant 0 : i32
    %c0_i32_2 = arith.constant 0 : i32
    return %arg0, %c0_i32, %c0_i32_0, %c0_i32_1 : i32, i32, i32, i32
  }
  func.func @transform_1(%arg0: i32) -> i32 {
    %c0_i32 = arith.constant 0 : i32
    %c0_i32_0 = arith.constant 0 : i32
    return %c0_i32 : i32
  }
  func.func @transform_2(%arg0: i32) -> i32 {
    %c0_i32 = arith.constant 0 : i32
    %c0_i32_0 = arith.constant 0 : i32
    return %c0_i32 : i32
  }
  func.func @transform_3(%arg0: i32) -> (i32, i32, i32, i32) {
    %c0_i32 = arith.constant 0 : i32
    %c0_i32_0 = arith.constant 0 : i32
    %c0_i32_1 = arith.constant 0 : i32
    %c0_i32_2 = arith.constant 0 : i32
    return %arg0, %c0_i32, %c0_i32_0, %c0_i32_1 : i32, i32, i32, i32
  }
}

</mosaic_0001>

<bundles_post_ra>
// kernel: conv2d_pallas.1
= control target key start
LH: loop header
LB: loop body
LE: loop exit
PB: predicated region body
PF: predicated region fallthrough
CT: control target
= control target key end

     0   :  { %8 = vsyncpa [#allocation3], 0  ;;  %s4188_s0 = inlined_call_operand.vmem [shape: f32[2,3,16,16], index: 0, kind: input, shape index: {}]   ;;  %s4189_s1 = inlined_call_operand.vmem [shape: f32[162], index: 1, kind: input, shape index: {}]   ;;  %s4190_s2 = inlined_call_operand.vmem [shape: f32[6], index: 2, kind: input, shape index: {}]   ;;  %s4191_s3 = inlined_call_operand.vmem [shape: f32[2,6,14,14], index: 3, kind: output, shape index: {}]  }
   0x1   :  { %9 = vsyncpa [#allocation5], 0  ;;  %s2480_s12 = smov 0  }
   0x2 LB: > { %s2174_s13 = sadd.s32 4294967295, %s2454_s12   ;;  %p2176_p0 = scmp.ge.s32.totalorder %s2454_s12, 1  ;;  %s2454_s12 = sphi %s2480_s12, %s15_s12  }
   0x3   : > { %p114_p1 = scmp.lt.s32.totalorder %s2454_s12, 3  ;;  %s126_s16 = sshll.u32 %s4189_s1, 4  ;;  %s127_s16 = int_to_ptr.vmem [resolvable:$true] %s126_s16 }
   0x4   : > { %p2392_p3 = scmp.eq.s32.totalorder %s2174_s13, 0  ;;  %s136_s19 = sshll.u32 %s4190_s2, 4  ;;  %s137_s19 = int_to_ptr.vmem [resolvable:$true] %s136_s19 }
   0x5   : > { %p115_p2 = pnand %p2176_p0, %p114_p1  ;;  %s2456_s20 = smov [#allocation2]  }
   0x6   : > { %s2457_s21 = smov [#allocation4]  }
   0x7   : > { %p2385_p4 = pneg %p115_p2 }
   0x8   : > { %157 = sbr.rel (%p115_p2) target bundleno = 717 (0x2cd), region = 32 }
   0x9   : > { %p2386_p5 = pnand %p2392_p3, %p2385_p4 }
   0xb   : > { %2388 = dma.vmem_to_smem (!%p2386_p5), %s127_s16, 32, %s2456_s20, [#allocation3]  }
   0xc   : > { %2391 = dma.vmem_to_smem (!%p2386_p5), %s137_s19, 16, %s2457_s21, [#allocation5]  }
   0xd   : > { %2445 = dma.done.wait (%p2392_p3), [#allocation3], 32  }
   0xe   : > { %2447 = vsyncadd (%p2392_p3), [#allocation3], 4294967264 }
   0xf   : > { %2449 = dma.done.wait (%p2392_p3), [#allocation5], 16  }
  0x10   : > { %2451 = vsyncadd (%p2392_p3), [#allocation5], 4294967280 }
  0x11   : > { %169 = sfence }
  0x12   : > { %p188_p6 = scmp.lt.s32.totalorder %s2174_s13, 1  ;;  %s2192_s22 = sld [smem:[#allocation2 + $0x37]]  ;;  %vm2058_vm0 = vcmask 113664   ;;  %vm2060_vm1 = vcmask 111616  }
  0x13   : > { %s2191_s23 = sld [smem:[#allocation2 + $0x1c]]  ;;  %s2458_s29 = smov 127  }
  0x14   : > { %s4281_s13 = smov (!%p188_p6, %s2174_s13), 1  ;;  %s2190_s25 = sld [smem:[#allocation2 + $0x1]] }
  0x15   : > { %s2375_s24 = smul.u32 48, %s4281_s13  ;;  %s2194_s30 = sld [smem:[#allocation2 + $0x6d]] }
  0x16   : > { %s2193_s4 = sld [smem:[#allocation2 + $0x52]]  ;;  %s2459_s9 = smov 126  }
  0x17   : > { %s2505_s28 = scalar_lea.vmem %s4188_s0, %s2375_s24  ;;  %s2195_s5 = sld [smem:[#allocation2 + $0x88]] }
  0x18   : > { %v2508_v0 = vld [vmem:[%s2505_s28] sm:$0xff]  ;;  %v265_v1 = vstv %s2192_s22  ;;  %v2514_v6 = vld [vmem:[%s2505_s28 + $0x8] sm:$0x3f]  ;;  %s2197_s6 = sld [smem:[#allocation2 + $0x1d]] }
  0x19   : > { %v266_v2 = vmul.f32 %v265_v1, %v2508_v0  ;;  %v251_v3 = vstv %s2191_s23  ;;  %v267_v8 = vmul.f32 %v265_v1, %v2514_v6  ;;  %s2196_s7 = sld [smem:[#allocation2 + $0x2]]  ;;  %v2560_v38 = vld [vmem:[%s2505_s28 + $0x1] sm:$0xff]  ;;  %v2565_v40 = vld [vmem:[%s2505_s28 + $0x9] sm:$0x3f] }
  0x1a   : > { %v252_v4 = vmul.f32 %v251_v3, %v2508_v0  ;;  %v237_v5 = vstv %s2190_s25  ;;  %v253_v9 = vmul.f32 %v251_v3, %v2514_v6  ;;  %s2198_s8 = sld [smem:[#allocation2 + $0x38]] }
  0x1b   : > { %270 = vrot.lane.b32.xlu2 %v266_v2, %s2458_s29  ;;  %v238_v7 = vmul.f32 %v237_v5, %v2508_v0  ;;  %v239_v10 = vmul.f32 %v237_v5, %v2514_v6  ;;  %v293_v11 = vstv %s2194_s30  ;;  %s2200_s10 = sld [smem:[#allocation2 + $0x6e]] }
  0x1c   : > { %256 = vrot.lane.b32.xlu1 %v252_v4, %s2458_s29  ;;  %v279_v12 = vstv %s2193_s4  ;;  %v294_v13 = vmul.f32 %v293_v11, %v2508_v0  ;;  %v295_v19 = vmul.f32 %v293_v11, %v2514_v6  ;;  %s2199_s11 = sld [smem:[#allocation2 + $0x53]] }
  0x1d   : > { %242 = vrot.lane.b32.xlu0 %v238_v7, %s2458_s29  ;;  %v281_v14 = vmul.f32 %v279_v12, %v2514_v6  ;;  %v280_v15 = vmul.f32 %v279_v12, %v2508_v0  ;;  %v307_v16 = vstv %s2195_s5  ;;  %s2201_s14 = sld [smem:[#allocation2 + $0x89]] }
  0x1e   : > { %v309_v17 = vmul.f32 %v307_v16, %v2514_v6  ;;  %v308_v18 = vmul.f32 %v307_v16, %v2508_v0  ;;  %v335_v20 = vstv %s2197_s6  ;;  %s2209_s15 = sld [smem:[#allocation2 + $0x1f]] }
  0x1f   : > { %v321_v21 = vstv %s2196_s7  ;;  %v336_v22 = vmul.f32 %v335_v20, %v2508_v0  ;;  %v337_v28 = vmul.f32 %v335_v20, %v2514_v6  ;;  %s2208_s16 = sld [smem:[#allocation2 + $0x4]]  ;;  %v2628_v20 = vld [vmem:[%s2505_s28 + $0x2] sm:$0xff] }
  0x20   : > { %v323_v23 = vmul.f32 %v321_v21, %v2514_v6  ;;  %v322_v24 = vmul.f32 %v321_v21, %v2508_v0  ;;  %v349_v25 = vstv %s2198_s8  ;;  %s2210_s17 = sld [smem:[#allocation2 + $0x3a]] }
  0x21   : > { %v351_v26 = vmul.f32 %v349_v25, %v2514_v6  ;;  %v350_v27 = vmul.f32 %v349_v25, %v2508_v0  ;;  %v377_v29 = vstv %s2200_s10  ;;  %s2212_s18 = sld [smem:[#allocation2 + $0x70]] }
  0x22   : > { %v363_v30 = vstv %s2199_s11  ;;  %v378_v31 = vmul.f32 %v377_v29, %v2508_v0  ;;  %v379_v37 = vmul.f32 %v377_v29, %v2514_v6  ;;  %s2211_s19 = sld [smem:[#allocation2 + $0x55]] }
  0x23   : > { %272 = vrot.lane.b32.xlu2 %v267_v8, %s2458_s29  ;;  %v365_v32 = vmul.f32 %v363_v30, %v2514_v6  ;;  %v364_v33 = vmul.f32 %v363_v30, %v2508_v0  ;;  %v391_v34 = vstv %s2201_s14  ;;  %s2213_s20 = sld [smem:[#allocation2 + $0x8b]] }
  0x24   : > { %258 = vrot.lane.b32.xlu1 %v253_v9, %s2458_s29  ;;  %v393_v35 = vmul.f32 %v391_v34, %v2514_v6  ;;  %v392_v36 = vmul.f32 %v391_v34, %v2508_v0  ;;  %v457_v39 = vstv %s2209_s15  ;;  %s2215_s21 = sld [smem:[#allocation2 + $0x20]] }
  0x25   : > { %244 = vrot.lane.b32.xlu0 %v239_v10, %s2458_s29  ;;  %v443_v41 = vstv %s2208_s16  ;;  %v458_v42 = vmul.f32 %v457_v39, %v2560_v38  ;;  %v459_v48 = vmul.f32 %v457_v39, %v2565_v40  ;;  %s2214_s22 = sld [smem:[#allocation2 + $0x5]] }
  0x26   : > { %v445_v43 = vmul.f32 %v443_v41, %v2565_v40  ;;  %v444_v44 = vmul.f32 %v443_v41, %v2560_v38  ;;  %v471_v45 = vstv %s2210_s17  ;;  %s2216_s23 = sld [smem:[#allocation2 + $0x3b]] }
  0x27   : > { %v473_v46 = vmul.f32 %v471_v45, %v2565_v40  ;;  %v472_v47 = vmul.f32 %v471_v45, %v2560_v38  ;;  %v499_v49 = vstv %s2212_s18  ;;  %s2218_s24 = sld [smem:[#allocation2 + $0x71]] }
  0x28   : > { %v485_v50 = vstv %s2211_s19  ;;  %v500_v51 = vmul.f32 %v499_v49, %v2560_v38  ;;  %v501_v57 = vmul.f32 %v499_v49, %v2565_v40  ;;  %s2217_s25 = sld [smem:[#allocation2 + $0x56]] }
  0x29   : > { %v487_v52 = vmul.f32 %v485_v50, %v2565_v40  ;;  %v486_v53 = vmul.f32 %v485_v50, %v2560_v38  ;;  %v513_v54 = vstv %s2213_s20  ;;  %s2219_s26 = sld [smem:[#allocation2 + $0x8c]] }
  0x2a   : > { %v515_v55 = vmul.f32 %v513_v54, %v2565_v40  ;;  %v514_v56 = vmul.f32 %v513_v54, %v2560_v38  ;;  %v541_v58 = vstv %s2215_s21  ;;  %s2613_s27 = sld [smem:[#allocation2 + $0x22]] }
  0x2b   : > { %298 = vrot.lane.b32.xlu2 %v294_v13, %s2458_s29  ;;  %v527_v60 = vstv %s2214_s22  ;;  %v542_v61 = vmul.f32 %v541_v58, %v2560_v38  ;;  %v543_v5 = vmul.f32 %v541_v58, %v2565_v40  ;;  %s2226_s30 = sld [smem:[#allocation2 + $0x7]] }
  0x2c   : > { %286 = vrot.lane.b32.xlu1 %v281_v14, %s2458_s29  ;;  %v529_v62 = vmul.f32 %v527_v60, %v2565_v40  ;;  %v528_v63 = vmul.f32 %v527_v60, %v2560_v38  ;;  %v555_v1 = vstv %s2216_s23  ;;  %s2228_s4 = sld [smem:[#allocation2 + $0x3d]] }
  0x2d   : > { %284 = vrot.lane.b32.xlu0 %v280_v15, %s2458_s29  ;;  %v557_v3 = vmul.f32 %v555_v1, %v2565_v40  ;;  %v556_v4 = vmul.f32 %v555_v1, %v2560_v38  ;;  %v583_v7 = vstv %s2218_s24  ;;  %s2646_s5 = sld [smem:[#allocation2 + $0x73]] }
  0x2e   : > { %v569_v9 = vstv %s2217_s25  ;;  %v584_v10 = vmul.f32 %v583_v7, %v2560_v38  ;;  %s2229_s6 = sld [smem:[#allocation2 + $0x58]] }
  0x2f   : > { %v571_v11 = vmul.f32 %v569_v9, %v2565_v40  ;;  %v570_v12 = vmul.f32 %v569_v9, %v2560_v38  ;;  %v597_v13 = vstv %s2219_s26  ;;  %s2231_s7 = sld [smem:[#allocation2 + $0x8e]] }
  0x30   : > { %v599_v16 = vmul.f32 %v597_v13, %v2565_v40  ;;  %v663_v21 = vstv %s2613_s27  ;;  %s2673_s8 = sld [smem:[#allocation2 + $0x23]] }
  0x31   : > { %s2232_s10 = sld [smem:[#allocation2 + $0x8]] }
  0x32   : > { %v677_v30 = vstv %s2228_s4  ;;  %s2234_s11 = sld [smem:[#allocation2 + $0x3e]] }
  0x33   : > { %314 = vrot.lane.b32.xlu2 %v309_v17, %s2458_s29  ;;  %s2700_s14 = sld [smem:[#allocation2 + $0x74]] }
  0x34   : > { %312 = vrot.lane.b32.xlu1 %v308_v18, %s2458_s29  ;;  %v598_v18 = vmul.f32 %v597_v13, %v2560_v38  ;;  %v691_v41 = vstv %s2229_s6  ;;  %s2235_s15 = sld [smem:[#allocation2 + $0x59]] }
  0x35   : > { %300 = vrot.lane.b32.xlu0 %v295_v19, %s2458_s29  ;;  %v585_v19 = vmul.f32 %v583_v7, %v2565_v40  ;;  %s2237_s16 = sld [smem:[#allocation2 + $0x8f]] }
  0x36   : > { %v747_v54 = vstv %s2673_s8  ;;  %s2727_s17 = sld [smem:[#allocation2 + $0x25]] }
  0x37   : > { %v748_v58 = vmul.f32 %v747_v54, %v2628_v20  ;;  %s2246_s18 = sld [smem:[#allocation2 + $0xa]] }
  0x38   : > { %s2248_s19 = sld [smem:[#allocation2 + $0x40]] }
  0x39   : > { %s2760_s20 = sld [smem:[#allocation2 + $0x76]] }
  0x3a   : > { %s2249_s21 = sld [smem:[#allocation2 + $0x5b]] }
  0x3b   : > { %340 = vrot.lane.b32.xlu2 %v336_v22, %s2459_s9  ;;  %s2251_s22 = sld [smem:[#allocation2 + $0x91]] }
  0x3c   : > { %328 = vrot.lane.b32.xlu1 %v323_v23, %s2459_s9  ;;  %v2636_v23 = vld [vmem:[%s2505_s28 + $0xa] sm:$0x3f]  ;;  %s2787_s23 = sld [smem:[#allocation2 + $0x26]] }
  0x3d   : > { %326 = vrot.lane.b32.xlu0 %v322_v24, %s2459_s9  ;;  %v649_v24 = vstv %s2226_s30  ;;  %v693_v45 = vmul.f32 %v691_v41, %v2636_v23  ;;  %v749_v9 = vmul.f32 %v747_v54, %v2636_v23  ;;  %s2252_s24 = sld [smem:[#allocation2 + $0xb]] }
  0x3e   : > { %v650_v29 = vmul.f32 %v649_v24, %v2628_v20  ;;  %v884_v54 = vstv %s2248_s19  ;;  %s2254_s25 = sld [smem:[#allocation2 + $0x41]] }
  0x3f   : > { %s2814_s26 = sld [smem:[#allocation2 + $0x77]] }
  0x40   : > { %s2255_s27 = sld [smem:[#allocation2 + $0x5c]] }
  0x41   : > { %s2257_s30 = sld [smem:[#allocation2 + $0x92]] }
  0x42   : > { %s2841_s4 = sld [smem:[#allocation2 + $0x28]] }
  0x43   : > { %356 = vrot.lane.b32.xlu2 %v351_v26, %s2459_s9  ;;  %v664_v26 = vmul.f32 %v663_v21, %v2628_v20  ;;  %s2268_s6 = sld [smem:[#allocation2 + $0x43]] }
  0x44   : > { %354 = vrot.lane.b32.xlu1 %v350_v27, %s2459_s9  ;;  %s2269_s8 = sld [smem:[#allocation2 + $0x5e]] }
  0x45   : > { %342 = vrot.lane.b32.xlu0 %v337_v28, %s2459_s9  ;;  %v651_v28 = vmul.f32 %v649_v24, %v2636_v23  ;;  %v803_v24 = vstv %s2237_s16  ;;  %s2907_s16 = sld [smem:[#allocation2 + $0x8a]] }
  0x46   : > { %s2928_s19 = sld [smem:[#allocation2 + $0x1e]] }
  0x4b   : > { %382 = vrot.lane.b32.xlu2 %v378_v31, %s2459_s9 }
  0x4c   : > { %370 = vrot.lane.b32.xlu1 %v365_v32, %s2459_s9 }
  0x4d   : > { %368 = vrot.lane.b32.xlu0 %v364_v33, %s2459_s9  ;;  %v679_v33 = vmul.f32 %v677_v30, %v2636_v23 }
  0x53   : > { %398 = vrot.lane.b32.xlu2 %v393_v35, %s2459_s9  ;;  %v678_v35 = vmul.f32 %v677_v30, %v2628_v20 }
  0x54   : > { %396 = vrot.lane.b32.xlu1 %v392_v36, %s2459_s9  ;;  %v665_v36 = vmul.f32 %v663_v21, %v2636_v23 }
  0x55   : > { %384 = vrot.lane.b32.xlu0 %v379_v37, %s2459_s9  ;;  %v705_v37 = vstv %s2646_s5  ;;  %s2266_s5 = sld [smem:[#allocation2 + $0xd]] }
  0x5b   : > { %462 = vrot.lane.b32.xlu2 %v458_v42, %s2458_s29 }
  0x5c   : > { %450 = vrot.lane.b32.xlu1 %v445_v43, %s2458_s29  ;;  %v706_v43 = vmul.f32 %v705_v37, %v2628_v20 }
  0x5d   : > { %448 = vrot.lane.b32.xlu0 %v444_v44, %s2458_s29 }
  0x63   : > { %478 = vrot.lane.b32.xlu2 %v473_v46, %s2458_s29  ;;  %v692_v46 = vmul.f32 %v691_v41, %v2628_v20 }
  0x64   : > { %476 = vrot.lane.b32.xlu1 %v472_v47, %s2458_s29  ;;  %v719_v47 = vstv %s2231_s7  ;;  %s2874_s7 = sld [smem:[#allocation2 + $0x79]] }
  0x65   : > { %464 = vrot.lane.b32.xlu0 %v459_v48, %s2458_s29  ;;  %v721_v50 = vmul.f32 %v719_v47, %v2636_v23 }
  0x6b   : > { %504 = vrot.lane.b32.xlu2 %v500_v51, %s2458_s29 }
  0x6c   : > { %492 = vrot.lane.b32.xlu1 %v487_v52, %s2458_s29  ;;  %v720_v52 = vmul.f32 %v719_v47, %v2628_v20 }
  0x6d   : > { %490 = vrot.lane.b32.xlu0 %v486_v53, %s2458_s29  ;;  %v707_v53 = vmul.f32 %v705_v37, %v2636_v23  ;;  %v870_v37 = vstv %s2727_s17  ;;  %s2913_s17 = sld [smem:[#allocation2 + $0xe]] }
  0x73   : > { %520 = vrot.lane.b32.xlu2 %v515_v55, %s2458_s29 }
  0x74   : > { %518 = vrot.lane.b32.xlu1 %v514_v56, %s2458_s29  ;;  %v733_v56 = vstv %s2232_s10  ;;  %s2271_s10 = sld [smem:[#allocation2 + $0x94]] }
  0x75   : > { %v2590_v59 = vpop.permute.xlu2 %270  ;;  %506 = vrot.lane.b32.xlu0 %v501_v57, %s2458_s29 }
  0x7b   : > { %546 = vrot.lane.b32.xlu2 %v542_v61, %s2459_s9  ;;  %v735_v61 = vmul.f32 %v733_v56, %v2636_v23 }
  0x7c   : > { %534 = vrot.lane.b32.xlu1 %v529_v62, %s2459_s9  ;;  %v734_v62 = vmul.f32 %v733_v56, %v2628_v20 }
  0x7d   : > { %v2598_v2 = vpop.permute.xlu2 %272  ;;  %532 = vrot.lane.b32.xlu0 %v528_v63, %s2459_s9  ;;  %v761_v63 = vstv %s2234_s11  ;;  %s2893_s11 = sld [smem:[#allocation2 + $0x87]] }
  0x7e   : > { %v762_v7 = vmul.f32 %v761_v63, %v2628_v20 }
  0x83   : > { %562 = vrot.lane.b32.xlu2 %v557_v3, %s2459_s9 }
  0x84   : > { %560 = vrot.lane.b32.xlu1 %v556_v4, %s2459_s9  ;;  %v763_v4 = vmul.f32 %v761_v63, %v2636_v23 }
  0x85   : > { %v2606_v8 = vpop.permute.xlu2 %298  ;;  %548 = vrot.lane.b32.xlu0 %v543_v5, %s2459_s9 }
  0x8b   : > { %588 = vrot.lane.b32.xlu2 %v584_v10, %s2459_s9  ;;  %v789_v10 = vstv %s2700_s14  ;;  %s2902_s14 = sld [smem:[#allocation2 + $0x1b]] }
  0x8c   : > { %576 = vrot.lane.b32.xlu1 %v571_v11, %s2459_s9 }
  0x8d   : > { %v2616_v14 = vpop.permute.xlu2 %314  ;;  %574 = vrot.lane.b32.xlu0 %v570_v12, %s2459_s9  ;;  %v775_v12 = vstv %s2235_s15  ;;  %s2905_s15 = sld [smem:[#allocation2 + $0x29]] }
  0x8e   : > { %v2619_v15 = vpop.permute.xlu1 %256  ;;  %v776_v21 = vmul.f32 %v775_v12, %v2628_v20 }
  0x8f   : > { %v2622_v17 = vpop.permute.xlu0 %242 }
  0x93   : > { %604 = vrot.lane.b32.xlu2 %v599_v16, %s2459_s9  ;;  %v790_v16 = vmul.f32 %v789_v10, %v2628_v20 }
  0x94   : > { %602 = vrot.lane.b32.xlu1 %v598_v18, %s2459_s9 }
  0x95   : > { %v2632_v22 = vpop.permute.xlu2 %340  ;;  %590 = vrot.lane.b32.xlu0 %v585_v19, %s2459_s9  ;;  %v777_v19 = vmul.f32 %v775_v12, %v2636_v23 }
  0x96   : > { %v2638_v25 = vpop.permute.xlu1 %258 }
  0x97   : > { %v2641_v27 = vpop.permute.xlu0 %244 }
  0x9b   : > { %668 = vrot.lane.b32.xlu2 %v664_v26, %s2458_s29 }
  0x9c   : > { %656 = vrot.lane.b32.xlu1 %v651_v28, %s2458_s29 }
  0x9d   : > { %v2649_v31 = vpop.permute.xlu2 %356  ;;  %654 = vrot.lane.b32.xlu0 %v650_v29, %s2458_s29  ;;  %v805_v29 = vmul.f32 %v803_v24, %v2636_v23 }
  0x9e   : > { %v2652_v32 = vpop.permute.xlu1 %286 }
  0x9f   : > { %v2655_v34 = vpop.permute.xlu0 %284 }
  0xa3   : > { %684 = vrot.lane.b32.xlu2 %v679_v33, %s2458_s29  ;;  %v804_v33 = vmul.f32 %v803_v24, %v2628_v20 }
  0xa4   : > { %682 = vrot.lane.b32.xlu1 %v678_v35, %s2458_s29  ;;  %v791_v35 = vmul.f32 %v789_v10, %v2636_v23  ;;  %v898_v10 = vstv %s2249_s21  ;;  %s2936_s21 = sld [smem:[#allocation2 + $0x8d]] }
  0xa5   : > { %v2662_v39 = vpop.permute.xlu2 %382  ;;  %670 = vrot.lane.b32.xlu0 %v665_v36, %s2458_s29  ;;  %v2742_v36 = vld [vmem:[%s2505_s28 + $0x10] sm:$0xff] }
  0xa6   : > { %v2665_v42 = vpop.permute.xlu1 %312  ;;  %v871_v47 = vmul.f32 %v2742_v36, %v870_v37  ;;  %v885_v63 = vmul.f32 %v2742_v36, %v884_v54  ;;  %v899_v24 = vmul.f32 %v2742_v36, %v898_v10 }
  0xa7   : > { %v2668_v44 = vpop.permute.xlu0 %300 }
  0xab   : > { %710 = vrot.lane.b32.xlu2 %v706_v43, %s2458_s29  ;;  %v2750_v43 = vld [vmem:[%s2505_s28 + $0x18] sm:$0x3f] }
  0xac   : > { %698 = vrot.lane.b32.xlu1 %v693_v45, %s2458_s29  ;;  %v856_v45 = vstv %s2246_s18  ;;  %s2922_s18 = sld [smem:[#allocation2 + $0x36]] }
  0xad   : > { %v2676_v48 = vpop.permute.xlu2 %398  ;;  %696 = vrot.lane.b32.xlu0 %v692_v46, %s2458_s29 }
  0xae   : > { %v2679_v49 = vpop.permute.xlu1 %328 }
  0xaf   : > { %v2682_v51 = vpop.permute.xlu0 %326 }
  0xb3   : > { %726 = vrot.lane.b32.xlu2 %v721_v50, %s2458_s29 }
  0xb4   : > { %724 = vrot.lane.b32.xlu1 %v720_v52, %s2458_s29  ;;  %v858_v52 = vmul.f32 %v2750_v43, %v856_v45 }
  0xb5   : > { %v2689_v55 = vpop.permute.xlu2 %462  ;;  %712 = vrot.lane.b32.xlu0 %v707_v53, %s2458_s29  ;;  %v857_v53 = vmul.f32 %v2742_v36, %v856_v45 }
  0xb6   : > { %v2692_v57 = vpop.permute.xlu1 %354 }
  0xb7   : > { %v2695_v60 = vpop.permute.xlu0 %342 }
  0xbb   : > { %752 = vrot.lane.b32.xlu2 %v748_v58, %s2459_s9 }
  0xbc   : > { %740 = vrot.lane.b32.xlu1 %v735_v61, %s2459_s9  ;;  %v886_v61 = vmul.f32 %v2750_v43, %v884_v54 }
  0xbd   : > { %v2703_v1 = vpop.permute.xlu2 %478  ;;  %738 = vrot.lane.b32.xlu0 %v734_v62, %s2459_s9 }
  0xbe   : > { %v2706_v3 = vpop.permute.xlu1 %370 }
  0xbf   : > { %4196 = vst [vmem:[#allocation8_spill] sm:$0xff] %v2706_v3  ;;  %v2709_v5 = vpop.permute.xlu0 %368 }
  0xc0   : > { %4197 = vst [vmem:[#allocation9_spill] sm:$0xff] %v2709_v5 }
  0xc3   : > { %768 = vrot.lane.b32.xlu2 %v763_v4, %s2459_s9  ;;  %v872_v4 = vmul.f32 %v2750_v43, %v870_v37 }
  0xc4   : > { %766 = vrot.lane.b32.xlu1 %v762_v7, %s2459_s9  ;;  %v912_v7 = vstv %s2760_s20  ;;  %s2932_s20 = sld [smem:[#allocation2 + $0x44]] }
  0xc5   : > { %v2716_v11 = vpop.permute.xlu2 %504  ;;  %754 = vrot.lane.b32.xlu0 %v749_v9, %s2459_s9 }
  0xc6   : > { %v2719_v13 = vpop.permute.xlu1 %396 }
  0xc7   : > { %v2722_v18 = vpop.permute.xlu0 %384 }
  0xcb   : > { %794 = vrot.lane.b32.xlu2 %v790_v16, %s2459_s9  ;;  %v913_v16 = vmul.f32 %v2742_v36, %v912_v7 }
  0xcc   : > { %782 = vrot.lane.b32.xlu1 %v777_v19, %s2459_s9 }
  0xcd   : > { %v2730_v26 = vpop.permute.xlu2 %520  ;;  %780 = vrot.lane.b32.xlu0 %v776_v21, %s2459_s9  ;;  %v900_v21 = vmul.f32 %v2750_v43, %v898_v10 }
  0xce   : > { %v2733_v28 = vpop.permute.xlu1 %450 }
  0xcf   : > { %4198 = vst [vmem:[#allocation10_spill] sm:$0xff] %v2733_v28  ;;  %v2736_v30 = vpop.permute.xlu0 %448 }
  0xd0   : > { %4199 = vst [vmem:[#allocation11_spill] sm:$0xff] %v2736_v30 }
  0xd3   : > { %810 = vrot.lane.b32.xlu2 %v805_v29, %s2459_s9  ;;  %v926_v29 = vstv %s2251_s22  ;;  %s2941_s22 = sld [smem:[#allocation2 + $0x6c]] }
  0xd4   : > { %808 = vrot.lane.b32.xlu1 %v804_v33, %s2459_s9  ;;  %v928_v37 = vmul.f32 %v2750_v43, %v926_v29 }
  0xd5   : > { %v2746_v41 = vpop.permute.xlu2 %546  ;;  %796 = vrot.lane.b32.xlu0 %v791_v35, %s2459_s9 }
  0xd6   : > { %v2752_v46 = vpop.permute.xlu1 %476 }
  0xd7   : > { %4200 = vst [vmem:[#allocation12_spill] sm:$0xff] %v2752_v46  ;;  %v2755_v50 = vpop.permute.xlu0 %464 }
  0xd8   : > { %4201 = vst [vmem:[#allocation13_spill] sm:$0xff] %v2755_v50  ;;  %v1062_v50 = vstv %s2266_s5  ;;  %s2988_s5 = sld [smem:[#allocation2 + $0x5f]] }
  0xdb   : > { %875 = vrot.lane.b32.xlu2 %v871_v47, %s2458_s29  ;;  %v927_v47 = vmul.f32 %v2742_v36, %v926_v29 }
  0xdc   : > { %863 = vrot.lane.b32.xlu1 %v858_v52, %s2458_s29  ;;  %v914_v52 = vmul.f32 %v2750_v43, %v912_v7 }
  0xdd   : > { %v2763_v56 = vpop.permute.xlu2 %562  ;;  %861 = vrot.lane.b32.xlu0 %v857_v53, %s2458_s29  ;;  %v954_v53 = vstv %s2787_s23  ;;  %s2946_s23 = sld [smem:[#allocation2]] }
  0xde   : > { %v2766_v58 = vpop.permute.xlu1 %492 }
  0xdf   : > { %4202 = vst [vmem:[#allocation14_spill] sm:$0xff] %v2766_v58  ;;  %v2769_v62 = vpop.permute.xlu0 %490 }
  0xe0   : > { %4203 = vst [vmem:[#allocation15_spill] sm:$0xff] %v2769_v62 }
  0xe3   : > { %891 = vrot.lane.b32.xlu2 %v886_v61, %s2458_s29  ;;  %v940_v61 = vstv %s2252_s24  ;;  %s2952_s24 = sld [smem:[#allocation2 + $0x51]] }
  0xe4   : > { %889 = vrot.lane.b32.xlu1 %v885_v63, %s2458_s29  ;;  %v941_v7 = vmul.f32 %v2742_v36, %v940_v61 }
  0xe5   : > { %v2776_v9 = vpop.permute.xlu2 %588  ;;  %877 = vrot.lane.b32.xlu0 %v872_v4, %s2458_s29  ;;  %v955_v4 = vmul.f32 %v2742_v36, %v954_v53 }
  0xe6   : > { %v2779_v12 = vpop.permute.xlu1 %518 }
  0xe7   : > { %v2782_v19 = vpop.permute.xlu0 %506 }
  0xe8   : > { %4204 = vst [vmem:[#allocation16_spill] sm:$0xff] %v2782_v19 }
  0xeb   : > { %917 = vrot.lane.b32.xlu2 %v913_v16, %s2458_s29  ;;  %v942_v16 = vmul.f32 %v2750_v43, %v940_v61  ;;  %v956_v61 = vmul.f32 %v2750_v43, %v954_v53 }
  0xec   : > { %905 = vrot.lane.b32.xlu1 %v900_v21, %s2458_s29  ;;  %v968_v21 = vstv %s2254_s25  ;;  %s2960_s25 = sld [smem:[#allocation2 + $0x39]] }
  0xed   : > { %v2790_v33 = vpop.permute.xlu2 %604  ;;  %903 = vrot.lane.b32.xlu0 %v899_v24, %s2458_s29 }
  0xee   : > { %v2793_v35 = vpop.permute.xlu1 %534 }
  0xef   : > { %4205 = vst [vmem:[#allocation17_spill] sm:$0xff] %v2793_v35  ;;  %v2796_v45 = vpop.permute.xlu0 %532  ;;  %v1118_v35 = vstv %s2874_s7  ;;  %s3008_s7 = sld [smem:[#allocation2 + $0x3c]] }
  0xf0   : > { %4206 = vst [vmem:[#allocation18_spill] sm:$0xff] %v2796_v45 }
  0xf3   : > { %933 = vrot.lane.b32.xlu2 %v928_v37, %s2458_s29  ;;  %v970_v37 = vmul.f32 %v2750_v43, %v968_v21 }
  0xf4   : > { %931 = vrot.lane.b32.xlu1 %v927_v47, %s2458_s29 }
  0xf5   : > { %v2803_v54 = vpop.permute.xlu2 %668  ;;  %919 = vrot.lane.b32.xlu0 %v914_v52, %s2458_s29  ;;  %v969_v52 = vmul.f32 %v2742_v36, %v968_v21  ;;  %v625_v19 = vstv %s3008_s7  ;;  %s3335_s7 = sld [smem:[#allocation2 + $0x78]] }
  0xf6   : > { %v2806_v63 = vpop.permute.xlu1 %560 }
  0xf7   : > { %4207 = vst [vmem:[#allocation19_spill] sm:$0xff] %v2806_v63  ;;  %v2809_v10 = vpop.permute.xlu0 %548  ;;  %v2856_v63 = vld [vmem:[%s2505_s28 + $0x11] sm:$0xff] }
  0xf8   : > { %4208 = vst [vmem:[#allocation20_spill] sm:$0xff] %v2809_v10  ;;  %v1063_v46 = vmul.f32 %v2856_v63, %v1062_v50 }
  0xfb   : > { %959 = vrot.lane.b32.xlu2 %v955_v4, %s2459_s9  ;;  %v996_v4 = vstv %s2814_s26  ;;  %s2963_s26 = sld [smem:[#allocation2 + $0x6f]] }
  0xfc   : > { %947 = vrot.lane.b32.xlu1 %v942_v16, %s2459_s9  ;;  %v997_v62 = vmul.f32 %v2742_v36, %v996_v4 }
  0xfd   : > { %v2817_v24 = vpop.permute.xlu2 %684  ;;  %945 = vrot.lane.b32.xlu0 %v941_v7, %s2459_s9  ;;  %v982_v7 = vstv %s2255_s27  ;;  %s2967_s27 = sld [smem:[#allocation2 + $0x21]] }
  0xfe   : > { %v2820_v29 = vpop.permute.xlu1 %576  ;;  %v984_v53 = vmul.f32 %v2750_v43, %v982_v7  ;;  %v983_v21 = vmul.f32 %v2742_v36, %v982_v7  ;;  %v998_v7 = vmul.f32 %v2750_v43, %v996_v4 }
  0xff   : > { %4209 = vst [vmem:[#allocation21_spill] sm:$0xff] %v2820_v29  ;;  %v2823_v47 = vpop.permute.xlu0 %574 }
 0x100   : > { %4210 = vst [vmem:[#allocation22_spill] sm:$0xff] %v2823_v47 }
 0x103   : > { %975 = vrot.lane.b32.xlu2 %v970_v37, %s2459_s9  ;;  %v1010_v37 = vstv %s2257_s30  ;;  %s2973_s30 = sld [smem:[#allocation2 + $0x7a]] }
 0x104   : > { %973 = vrot.lane.b32.xlu1 %v969_v52, %s2459_s9  ;;  %v1012_v58 = vmul.f32 %v2750_v43, %v1010_v37 }
 0x105   : > { %v2830_v16 = vpop.permute.xlu2 %710  ;;  %961 = vrot.lane.b32.xlu0 %v956_v61, %s2459_s9 }
 0x106   : > { %4211 = vst [vmem:[#allocation23_spill] sm:$0xff] %v2830_v16  ;;  %v2833_v29 = vpop.permute.xlu1 %602 }
 0x107   : > { %4212 = vst [vmem:[#allocation24_spill] sm:$0xff] %v2833_v29  ;;  %v2836_v47 = vpop.permute.xlu0 %590 }
 0x108   : > { %4213 = vst [vmem:[#allocation25_spill] sm:$0xff] %v2836_v47  ;;  %v4193_v47 = vstv %s2936_s21 }
 0x10b   : > { %1001 = vrot.lane.b32.xlu2 %v997_v62, %s2459_s9  ;;  %v1011_v62 = vmul.f32 %v2742_v36, %v1010_v37 }
 0x10c   : > { %989 = vrot.lane.b32.xlu1 %v984_v53, %s2459_s9  ;;  %v1076_v53 = vstv %s2841_s4  ;;  %s2979_s4 = sld [smem:[#allocation2 + $0x90]] }
 0x10d   : > { %v2844_v52 = vpop.permute.xlu2 %726  ;;  %987 = vrot.lane.b32.xlu0 %v983_v21, %s2459_s9  ;;  %v1077_v37 = vmul.f32 %v2856_v63, %v1076_v53 }
 0x10e   : > { %v2847_v61 = vpop.permute.xlu1 %656 }
 0x10f   : > { %4214 = vst [vmem:[#allocation26_spill] sm:$0xff] %v2847_v61  ;;  %v2850_v10 = vpop.permute.xlu0 %654  ;;  %v2864_v61 = vld [vmem:[%s2505_s28 + $0x19] sm:$0x3f] }
 0x110   : > { %4215 = vst [vmem:[#allocation27_spill] sm:$0xff] %v2850_v10 }
 0x113   : > { %1017 = vrot.lane.b32.xlu2 %v1012_v58, %s2459_s9  ;;  %v1064_v58 = vmul.f32 %v2864_v61, %v1062_v50 }
 0x114   : > { %1015 = vrot.lane.b32.xlu1 %v1011_v62, %s2459_s9  ;;  %v1090_v62 = vstv %s2268_s6  ;;  %s2996_s6 = sld [smem:[#allocation2 + $0x3]] }
 0x115   : > { %v2860_v21 = vpop.permute.xlu2 %752  ;;  %1003 = vrot.lane.b32.xlu0 %v998_v7, %s2459_s9  ;;  %v1091_v50 = vmul.f32 %v2856_v63, %v1090_v62 }
 0x116   : > { %v2866_v10 = vpop.permute.xlu1 %682 }
 0x117   : > { %4216 = vst [vmem:[#allocation28_spill] sm:$0xff] %v2866_v10  ;;  %v2869_v4 = vpop.permute.xlu0 %670 }
 0x118   : > { %4217 = vst [vmem:[#allocation29_spill] sm:$0xff] %v2869_v4  ;;  %v1092_v4 = vmul.f32 %v2864_v61, %v1090_v62  ;;  %v1119_v62 = vmul.f32 %v2856_v63, %v1118_v35 }
 0x11b   : > { %1081 = vrot.lane.b32.xlu2 %v1077_v37, %s2458_s29  ;;  %v1078_v37 = vmul.f32 %v2864_v61, %v1076_v53 }
 0x11c   : > { %1069 = vrot.lane.b32.xlu1 %v1064_v58, %s2458_s29 }
 0x11d   : > { %v2877_v7 = vpop.permute.xlu2 %768  ;;  %1067 = vrot.lane.b32.xlu0 %v1063_v46, %s2458_s29  ;;  %v1104_v46 = vstv %s2269_s8  ;;  %s3017_s8 = sld [smem:[#allocation2 + $0x24]] }
 0x11e   : > { %v2880_v10 = vpop.permute.xlu1 %698  ;;  %v1106_v53 = vmul.f32 %v2864_v61, %v1104_v46 }
 0x11f   : > { %4218 = vst [vmem:[#allocation30_spill] sm:$0xff] %v2880_v10  ;;  %v2883_v45 = vpop.permute.xlu0 %696 }
 0x120   : > { %4219 = vst [vmem:[#allocation31_spill] sm:$0xff] %v2883_v45 }
 0x123   : > { %1097 = vrot.lane.b32.xlu2 %v1092_v4, %s2458_s29  ;;  %v1105_v4 = vmul.f32 %v2856_v63, %v1104_v46  ;;  %v4192_v46 = vstv %s2893_s11 }
 0x124   : > { %1095 = vrot.lane.b32.xlu1 %v1091_v50, %s2458_s29  ;;  %v1132_v50 = vstv %s2271_s10  ;;  %s3023_s10 = sld [smem:[#allocation2 + $0x95]] }
 0x125   : > { %v2890_v58 = vpop.permute.xlu2 %794  ;;  %1083 = vrot.lane.b32.xlu0 %v1078_v37, %s2458_s29  ;;  %v1133_v30 = vmul.f32 %v2856_v63, %v1132_v50 }
 0x126   : > { %4220 = vst [vmem:[#allocation32_spill] sm:$0xff] %v2890_v58  ;;  %v2895_v10 = vpop.permute.xlu1 %724  ;;  %v1120_v58 = vmul.f32 %v2864_v61, %v1118_v35 }
 0x127   : > { %4221 = vst [vmem:[#allocation33_spill] sm:$0xff] %v2895_v10  ;;  %v2898_v45 = vpop.permute.xlu0 %712 }
 0x128   : > { %4222 = vst [vmem:[#allocation34_spill] sm:$0xff] %v2898_v45 }
 0x12b   : > { %1123 = vrot.lane.b32.xlu2 %v1119_v62, %s2458_s29  ;;  %v1134_v62 = vmul.f32 %v2864_v61, %v1132_v50 }
 0x12c   : > { %1111 = vrot.lane.b32.xlu1 %v1106_v53, %s2458_s29  ;;  %v233_v53 = vmul.f32 %v4192_v46, %v2514_v6 }
 0x12d   : > { %v2910_v37 = vpop.permute.xlu2 %810  ;;  %1109 = vrot.lane.b32.xlu0 %v1105_v4, %s2458_s29  ;;  %v1160_v4 = vstv %s2905_s15  ;;  %s3070_s15 = sld [smem:[#allocation2 + $0x72]] }
 0x12e   : > { %v2916_v45 = vpop.permute.xlu1 %740  ;;  %v319_v35 = vadd.f32 %v2616_v14, %v233_v53  ;;  %v4226_v14 = vstv %s2907_s16 }
 0x12f   : > { %4223 = vst [vmem:[#allocation35_spill] sm:$0xff] %v2916_v45  ;;  %v2919_v10 = vpop.permute.xlu0 %738  ;;  %v207_v45 = vstv %s2902_s14  ;;  %v439_v53 = vmul.f32 %v4226_v14, %v2565_v40  ;;  %s3053_s14 = sld [smem:[#allocation2 + $0x54]] }
 0x130   : > { %4224 = vst [vmem:[#allocation36_spill] sm:$0xff] %v2919_v10  ;;  %v1161_v10 = vmul.f32 %v2856_v63, %v1160_v4  ;;  %v403_v28 = vadd.f32 %v2676_v48, %v319_v35  ;;  %v213_v48 = vstv %s2922_s18  ;;  %s3104_s18 = sld [smem:[#allocation2 + $0x10]] }
 0x132   : > { %v441_v14 = vadd.f32 %v439_v53, %v403_v28  ;;  %v214_v28 = vmul.f32 %v213_v48, %v2508_v0 }
 0x133   : > { %1139 = vrot.lane.b32.xlu2 %v1134_v62, %s2458_s29  ;;  %v1146_v62 = vstv %s2913_s17  ;;  %s3085_s17 = sld [smem:[#allocation2 + $0x2b]] }
 0x134   : > { %1137 = vrot.lane.b32.xlu1 %v1133_v30, %s2458_s29  ;;  %v208_v30 = vmul.f32 %v207_v45, %v2508_v0  ;;  %v1147_v16 = vmul.f32 %v2856_v63, %v1146_v62 }
 0x135   : > { %v2939_v50 = vpop.permute.xlu2 %875  ;;  %1125 = vrot.lane.b32.xlu0 %v1120_v58, %s2458_s29 }
 0x136   : > { %v2948_v46 = vpop.permute.xlu1 %766  ;;  %v262_v35 = vadd.f32 %v2619_v15, %v208_v30  ;;  %v525_v15 = vadd.f32 %v2730_v26, %v441_v14  ;;  %v201_v30 = vstv %s2946_s23  ;;  %v645_v26 = vmul.f32 %v4193_v47, %v2636_v23  ;;  %s3210_s23 = sld [smem:[#allocation2 + $0x9]] }
 0x137   : > { %4225 = vst [vmem:[#allocation37_spill] sm:$0xff] %v2948_v46  ;;  %v2958_v58 = vpop.permute.xlu0 %754  ;;  %v1148_v46 = vmul.f32 %v2864_v61, %v1146_v62  ;;  %v225_v62 = vstv %s2941_s22  ;;  %s3195_s22 = sld [smem:[#allocation2 + $0x57]] }
 0x138   : > { %4227 = vst [vmem:[#allocation38_spill] sm:$0xff] %v2958_v58  ;;  %v1174_v58 = vstv %s2932_s20  ;;  %v346_v5 = vadd.f32 %v2632_v22, %v262_v35  ;;  %v609_v35 = vadd.f32 %v2790_v33, %v525_v15  ;;  %v226_v14 = vmul.f32 %v225_v62, %v2508_v0  ;;  %s3157_s20 = sld [smem:[#allocation2 + $0x6]] }
 0x139   : > { %v1176_v22 = vmul.f32 %v2864_v61, %v1174_v58  ;;  %v1162_v33 = vmul.f32 %v2864_v61, %v1160_v4  ;;  %v3012_v15 = vadd.f32 %v2590_v59, %v214_v28  ;;  %v4195_v4 = vstv %s2973_s30 }
 0x13a   : > { %v227_v28 = vmul.f32 %v225_v62, %v2514_v6  ;;  %v826_v62 = vstv %s3017_s8  ;;  %s3362_s8 = sld [smem:[#allocation2 + $0x7d]] }
 0x13b   : > { %1165 = vrot.lane.b32.xlu2 %v1161_v10, %s2459_s9  ;;  %v4229_v10 = vstv %s2928_s19 }
 0x13c   : > { %1153 = vrot.lane.b32.xlu1 %v1148_v46, %s2459_s9  ;;  %v414_v29 = vmul.f32 %v4229_v10, %v2560_v38  ;;  %v215_v46 = vmul.f32 %v213_v48, %v2514_v6  ;;  %v1175_v48 = vmul.f32 %v2856_v63, %v1174_v58  ;;  %v202_v10 = vmul.f32 %v201_v30, %v2508_v0 }
 0x13d   : > { %v2977_v3 = vpop.permute.xlu2 %891  ;;  %1151 = vrot.lane.b32.xlu0 %v1147_v16, %s2459_s9  ;;  %v4194_v58 = vstv %s2967_s27 }
 0x13e   : > { %4228 = vst [vmem:[#allocation39_spill] sm:$0xff] %v2977_v3  ;;  %v2993_v53 = vpop.permute.xlu1 %782  ;;  %v277_v47 = vadd.f32 %v2598_v2, %v215_v46  ;;  %v647_v3 = vadd.f32 %v645_v26, %v609_v35  ;;  %v4232_v2 = vstv %s2960_s25 }
 0x13f   : > { %4230 = vst [vmem:[#allocation40_spill] sm:$0xff] %v2993_v53  ;;  %v3002_v16 = vpop.permute.xlu0 %780  ;;  %v416_v53 = vadd.f32 %v414_v29, %v346_v5  ;;  %v219_v5 = vstv %s2952_s24  ;;  %s3218_s24 = sld [smem:[#allocation2 + $0x61]] }
 0x140   : > { %4231 = vst [vmem:[#allocation41_spill] sm:$0xff] %v3002_v16  ;;  %v209_v16 = vmul.f32 %v207_v45, %v2514_v6  ;;  %v361_v59 = vadd.f32 %v2649_v31, %v277_v47  ;;  %v421_v45 = vmul.f32 %v4232_v2, %v2565_v40  ;;  %v731_v35 = vadd.f32 %v2844_v52, %v647_v3 }
 0x141   : > { %v468_v29 = vadd.f32 %v2689_v55, %v416_v53  ;;  %v620_v53 = vmul.f32 %v4194_v58, %v2628_v20  ;;  %v1188_v31 = vstv %s2988_s5  ;;  %v203_v47 = vmul.f32 %v201_v30, %v2514_v6  ;;  %s3302_s5 = sld [smem:[#allocation2 + $0x11]] }
 0x142   : > { %v221_v26 = vmul.f32 %v219_v5, %v2514_v6  ;;  %v407_v3 = vstv %s2996_s6  ;;  %v815_v52 = vadd.f32 %v2910_v37, %v731_v35  ;;  %v1189_v37 = vmul.f32 %v2856_v63, %v1188_v31  ;;  %s3330_s6 = sld [smem:[#allocation2 + $0x47]] }
 0x143   : > { %1181 = vrot.lane.b32.xlu2 %v1176_v22, %s2459_s9  ;;  %v850_v22 = vstv %s2979_s4  ;;  %v552_v55 = vadd.f32 %v2746_v41, %v468_v29  ;;  %v1203_v41 = vmul.f32 %v2856_v63, %v4195_v4  ;;  %v304_v29 = vadd.f32 %v2606_v8, %v226_v14  ;;  %s3293_s4 = sld [smem:[#allocation2 + $0x42]] }
 0x144   : > { %1179 = vrot.lane.b32.xlu1 %v1175_v48, %s2459_s9  ;;  %v3044_v48 = vmul.f32 %v219_v5, %v2508_v0  ;;  %v4235_v5 = vstv %s2893_s11  ;;  %v4236_v4 = vstv %s2963_s26  ;;  %v1190_v8 = vmul.f32 %v2864_v61, %v1188_v31  ;;  %s3079_s11 = sld [smem:[#allocation2 + $0x3f]] }
 0x145   : > { %v3031_v46 = vpop.permute.xlu2 %917  ;;  %1167 = vrot.lane.b32.xlu0 %v1162_v33, %s2459_s9  ;;  %v852_v33 = vmul.f32 %v2750_v43, %v850_v22  ;;  %v232_v58 = vmul.f32 %v4235_v5, %v2508_v0  ;;  %v423_v14 = vadd.f32 %v421_v45, %v361_v59  ;;  %v248_v35 = vadd.f32 %v2622_v17, %v202_v10 }
 0x146   : > { %4233 = vst [vmem:[#allocation42_spill] sm:$0xff] %v3031_v46  ;;  %v3046_v2 = vpop.permute.xlu1 %808  ;;  %v432_v46 = vmul.f32 %v4236_v4, %v2560_v38  ;;  %v388_v0 = vadd.f32 %v2662_v39, %v304_v29  ;;  %v3076_v6 = vmul.f32 %v407_v3, %v2565_v40  ;;  %v3088_v17 = vadd.f32 %v2638_v25, %v209_v16 }
 0x147   : > { %4234 = vst [vmem:[#allocation43_spill] sm:$0xff] %v3046_v2  ;;  %v3056_v30 = vpop.permute.xlu0 %796  ;;  %v622_v2 = vadd.f32 %v620_v53, %v552_v55  ;;  %v483_v4 = vadd.f32 %v2703_v1, %v423_v14  ;;  %v854_v45 = vadd.f32 %v852_v33, %v815_v52  ;;  %v1216_v55 = vstv %s3023_s10  ;;  %s3366_s10 = sld [smem:[#allocation2 + $0x93]] }
 0x148   : > { %v249_v39 = vadd.f32 %v2641_v27, %v203_v47  ;;  %v408_v10 = vmul.f32 %v407_v3, %v2560_v38  ;;  %v627_v53 = vmul.f32 %v625_v19, %v2636_v23  ;;  %v827_v25 = vmul.f32 %v2742_v36, %v826_v62 }
 0x149   : > { %v674_v59 = vadd.f32 %v2803_v54, %v622_v2  ;;  %v567_v54 = vadd.f32 %v2763_v56, %v483_v4  ;;  %v318_v16 = vadd.f32 %v2665_v42, %v232_v58  ;;  %v4237_v47 = vstv %s2960_s25  ;;  %s3250_s25 = sld [smem:[#allocation2 + $0x97]] }
 0x14a   : > { %v3110_v2 = vmul.f32 %v4237_v47, %v2560_v38  ;;  %v4238_v56 = vstv %s2928_s19  ;;  %v1218_v29 = vmul.f32 %v2864_v61, %v1216_v55  ;;  %v291_v3 = vadd.f32 %v2652_v32, %v221_v26  ;;  %s3151_s19 = sld [smem:[#allocation2 + $0x46]] }
 0x14b   : > { %1207 = vrot.lane.b32.xlu2 %v1203_v41, %s2459_s9  ;;  %v758_v31 = vadd.f32 %v2860_v21, %v674_v59  ;;  %v3115_v21 = vmul.f32 %v4238_v56, %v2565_v40  ;;  %v305_v52 = vadd.f32 %v2668_v44, %v227_v28  ;;  %v434_v33 = vadd.f32 %v432_v46, %v388_v0 }
 0x14c   : > { %1195 = vrot.lane.b32.xlu1 %v1190_v8, %s2459_s9  ;;  %v425_v42 = vstv %s3053_s14  ;;  %v402_v5 = vadd.f32 %v2719_v13, %v318_v16  ;;  %v4239_v8 = vstv %s2907_s16  ;;  %v1217_v59 = vmul.f32 %v2856_v63, %v1216_v55  ;;  %s3141_s16 = sld [smem:[#allocation2 + $0x75]] }
 0x14d   : > { %v934_v1 = vpop.permute.xlu2 %933  ;;  %1193 = vrot.lane.b32.xlu0 %v1189_v37, %s2459_s9  ;;  %v438_v14 = vmul.f32 %v4239_v8, %v2560_v38  ;;  %v4240_v37 = vstv %s2963_s26  ;;  %v629_v32 = vadd.f32 %v627_v53, %v567_v54  ;;  %v637_v26 = vstv %s3070_s15  ;;  %s3258_s26 = sld [smem:[#allocation2 + $0x27]] }
 0x14e   : > { %v3102_v27 = vadd.f32 %v934_v1, %v854_v45  ;;  %v3117_v41 = vpop.permute.xlu1 %863  ;;  %v433_v4 = vmul.f32 %v4240_v37, %v2565_v40  ;;  %v829_v45 = vadd.f32 %v827_v25, %v758_v31  ;;  %v4241_v44 = vstv %s2973_s30  ;;  %v3148_v31 = vld [vmem:[%s2505_s28 + $0x12] sm:$0xff]  ;;  %s3288_s30 = sld [smem:[#allocation2 + $0x2c]] }
 0x14f   : > { %v3123_v58 = vpop.permute.xlu0 %861  ;;  %v1204_v28 = vmul.f32 %v2864_v61, %v4241_v44  ;;  %v333_v46 = vadd.f32 %v2679_v49, %v249_v39  ;;  %v510_v13 = vadd.f32 %v2716_v11, %v434_v33  ;;  %v389_v0 = vadd.f32 %v2722_v18, %v305_v52  ;;  %s2295_s14 = sld [smem:[#allocation2 + $0x62]] }
 0x150   : > { %v832_v1 = vstv %s3079_s11  ;;  %v332_v55 = vadd.f32 %v2682_v51, %v248_v35  ;;  %v689_v53 = vadd.f32 %v2817_v24, %v629_v32  ;;  %v881_v54 = vadd.f32 %v2939_v50, %v829_v45  ;;  %v4246_v45 = vld [vmem:[#allocation25_spill] sm:$0xff]  ;;  %s2260_s15 = sld [smem:[#allocation2 + $0xc]] }
 0x151   : > { %v1282_v49 = vstv %s3085_s17  ;;  %v290_v11 = vadd.f32 %v2655_v34, %v3044_v48  ;;  %v594_v18 = vadd.f32 %v2776_v9, %v510_v13  ;;  %v440_v39 = vadd.f32 %v438_v14, %v402_v5  ;;  %v3168_v34 = vld [vmem:[%s2505_s28 + $0x1a] sm:$0x3f]  ;;  %s3386_s11 = sld [smem:[#allocation2 + $0x98]] }
 0x152   : > { %v638_v51 = vmul.f32 %v637_v26, %v2628_v20  ;;  %v773_v50 = vadd.f32 %v2877_v7, %v689_v53  ;;  %v834_v35 = vmul.f32 %v2750_v43, %v832_v1  ;;  %v1268_v9 = vstv %s3104_s18  ;;  %v4248_v13 = vld [vmem:[#allocation23_spill] sm:$0xff]  ;;  %s3410_s17 = sld [smem:[#allocation2 + $0x2e]] }
 0x153   : > { %1223 = vrot.lane.b32.xlu2 %v1218_v29, %s2459_s9  ;;  %v427_v48 = vmul.f32 %v425_v42, %v2565_v40  ;;  %v426_v16 = vmul.f32 %v425_v42, %v2560_v38  ;;  %v435_v47 = vadd.f32 %v433_v4, %v389_v0  ;;  %v1283_v7 = vmul.f32 %v3148_v31, %v1282_v49  ;;  %v4242_v40 = vld [vmem:[#allocation16_spill] sm:$0xff]  ;;  %s3417_s18 = sld [smem:[#allocation2 + $0x13]] }
 0x154   : > { %1221 = vrot.lane.b32.xlu1 %v1217_v59, %s2459_s9  ;;  %v360_v29 = vadd.f32 %v2692_v57, %v3012_v15  ;;  %v411_v52 = vadd.f32 %v3076_v6, %v333_v46  ;;  %v410_v33 = vadd.f32 %v408_v10, %v332_v55  ;;  %v524_v5 = vadd.f32 %v2779_v12, %v440_v39  ;;  %v4243_v4 = vld [vmem:[#allocation24_spill] sm:$0xff]  ;;  %v4249_v55 = vld [vmem:[#allocation39_spill] sm:$0xff] }
 0x155   : > { %v960_v24 = vpop.permute.xlu2 %959  ;;  %1209 = vrot.lane.b32.xlu0 %v1204_v28, %s2459_s9  ;;  %v347_v38 = vadd.f32 %v2695_v60, %v3088_v17  ;;  %v511_v42 = vadd.f32 %v4242_v40, %v435_v47  ;;  %v640_v14 = vadd.f32 %v638_v51, %v594_v18  ;;  %v1270_v37 = vmul.f32 %v3168_v34, %v1268_v9  ;;  %v4245_v10 = vld [vmem:[#allocation8_spill] sm:$0xff]  ;;  %v4247_v28 = vld [vmem:[#allocation9_spill] sm:$0xff]  ;;  %v4250_v18 = vld [vmem:[#allocation10_spill] sm:$0xff] }
 0x156   : > { %v3165_v25 = vadd.f32 %v960_v24, %v881_v54  ;;  %v3173_v56 = vpop.permute.xlu1 %889  ;;  %v608_v59 = vadd.f32 %v4243_v4, %v524_v5  ;;  %v4244_v57 = vstv %s2936_s21  ;;  %v836_v6 = vadd.f32 %v834_v35, %v773_v50  ;;  %s3204_s21 = sld [smem:[#allocation2 + $0x7c]]  ;;  %v4253_v40 = vld [vmem:[#allocation17_spill] sm:$0xff] }
 0x157   : > { %v3182_v8 = vpop.permute.xlu0 %877  ;;  %v644_v15 = vmul.f32 %v4244_v57, %v2628_v20  ;;  %v1269_v12 = vmul.f32 %v3148_v31, %v1268_v9  ;;  %v375_v32 = vadd.f32 %v4245_v10, %v291_v3  ;;  %v595_v44 = vadd.f32 %v4246_v45, %v511_v42  ;;  %v4255_v57 = vld [vmem:[#allocation18_spill] sm:$0xff]  ;;  %v4257_v10 = vld [vmem:[#allocation43_spill] sm:$0xff] }
 0x158   : > { %v639_v60 = vmul.f32 %v637_v26, %v2636_v23  ;;  %v844_v17 = vstv %s3141_s16  ;;  %v374_v46 = vadd.f32 %v4247_v28, %v290_v11  ;;  %v716_v0 = vadd.f32 %v4248_v13, %v640_v14  ;;  %v4251_v11 = vld [vmem:[#allocation32_spill] sm:$0xff]  ;;  %s3421_s16 = sld [smem:[#allocation2 + $0x5d]] }
 0x159   : > { %v896_v53 = vadd.f32 %v4249_v55, %v836_v6  ;;  %v1296_v54 = vstv %s3151_s19  ;;  %v455_v3 = vadd.f32 %v4250_v18, %v411_v52  ;;  %v422_v39 = vadd.f32 %v3110_v2, %v360_v29  ;;  %v4252_v2 = vld [vmem:[#allocation11_spill] sm:$0xff]  ;;  %v4260_v18 = vld [vmem:[#allocation42_spill] sm:$0xff]  ;;  %s3440_s19 = sld [smem:[#allocation2 + $0x49]] }
 0x15a   : > { %v417_v51 = vadd.f32 %v3115_v21, %v347_v38  ;;  %v613_v24 = vstv %s3157_s20  ;;  %v800_v50 = vadd.f32 %v4251_v11, %v716_v0  ;;  %v646_v35 = vadd.f32 %v644_v15, %v608_v59  ;;  %v4256_v15 = vld [vmem:[#allocation34_spill] sm:$0xff]  ;;  %s3465_s20 = sld [smem:[#allocation2 + $0x7f]] }
 0x15b   : > { %1287 = vrot.lane.b32.xlu2 %v1283_v7, %s2458_s29  ;;  %v845_v9 = vmul.f32 %v2742_v36, %v844_v17  ;;  %v454_v7 = vadd.f32 %v4252_v2, %v410_v33  ;;  %v429_v21 = vadd.f32 %v427_v48, %v375_v32  ;;  %v641_v29 = vadd.f32 %v639_v60, %v595_v44  ;;  %v4258_v60 = vld [vmem:[#allocation12_spill] sm:$0xff]  ;;  %v4264_v2 = vld [vmem:[#allocation27_spill] sm:$0xff] }
 0x15c   : > { %1275 = vrot.lane.b32.xlu1 %v1270_v37, %s2458_s29  ;;  %v1298_v5 = vmul.f32 %v3168_v34, %v1296_v54  ;;  %v428_v38 = vadd.f32 %v426_v16, %v374_v46  ;;  %v539_v42 = vadd.f32 %v4253_v40, %v455_v3  ;;  %v615_v14 = vmul.f32 %v613_v24, %v2636_v23  ;;  %v4254_v37 = vld [vmem:[#allocation33_spill] sm:$0xff]  ;;  %v4265_v40 = vld [vmem:[#allocation20_spill] sm:$0xff] }
 0x15d   : > { %v976_v26 = vpop.permute.xlu2 %975  ;;  %1273 = vrot.lane.b32.xlu0 %v1269_v12, %s2458_s29  ;;  %v730_v4 = vadd.f32 %v4254_v37, %v646_v35  ;;  %v538_v33 = vadd.f32 %v4255_v57, %v454_v7  ;;  %v614_v48 = vmul.f32 %v613_v24, %v2628_v20  ;;  %v717_v6 = vadd.f32 %v4256_v15, %v641_v29  ;;  %v4259_v46 = vld [vmem:[#allocation13_spill] sm:$0xff]  ;;  %v4263_v35 = vld [vmem:[#allocation19_spill] sm:$0xff] }
 0x15e   : > { %v3216_v47 = vadd.f32 %v976_v26, %v896_v53  ;;  %v3221_v52 = vpop.permute.xlu1 %905  ;;  %v1297_v12 = vmul.f32 %v3148_v31, %v1296_v54  ;;  %v847_v16 = vadd.f32 %v845_v9, %v800_v50  ;;  %v1284_v45 = vmul.f32 %v3168_v34, %v1282_v49  ;;  %v4262_v26 = vld [vmem:[#allocation26_spill] sm:$0xff] }
 0x15f   : > { %v3227_v59 = vpop.permute.xlu0 %903  ;;  %v814_v32 = vadd.f32 %v4257_v10, %v730_v4  ;;  %v851_v44 = vmul.f32 %v2742_v36, %v850_v22  ;;  %v482_v28 = vadd.f32 %v4258_v60, %v422_v39  ;;  %v469_v13 = vadd.f32 %v4259_v46, %v417_v51  ;;  %v2408_v46 = vld [vmem:[%s2505_s28 + $0xa] sm:$0x3f] }
 0x160   : > { %v801_v0 = vadd.f32 %v3056_v30, %v717_v6  ;;  %v846_v55 = vmul.f32 %v2750_v43, %v844_v17  ;;  %v617_v53 = vadd.f32 %v615_v14, %v539_v42  ;;  %v626_v54 = vmul.f32 %v625_v19, %v2628_v20  ;;  %v4266_v14 = vld [vmem:[#allocation35_spill] sm:$0xff] }
 0x161   : > { %v923_v49 = vadd.f32 %v4260_v18, %v847_v16  ;;  %v1324_v3 = vstv %s3204_s21  ;;  %v616_v22 = vadd.f32 %v614_v48, %v538_v33  ;;  %v4261_v39 = vstv %s2967_s27  ;;  %v4267_v48 = vld [vmem:[#allocation36_spill] sm:$0xff]  ;;  %s3283_s27 = sld [smem:[#allocation2 + $0x5a]] }
 0x162   : > { %v621_v51 = vmul.f32 %v4261_v39, %v2636_v23  ;;  %v631_v30 = vstv %s3195_s22  ;;  %v820_v24 = vstv %s3210_s23  ;;  %v661_v11 = vadd.f32 %v4262_v26, %v617_v53  ;;  %v2409_v18 = vld [vmem:[%s2505_s28 + $0x2] sm:$0xff]  ;;  %s2309_s22 = sld [smem:[#allocation2 + $0x64]] }
 0x163   : > { %1303 = vrot.lane.b32.xlu2 %v1298_v5, %s2458_s29  ;;  %v853_v19 = vadd.f32 %v851_v44, %v814_v32  ;;  %v1310_v50 = vstv %s3218_s24  ;;  %v566_v9 = vadd.f32 %v4263_v35, %v482_v28  ;;  %v660_v7 = vadd.f32 %v4264_v2, %v616_v22  ;;  %v4268_v32 = vld [vmem:[#allocation14_spill] sm:$0xff]  ;;  %v4269_v44 = vld [vmem:[#allocation15_spill] sm:$0xff]  ;;  %v4270_v39 = vld [vmem:[#allocation21_spill] sm:$0xff]  ;;  %s3489_s21 = sld [smem:[#allocation2 + $0x9a]] }
 0x164   : > { %1301 = vrot.lane.b32.xlu1 %v1297_v12, %s2458_s29  ;;  %v848_v29 = vadd.f32 %v846_v55, %v801_v0  ;;  %v1325_v5 = vmul.f32 %v3148_v31, %v1324_v3  ;;  %v553_v42 = vadd.f32 %v4265_v40, %v469_v13  ;;  %v745_v37 = vadd.f32 %v4266_v14, %v661_v11  ;;  %v4275_v40 = vld [vmem:[#allocation38_spill] sm:$0xff]  ;;  %s3492_s23 = sld [smem:[#allocation2 + $0x2a]] }
 0x165   : > { %v1002_v17 = vpop.permute.xlu2 %1001  ;;  %1289 = vrot.lane.b32.xlu0 %v1284_v45, %s2458_s29  ;;  %v822_v4 = vmul.f32 %v2750_v43, %v820_v24  ;;  %v744_v15 = vadd.f32 %v4267_v48, %v660_v7  ;;  %v821_v6 = vmul.f32 %v2742_v36, %v820_v24  ;;  %v1312_v16 = vmul.f32 %v3168_v34, %v1310_v50  ;;  %v4271_v24 = vld [vmem:[#allocation28_spill] sm:$0xff]  ;;  %v4274_v7 = vld [vmem:[#allocation37_spill] sm:$0xff]  ;;  %s3509_s24 = sld [smem:[#allocation2 + $0x2f]] }
 0x166   : > { %v3262_v20 = vadd.f32 %v1002_v17, %v923_v49  ;;  %v932_v23 = vpop.permute.xlu1 %931  ;;  %v1311_v10 = vmul.f32 %v3148_v31, %v1310_v50  ;;  %v497_v45 = vadd.f32 %v4268_v32, %v429_v21  ;;  %v496_v60 = vadd.f32 %v4269_v44, %v428_v38 }
 0x167   : > { %v3273_v57 = vadd.f32 %v932_v23, %v853_v19  ;;  %v920_v33 = vpop.permute.xlu0 %919  ;;  %v628_v28 = vadd.f32 %v626_v54, %v566_v9  ;;  %v633_v13 = vmul.f32 %v2408_v46, %v631_v30  ;;  %v824_v0 = vadd.f32 %v822_v4, %v745_v37  ;;  %v4273_v19 = vld [vmem:[#allocation29_spill] sm:$0xff] }
 0x168   : > { %v3277_v12 = vadd.f32 %v920_v33, %v848_v29  ;;  %v1338_v55 = vstv %s3250_s25  ;;  %v623_v53 = vadd.f32 %v621_v51, %v553_v42  ;;  %v632_v49 = vmul.f32 %v2409_v18, %v631_v30  ;;  %v4272_v30 = vld [vmem:[#allocation22_spill] sm:$0xff]  ;;  %s3513_s25 = sld [smem:[#allocation2 + $0x45]] }
 0x169   : > { %v823_v22 = vadd.f32 %v821_v6, %v744_v15  ;;  %v1032_v38 = vstv %s3258_s26  ;;  %v581_v54 = vadd.f32 %v4270_v39, %v497_v45  ;;  %v688_v17 = vadd.f32 %v4271_v24, %v628_v28  ;;  %v4277_v28 = vld [vmem:[#allocation31_spill] sm:$0xff]  ;;  %v4279_v39 = vld [vmem:[#allocation41_spill] sm:$0xff]  ;;  %s2312_s26 = sld [smem:[#allocation2 + $0x14]] }
 0x16a   : > { %v868_v26 = vadd.f32 %v3117_v41, %v824_v0  ;;  %v580_v11 = vadd.f32 %v4272_v30, %v496_v60  ;;  %v675_v50 = vadd.f32 %v4273_v19, %v623_v53  ;;  %v1340_v2 = vmul.f32 %v3168_v34, %v1338_v55  ;;  %v4278_v53 = vld [vmem:[#allocation40_spill] sm:$0xff] }
 0x16b   : > { %1329 = vrot.lane.b32.xlu2 %v1325_v5, %s2458_s29  ;;  %v867_v35 = vadd.f32 %v3123_v58, %v823_v22  ;;  %v772_v41 = vadd.f32 %v4274_v7, %v688_v17  ;;  %v833_v23 = vmul.f32 %v2742_v36, %v832_v1  ;;  %v1033_v5 = vmul.f32 %v2856_v63, %v1032_v38 }
 0x16c   : > { %1317 = vrot.lane.b32.xlu1 %v1312_v16, %s2458_s29  ;;  %v759_v42 = vadd.f32 %v4275_v40, %v675_v50  ;;  %v828_v58 = vmul.f32 %v2750_v43, %v826_v62  ;;  %v1339_v37 = vmul.f32 %v3148_v31, %v1338_v55  ;;  %v1326_v1 = vmul.f32 %v3168_v34, %v1324_v3  ;;  %v4276_v3 = vld [vmem:[#allocation30_spill] sm:$0xff] }
 0x16d   : > { %v1018_v21 = vpop.permute.xlu2 %1017  ;;  %1315 = vrot.lane.b32.xlu0 %v1311_v10, %s2458_s29  ;;  %v635_v4 = vadd.f32 %v633_v13, %v581_v54  ;;  %v835_v33 = vadd.f32 %v833_v23, %v772_v41  ;;  %v1035_v48 = vadd.f32 %v1033_v5, %v3165_v25  ;;  %v1366_v15 = vstv %s3288_s30  ;;  %s3538_s30 = sld [smem:[#allocation2 + $0x7b]] }
 0x16e   : > { %v3300_v51 = vadd.f32 %v1018_v21, %v3102_v27  ;;  %v948_v9 = vpop.permute.xlu1 %947  ;;  %v634_v6 = vadd.f32 %v632_v49, %v580_v11  ;;  %v830_v16 = vadd.f32 %v828_v58, %v759_v42  ;;  %v838_v62 = vstv %s3283_s27  ;;  %s3534_s27 = sld [smem:[#allocation2 + $0x4a]] }
 0x16f   : > { %v3312_v27 = vadd.f32 %v948_v9, %v868_v26  ;;  %v946_v29 = vpop.permute.xlu0 %945  ;;  %v1038_v32 = vstv %s3293_s4  ;;  %v703_v45 = vadd.f32 %v4276_v3, %v635_v4  ;;  %v895_v44 = vadd.f32 %v3173_v56, %v835_v33  ;;  %s3558_s4 = sld [smem:[#allocation2 + $0x80]] }
 0x170   : > { %v3321_v14 = vadd.f32 %v946_v29, %v867_v35  ;;  %v1352_v60 = vstv %s3302_s5  ;;  %v702_v46 = vadd.f32 %v4277_v28, %v634_v6  ;;  %v882_v13 = vadd.f32 %v3182_v8, %v830_v16  ;;  %s3562_s5 = sld [smem:[#allocation2 + $0x96]] }
 0x171   : > { %v1367_v55 = vmul.f32 %v3148_v31, %v1366_v15  ;;  %v787_v18 = vadd.f32 %v4278_v53, %v703_v45  ;;  %v840_v49 = vmul.f32 %v2750_v43, %v838_v62  ;;  %v1040_v21 = vmul.f32 %v2864_v61, %v1038_v32 }
 0x172   : > { %v786_v54 = vadd.f32 %v4279_v39, %v702_v46  ;;  %v839_v24 = vmul.f32 %v2742_v36, %v838_v62  ;;  %v1354_v17 = vmul.f32 %v3168_v34, %v1352_v60  ;;  %v1353_v26 = vmul.f32 %v3148_v31, %v1352_v60 }
 0x173   : > { %1345 = vrot.lane.b32.xlu2 %v1340_v2, %s2458_s29  ;;  %v842_v43 = vadd.f32 %v840_v49, %v787_v18  ;;  %v1042_v30 = vadd.f32 %v1040_v21, %v3216_v47  ;;  %v1380_v11 = vstv %s3330_s6  ;;  %v1050_v36 = vstv %s3335_s7  ;;  %v3437_v21 = vld [vmem:[%s2505_s28 + $0x20] sm:$0xff]  ;;  %s2315_s6 = sld [smem:[#allocation2 + $0x65]] }
 0x174   : > { %1343 = vrot.lane.b32.xlu1 %v1339_v37, %s2458_s29  ;;  %v841_v19 = vadd.f32 %v839_v24, %v786_v54  ;;  %v1382_v7 = vmul.f32 %v3168_v34, %v1380_v11  ;;  %v1051_v29 = vmul.f32 %v2856_v63, %v1050_v36  ;;  %v1381_v5 = vmul.f32 %v3148_v31, %v1380_v11  ;;  %s2280_s7 = sld [smem:[#allocation2 + $0xf]] }
 0x175   : > { %v1082_v10 = vpop.permute.xlu2 %1081  ;;  %1331 = vrot.lane.b32.xlu0 %v1326_v1, %s2458_s29  ;;  %v910_v35 = vadd.f32 %v3221_v52, %v842_v43  ;;  %v1368_v40 = vmul.f32 %v3168_v34, %v1366_v15  ;;  %v1408_v42 = vstv %s3362_s8  ;;  %v1056_v37 = vstv %s3366_s10  ;;  %s3582_s8 = sld [smem:[#allocation2 + $0x9b]] }
 0x176   : > { %v3340_v25 = vadd.f32 %v1082_v10, %v1035_v48  ;;  %v974_v0 = vpop.permute.xlu1 %973  ;;  %v909_v47 = vadd.f32 %v3227_v59, %v841_v19  ;;  %v1053_v59 = vadd.f32 %v1051_v29, %v3262_v20  ;;  %v1394_v4 = vstv %s2295_s14  ;;  %s3606_s10 = sld [smem:[#allocation2 + $0x31]] }
 0x177   : > { %v3348_v22 = vadd.f32 %v974_v0, %v895_v44  ;;  %v962_v56 = vpop.permute.xlu0 %961  ;;  %v1409_v48 = vmul.f32 %v3148_v31, %v1408_v42  ;;  %v1026_v15 = vstv %s2260_s15  ;;  %v1058_v16 = vmul.f32 %v2864_v61, %v1056_v37  ;;  %s3613_s14 = sld [smem:[#allocation2 + $0x16]] }
 0x178   : > { %v3355_v8 = vadd.f32 %v962_v56, %v882_v13  ;;  %v1396_v10 = vmul.f32 %v3168_v34, %v1394_v4  ;;  %v1395_v3 = vmul.f32 %v3148_v31, %v1394_v4  ;;  %v1028_v45 = vmul.f32 %v2864_v61, %v1026_v15  ;;  %s3617_s15 = sld [smem:[#allocation2 + $0x60]] }
 0x179   : > { %v1027_v44 = vmul.f32 %v2856_v63, %v1026_v15  ;;  %v1422_v60 = vstv %s3386_s11  ;;  %v1039_v56 = vmul.f32 %v2856_v63, %v1038_v32  ;;  %v1489_v39 = vstv %s3410_s17  ;;  %s3636_s11 = sld [smem:[#allocation2 + $0x4c]] }
 0x17a   : > { %v1030_v46 = vadd.f32 %v1028_v45, %v3312_v27  ;;  %v1424_v0 = vmul.f32 %v3168_v34, %v1422_v60  ;;  %v1423_v49 = vmul.f32 %v3148_v31, %v1422_v60  ;;  %v1410_v27 = vmul.f32 %v3168_v34, %v1408_v42  ;;  %s3661_s17 = sld [smem:[#allocation2 + $0x82]] }
 0x17b   : > { %1371 = vrot.lane.b32.xlu2 %v1367_v55, %s2459_s9  ;;  %v1041_v32 = vadd.f32 %v1039_v56, %v3348_v22  ;;  %v1044_v11 = vstv %s3421_s16  ;;  %v1573_v56 = vstv %s3509_s24  ;;  %s3685_s16 = sld [smem:[#allocation2 + $0x9d]] }
 0x17c   : > { %1359 = vrot.lane.b32.xlu1 %v1354_v17, %s2459_s9  ;;  %v3449_v17 = vld [vmem:[%s2505_s28 + $0x28] sm:$0x3f]  ;;  %v1046_v22 = vmul.f32 %v2864_v61, %v1044_v11  ;;  %s3734_s24 = sld [smem:[#allocation2 + $0x7e]] }
 0x17d   : > { %v1098_v50 = vpop.permute.xlu2 %1097  ;;  %1357 = vrot.lane.b32.xlu0 %v1353_v26, %s2459_s9  ;;  %v1475_v26 = vstv %s3417_s18  ;;  %s2329_s18 = sld [smem:[#allocation2 + $0x67]] }
 0x17e   : > { %v3370_v9 = vadd.f32 %v1098_v50, %v1042_v30  ;;  %v990_v2 = vpop.permute.xlu1 %989  ;;  %v1490_v30 = vmul.f32 %v3437_v21, %v1489_v39 }
 0x17f   : > { %v3374_v41 = vadd.f32 %v990_v2, %v910_v35  ;;  %v988_v23 = vpop.permute.xlu0 %987  ;;  %v1045_v2 = vmul.f32 %v2856_v63, %v1044_v11 }
 0x180   : > { %v3379_v52 = vadd.f32 %v988_v23, %v909_v47  ;;  %v1476_v47 = vmul.f32 %v3437_v21, %v1475_v26 }
 0x181   : > { %v1048_v29 = vadd.f32 %v1046_v22, %v3374_v41  ;;  %v1052_v41 = vmul.f32 %v2864_v61, %v1050_v36 }
 0x183   : > { %1387 = vrot.lane.b32.xlu2 %v1382_v7, %s2459_s9  ;;  %v1503_v7 = vstv %s3440_s19  ;;  %s3688_s19 = sld [smem:[#allocation2 + $0x2d]] }
 0x184   : > { %1385 = vrot.lane.b32.xlu1 %v1381_v5, %s2459_s9 }
 0x185   : > { %v1124_v58 = vpop.permute.xlu2 %1123  ;;  %1373 = vrot.lane.b32.xlu0 %v1368_v40, %s2459_s9  ;;  %v1047_v40 = vadd.f32 %v1045_v2, %v3379_v52  ;;  %v1531_v52 = vstv %s3465_s20  ;;  %s3705_s20 = sld [smem:[#allocation2 + $0x32]] }
 0x186   : > { %v3391_v1 = vadd.f32 %v1124_v58, %v1053_v59  ;;  %v1016_v33 = vpop.permute.xlu1 %1015  ;;  %v1505_v59 = vmul.f32 %v3449_v17, %v1503_v7  ;;  %v1532_v36 = vmul.f32 %v3437_v21, %v1531_v52 }
 0x187   : > { %v3395_v6 = vadd.f32 %v1016_v33, %v3273_v57  ;;  %v1004_v20 = vpop.permute.xlu0 %1003  ;;  %v1060_v57 = vadd.f32 %v1058_v16, %v3300_v51  ;;  %v1029_v51 = vadd.f32 %v1027_v44, %v3321_v14  ;;  %v1034_v14 = vmul.f32 %v2864_v61, %v1032_v38 }
 0x188   : > { %v3401_v62 = vadd.f32 %v1004_v20, %v3277_v12  ;;  %v1504_v33 = vmul.f32 %v3437_v21, %v1503_v7 }
 0x189   : > { %v1036_v43 = vadd.f32 %v1034_v14, %v3355_v8  ;;  %v1244_v14 = vstv %s3513_s25  ;;  %s3754_s25 = sld [smem:[#allocation2 + $0x83]] }
 0x18a   : > { %v1054_v61 = vadd.f32 %v1052_v41, %v3401_v62  ;;  %v1238_v62 = vstv %s3492_s23  ;;  %s3730_s23 = sld [smem:[#allocation2 + $0x4d]] }
 0x18b   : > { %1413 = vrot.lane.b32.xlu2 %v1409_v48, %s2459_s9  ;;  %v1491_v48 = vmul.f32 %v3449_v17, %v1489_v39  ;;  %v1559_v39 = vstv %s2312_s26  ;;  %s3758_s26 = sld [smem:[#allocation2 + $0x99]] }
 0x18c   : > { %1401 = vrot.lane.b32.xlu1 %v1396_v10, %s2459_s9  ;;  %v1560_v11 = vmul.f32 %v3437_v21, %v1559_v39 }
 0x18d   : > { %v1140_v12 = vpop.permute.xlu2 %1139  ;;  %1399 = vrot.lane.b32.xlu0 %v1395_v3, %s2459_s9 }
 0x18e   : > { %v3414_v28 = vadd.f32 %v1140_v12, %v1060_v57  ;;  %v1070_v13 = vpop.permute.xlu1 %1069  ;;  %v1545_v57 = vstv %s3489_s21  ;;  %s2332_s21 = sld [smem:[#allocation2 + $0x17]] }
 0x18f   : > { %v3423_v55 = vadd.f32 %v1070_v13, %v1030_v46  ;;  %v1068_v53 = vpop.permute.xlu0 %1067  ;;  %v1547_v46 = vmul.f32 %v3449_v17, %v1545_v57 }
 0x190   : > { %v3425_v18 = vadd.f32 %v1068_v53, %v1029_v51 }
 0x193   : > { %1429 = vrot.lane.b32.xlu2 %v1424_v0, %s2459_s9  ;;  %v1239_v0 = vmul.f32 %v3148_v31, %v1238_v62 }
 0x194   : > { %1427 = vrot.lane.b32.xlu1 %v1423_v49, %s2459_s9  ;;  %v1546_v49 = vmul.f32 %v3437_v21, %v1545_v57 }
 0x195   : > { %v1166_v54 = vpop.permute.xlu2 %1165  ;;  %1415 = vrot.lane.b32.xlu0 %v1410_v27, %s2459_s9 }
 0x196   : > { %v3445_v24 = vadd.f32 %v1166_v54, %v3340_v25  ;;  %v1096_v38 = vpop.permute.xlu1 %1095  ;;  %v1477_v25 = vmul.f32 %v3449_v17, %v1475_v26 }
 0x197   : > { %v3455_v19 = vadd.f32 %v1096_v38, %v1041_v32  ;;  %v1084_v50 = vpop.permute.xlu0 %1083  ;;  %v1574_v32 = vmul.f32 %v3437_v21, %v1573_v56  ;;  %v1246_v38 = vmul.f32 %v3168_v34, %v1244_v14 }
 0x198   : > { %v3457_v35 = vadd.f32 %v1084_v50, %v1036_v43  ;;  %v1241_v27 = vadd.f32 %v1239_v0, %v3445_v24 }
 0x19b   : > { %1494 = vrot.lane.b32.xlu2 %v1490_v30, %s2458_s29  ;;  %v1561_v30 = vmul.f32 %v3449_v17, %v1559_v39 }
 0x19c   : > { %1482 = vrot.lane.b32.xlu1 %v1477_v25, %s2458_s29  ;;  %v1587_v25 = vstv %s3534_s27  ;;  %s2335_s27 = sld [smem:[#allocation2 + $0x68]] }
 0x19d   : > { %v1182_v8 = vpop.permute.xlu2 %1181  ;;  %1480 = vrot.lane.b32.xlu0 %v1476_v47, %s2458_s29  ;;  %v1256_v47 = vstv %s3538_s30  ;;  %v1589_v2 = vmul.f32 %v3449_v17, %v1587_v25  ;;  %s2300_s30 = sld [smem:[#allocation2 + $0x12]] }
 0x19e   : > { %v3470_v23 = vadd.f32 %v1182_v8, %v3370_v9  ;;  %v1112_v5 = vpop.permute.xlu1 %1111  ;;  %v1057_v9 = vmul.f32 %v2856_v63, %v1056_v37  ;;  %v1517_v37 = vstv %s2309_s22  ;;  %s3709_s22 = sld [smem:[#allocation2 + $0x48]] }
 0x19f   : > { %v3475_v42 = vadd.f32 %v1112_v5, %v1048_v29  ;;  %v1110_v58 = vpop.permute.xlu0 %1109  ;;  %v1519_v44 = vmul.f32 %v3449_v17, %v1517_v37  ;;  %v1588_v5 = vmul.f32 %v3437_v21, %v1587_v25 }
 0x1a0   : > { %v3477_v4 = vadd.f32 %v1110_v58, %v1047_v40  ;;  %v1059_v63 = vadd.f32 %v1057_v9, %v3395_v6  ;;  %v1248_v50 = vadd.f32 %v1246_v38, %v3470_v23  ;;  %v1257_v23 = vmul.f32 %v3148_v31, %v1256_v47 }
 0x1a1   : > { %v1575_v40 = vmul.f32 %v3449_v17, %v1573_v56  ;;  %v1615_v58 = vstv %s3558_s4  ;;  %v1695_v56 = vstv %s3606_s10  ;;  %s3778_s4 = sld [smem:[#allocation2 + $0x9e]] }
 0x1a2   : > { %v1616_v41 = vmul.f32 %v3437_v21, %v1615_v58  ;;  %s2349_s10 = sld [smem:[#allocation2 + $0x6a]] }
 0x1a3   : > { %1510 = vrot.lane.b32.xlu2 %v1505_v59, %s2458_s29 }
 0x1a4   : > { %1508 = vrot.lane.b32.xlu1 %v1504_v33, %s2458_s29  ;;  %v1262_v33 = vstv %s3562_s5  ;;  %s3802_s5 = sld [smem:[#allocation2 + $0x34]] }
 0x1a5   : > { %v1208_v15 = vpop.permute.xlu2 %1207  ;;  %1496 = vrot.lane.b32.xlu0 %v1491_v48, %s2458_s29  ;;  %v1601_v48 = vstv %s2315_s6  ;;  %s3809_s6 = sld [smem:[#allocation2 + $0x19]] }
 0x1a6   : > { %v3496_v20 = vadd.f32 %v1208_v15, %v3391_v1  ;;  %v1138_v16 = vpop.permute.xlu1 %1137  ;;  %v1518_v1 = vmul.f32 %v3437_v21, %v1517_v37 }
 0x1a7   : > { %v3501_v10 = vadd.f32 %v1138_v16, %v1059_v63  ;;  %v1126_v3 = vpop.permute.xlu0 %1125  ;;  %v1264_v63 = vmul.f32 %v3168_v34, %v1262_v33  ;;  %v1603_v16 = vmul.f32 %v3449_v17, %v1601_v48 }
 0x1a8   : > { %v3503_v45 = vadd.f32 %v1126_v3, %v1054_v61  ;;  %v1259_v59 = vadd.f32 %v1257_v23, %v3496_v20  ;;  %v1602_v61 = vmul.f32 %v3437_v21, %v1601_v48 }
 0x1ab   : > { %1536 = vrot.lane.b32.xlu2 %v1532_v36, %s2458_s29 }
 0x1ac   : > { %1524 = vrot.lane.b32.xlu1 %v1519_v44, %s2458_s29  ;;  %v1629_v44 = vstv %s3582_s8  ;;  %s3832_s8 = sld [smem:[#allocation2 + $0x4f]] }
 0x1ad   : > { %v1224_v6 = vpop.permute.xlu2 %1223  ;;  %1522 = vrot.lane.b32.xlu0 %v1518_v1, %s2458_s29 }
 0x1ae   : > { %v3517_v60 = vadd.f32 %v1224_v6, %v3414_v28  ;;  %v1154_v12 = vpop.permute.xlu1 %1153  ;;  %v1533_v28 = vmul.f32 %v3449_v17, %v1531_v52  ;;  %v1232_v52 = vstv %s2280_s7  ;;  %s3813_s7 = sld [smem:[#allocation2 + $0x63]] }
 0x1af   : > { %v3521_v13 = vadd.f32 %v1154_v12, %v3423_v55  ;;  %v1152_v51 = vpop.permute.xlu0 %1151  ;;  %v1234_v36 = vmul.f32 %v3168_v34, %v1232_v52  ;;  %v1233_v3 = vmul.f32 %v3148_v31, %v1232_v52  ;;  %v1631_v12 = vmul.f32 %v3449_v17, %v1629_v44 }
 0x1b0   : > { %v3527_v53 = vadd.f32 %v1152_v51, %v3425_v18 }
 0x1b1   : > { %v1236_v57 = vadd.f32 %v1234_v36, %v3521_v13  ;;  %v1617_v13 = vmul.f32 %v3449_v17, %v1615_v58 }
 0x1b3   : > { %1552 = vrot.lane.b32.xlu2 %v1547_v46, %s2458_s29 }
 0x1b4   : > { %1550 = vrot.lane.b32.xlu1 %v1546_v49, %s2458_s29  ;;  %v1630_v49 = vmul.f32 %v3437_v21, %v1629_v44 }
 0x1b5   : > { %v1288_v55 = vpop.permute.xlu2 %1287  ;;  %1538 = vrot.lane.b32.xlu0 %v1533_v28, %s2458_s29  ;;  %v1245_v28 = vmul.f32 %v3148_v31, %v1244_v14 }
 0x1b6   : > { %v3541_v18 = vadd.f32 %v1288_v55, %v1241_v27  ;;  %v1180_v54 = vpop.permute.xlu1 %1179  ;;  %v3633_v27 = vld [vmem:[%s2505_s28 + $0x21] sm:$0xff] }
 0x1b7   : > { %v3545_v24 = vadd.f32 %v1180_v54, %v3455_v19  ;;  %v1168_v26 = vpop.permute.xlu0 %1167  ;;  %v3645_v54 = vld [vmem:[%s2505_s28 + $0x29] sm:$0x3f]  ;;  %v1696_v38 = vmul.f32 %v3633_v27, %v1695_v56 }
 0x1b8   : > { %v3551_v43 = vadd.f32 %v1168_v26, %v3457_v35 }
 0x1b9   : > { %v1247_v14 = vadd.f32 %v1245_v28, %v3545_v24  ;;  %v1779_v28 = vstv %s3705_s20  ;;  %s3954_s20 = sld [smem:[#allocation2 + $0x9c]] }
 0x1bb   : > { %1578 = vrot.lane.b32.xlu2 %v1574_v32, %s2459_s9  ;;  %v1681_v32 = vstv %s3613_s14  ;;  %s3881_s14 = sld [smem:[#allocation2 + $0xa0]] }
 0x1bc   : > { %1566 = vrot.lane.b32.xlu1 %v1561_v30, %s2459_s9  ;;  %v1250_v30 = vstv %s3617_s15  ;;  %s3884_s15 = sld [smem:[#allocation2 + $0x30]] }
 0x1bd   : > { %v1304_v19 = vpop.permute.xlu2 %1303  ;;  %1564 = vrot.lane.b32.xlu0 %v1560_v11, %s2459_s9  ;;  %v1252_v24 = vmul.f32 %v3168_v34, %v1250_v30 }
 0x1be   : > { %v3565_v35 = vadd.f32 %v1304_v19, %v1248_v50  ;;  %v1196_v22 = vpop.permute.xlu1 %1195  ;;  %v1682_v19 = vmul.f32 %v3633_v27, %v1681_v32 }
 0x1bf   : > { %v3569_v7 = vadd.f32 %v1196_v22, %v3475_v42  ;;  %v1194_v8 = vpop.permute.xlu0 %1193  ;;  %v1251_v22 = vmul.f32 %v3148_v31, %v1250_v30 }
 0x1c0   : > { %v3575_v29 = vadd.f32 %v1194_v8, %v3477_v4 }
 0x1c1   : > { %v1254_v23 = vadd.f32 %v1252_v24, %v3569_v7  ;;  %v1258_v7 = vmul.f32 %v3168_v34, %v1256_v47 }
 0x1c3   : > { %1594 = vrot.lane.b32.xlu2 %v1589_v2, %s2459_s9  ;;  %v1709_v2 = vstv %s3636_s11  ;;  %s3901_s11 = sld [smem:[#allocation2 + $0x35]] }
 0x1c4   : > { %1592 = vrot.lane.b32.xlu1 %v1588_v5, %s2459_s9 }
 0x1c5   : > { %v1330_v42 = vpop.permute.xlu2 %1329  ;;  %1580 = vrot.lane.b32.xlu0 %v1575_v40, %s2459_s9  ;;  %v1253_v40 = vadd.f32 %v1251_v22, %v3575_v29  ;;  %v1737_v29 = vstv %s3661_s17  ;;  %s3905_s17 = sld [smem:[#allocation2 + $0x4b]] }
 0x1c6   : > { %v3587_v4 = vadd.f32 %v1330_v42, %v1259_v59  ;;  %v1222_v9 = vpop.permute.xlu1 %1221  ;;  %v1711_v59 = vmul.f32 %v3645_v54, %v1709_v2  ;;  %v1738_v47 = vmul.f32 %v3633_v27, %v1737_v29 }
 0x1c7   : > { %v3591_v15 = vadd.f32 %v1222_v9, %v3501_v10  ;;  %v1210_v20 = vpop.permute.xlu0 %1209  ;;  %v1266_v10 = vadd.f32 %v1264_v63, %v3517_v60  ;;  %v1235_v60 = vadd.f32 %v1233_v3, %v3527_v53  ;;  %v1240_v53 = vmul.f32 %v3168_v34, %v1238_v62 }
 0x1c8   : > { %v3597_v37 = vadd.f32 %v1210_v20, %v3503_v45  ;;  %v1710_v9 = vmul.f32 %v3633_v27, %v1709_v2 }
 0x1c9   : > { %v1242_v26 = vadd.f32 %v1240_v53, %v3551_v43  ;;  %v1451_v53 = vstv %s3709_s22  ;;  %s2355_s22 = sld [smem:[#allocation2 + $0x6b]] }
 0x1ca   : > { %v1260_v34 = vadd.f32 %v1258_v7, %v3597_v37  ;;  %v1445_v37 = vstv %s3688_s19  ;;  %s3930_s19 = sld [smem:[#allocation2 + $0x81]] }
 0x1cb   : > { %1620 = vrot.lane.b32.xlu2 %v1616_v41, %s2459_s9  ;;  %v1697_v41 = vmul.f32 %v3645_v54, %v1695_v56  ;;  %v1765_v56 = vstv %s2332_s21  ;;  %s2320_s21 = sld [smem:[#allocation2 + $0x15]] }
 0x1cc   : > { %1608 = vrot.lane.b32.xlu1 %v1603_v16, %s2459_s9  ;;  %v1766_v30 = vmul.f32 %v3633_v27, %v1765_v56 }
 0x1cd   : > { %v1346_v45 = vpop.permute.xlu2 %1345  ;;  %1606 = vrot.lane.b32.xlu0 %v1602_v61, %s2459_s9 }
 0x1ce   : > { %v3610_v1 = vadd.f32 %v1346_v45, %v1266_v10  ;;  %v1276_v6 = vpop.permute.xlu1 %1275  ;;  %v1751_v10 = vstv %s3685_s16  ;;  %s3926_s16 = sld [smem:[#allocation2 + $0x50]] }
 0x1cf   : > { %v3619_v46 = vadd.f32 %v1276_v6, %v1236_v57  ;;  %v1274_v51 = vpop.permute.xlu0 %1273  ;;  %v1753_v57 = vmul.f32 %v3645_v54, %v1751_v10 }
 0x1d0   : > { %v3621_v0 = vadd.f32 %v1274_v51, %v1235_v60 }
 0x1d3   : > { %1636 = vrot.lane.b32.xlu2 %v1631_v12, %s2459_s9  ;;  %v1446_v12 = vmul.f32 %v3437_v21, %v1445_v37 }
 0x1d4   : > { %1634 = vrot.lane.b32.xlu1 %v1630_v49, %s2459_s9  ;;  %v1752_v49 = vmul.f32 %v3633_v27, %v1751_v10 }
 0x1d5   : > { %v1372_v55 = vpop.permute.xlu2 %1371  ;;  %1622 = vrot.lane.b32.xlu0 %v1617_v13, %s2459_s9 }
 0x1d6   : > { %v3641_v39 = vadd.f32 %v1372_v55, %v3541_v18  ;;  %v1302_v62 = vpop.permute.xlu1 %1301  ;;  %v1683_v18 = vmul.f32 %v3645_v54, %v1681_v32 }
 0x1d7   : > { %v3651_v11 = vadd.f32 %v1302_v62, %v1247_v14  ;;  %v1290_v50 = vpop.permute.xlu0 %1289  ;;  %v1780_v14 = vmul.f32 %v3633_v27, %v1779_v28  ;;  %v1453_v62 = vmul.f32 %v3449_v17, %v1451_v53 }
 0x1d8   : > { %v3653_v25 = vadd.f32 %v1290_v50, %v1242_v26  ;;  %v1448_v13 = vadd.f32 %v1446_v12, %v3641_v39 }
 0x1db   : > { %1700 = vrot.lane.b32.xlu2 %v1696_v38, %s2458_s29  ;;  %v1767_v38 = vmul.f32 %v3645_v54, %v1765_v56 }
 0x1dc   : > { %1688 = vrot.lane.b32.xlu1 %v1683_v18, %s2458_s29  ;;  %v1793_v18 = vstv %s3730_s23  ;;  %s3970_s23 = sld [smem:[#allocation2 + $0xa1]] }
 0x1dd   : > { %v1388_v43 = vpop.permute.xlu2 %1387  ;;  %1686 = vrot.lane.b32.xlu0 %v1682_v19, %s2458_s29  ;;  %v1463_v19 = vstv %s3734_s24  ;;  %v1795_v22 = vmul.f32 %v3645_v54, %v1793_v18  ;;  %s2323_s24 = sld [smem:[#allocation2 + $0x66]] }
 0x1de   : > { %v3666_v8 = vadd.f32 %v1388_v43, %v3565_v35  ;;  %v1318_v5 = vpop.permute.xlu1 %1317  ;;  %v1263_v35 = vmul.f32 %v3148_v31, %v1262_v33  ;;  %v1723_v33 = vstv %s2329_s18  ;;  %s2352_s18 = sld [smem:[#allocation2 + $0x1a]] }
 0x1df   : > { %v3671_v58 = vadd.f32 %v1318_v5, %v1254_v23  ;;  %v1316_v42 = vpop.permute.xlu0 %1315  ;;  %v1725_v3 = vmul.f32 %v3645_v54, %v1723_v33  ;;  %v1794_v5 = vmul.f32 %v3633_v27, %v1793_v18 }
 0x1e0   : > { %v3673_v48 = vadd.f32 %v1316_v42, %v1253_v40  ;;  %v1265_v31 = vadd.f32 %v1263_v35, %v3591_v15  ;;  %v1455_v50 = vadd.f32 %v1453_v62, %v3666_v8  ;;  %v1464_v8 = vmul.f32 %v3437_v21, %v1463_v19 }
 0x1e1   : > { %v1781_v40 = vmul.f32 %v3645_v54, %v1779_v28  ;;  %v1821_v42 = vstv %s3754_s25  ;;  %v1901_v28 = vstv %s3802_s5  ;;  %s4049_s25 = sld [smem:[#allocation2 + $0x4e]] }
 0x1e2   : > { %v1822_v7 = vmul.f32 %v3633_v27, %v1821_v42 }
 0x1e3   : > { %1716 = vrot.lane.b32.xlu2 %v1711_v59, %s2458_s29 }
 0x1e4   : > { %1714 = vrot.lane.b32.xlu1 %v1710_v9, %s2458_s29  ;;  %v1469_v9 = vstv %s3758_s26  ;;  %s4051_s26 = sld [smem:[#allocation4 + $0x1]] }
 0x1e5   : > { %v1414_v52 = vpop.permute.xlu2 %1413  ;;  %1702 = vrot.lane.b32.xlu0 %v1697_v41, %s2458_s29  ;;  %v1807_v41 = vstv %s2335_s27  ;;  %s4058_s27 = sld [smem:[#allocation2 + $0x84]] }
 0x1e6   : > { %v3692_v20 = vadd.f32 %v1414_v52, %v3587_v4  ;;  %v1344_v63 = vpop.permute.xlu1 %1343  ;;  %v1724_v4 = vmul.f32 %v3633_v27, %v1723_v33 }
 0x1e7   : > { %v3697_v16 = vadd.f32 %v1344_v63, %v1265_v31  ;;  %v1332_v61 = vpop.permute.xlu0 %1331  ;;  %v1471_v31 = vmul.f32 %v3449_v17, %v1469_v9  ;;  %v1809_v63 = vmul.f32 %v3645_v54, %v1807_v41 }
 0x1e8   : > { %v3699_v36 = vadd.f32 %v1332_v61, %v1260_v34  ;;  %v1466_v59 = vadd.f32 %v1464_v8, %v3692_v20  ;;  %v1808_v34 = vmul.f32 %v3633_v27, %v1807_v41 }
 0x1eb   : > { %1742 = vrot.lane.b32.xlu2 %v1738_v47, %s2458_s29 }
 0x1ec   : > { %1730 = vrot.lane.b32.xlu1 %v1725_v3, %s2458_s29  ;;  %v1835_v3 = vstv %s3778_s4  ;;  %s4062_s4 = sld [smem:[#allocation4 + $0x2]] }
 0x1ed   : > { %v1430_v15 = vpop.permute.xlu2 %1429  ;;  %1728 = vrot.lane.b32.xlu0 %v1724_v4, %s2458_s29 }
 0x1ee   : > { %v3713_v44 = vadd.f32 %v1430_v15, %v3610_v1  ;;  %v1360_v45 = vpop.permute.xlu1 %1359  ;;  %v1739_v1 = vmul.f32 %v3645_v54, %v1737_v29  ;;  %v1439_v29 = vstv %s2300_s30  ;;  %s2376_s30 = smul.u32 96, %s4281_s13  ;;  %s4082_s13 = sld [smem:[#allocation2 + $0x9f]] }
 0x1ef   : > { %v3717_v6 = vadd.f32 %v1360_v45, %v3619_v46  ;;  %v1358_v60 = vpop.permute.xlu0 %1357  ;;  %v1441_v47 = vmul.f32 %v3449_v17, %v1439_v29  ;;  %v1440_v61 = vmul.f32 %v3437_v21, %v1439_v29  ;;  %v1837_v45 = vmul.f32 %v3645_v54, %v1835_v3 }
 0x1f0   : > { %v3723_v51 = vadd.f32 %v1358_v60, %v3621_v0 }
 0x1f1   : > { %v1443_v10 = vadd.f32 %v1441_v47, %v3717_v6  ;;  %v1823_v6 = vmul.f32 %v3645_v54, %v1821_v42 }
 0x1f3   : > { %1758 = vrot.lane.b32.xlu2 %v1753_v57, %s2458_s29 }
 0x1f4   : > { %1756 = vrot.lane.b32.xlu1 %v1752_v49, %s2458_s29  ;;  %v1836_v49 = vmul.f32 %v3633_v27, %v1835_v3 }
 0x1f5   : > { %v1495_v46 = vpop.permute.xlu2 %1494  ;;  %1744 = vrot.lane.b32.xlu0 %v1739_v1, %s2458_s29  ;;  %v1452_v1 = vmul.f32 %v3437_v21, %v1451_v53 }
 0x1f6   : > { %v3737_v0 = vadd.f32 %v1495_v46, %v1448_v13  ;;  %v1386_v55 = vpop.permute.xlu1 %1385  ;;  %v3829_v13 = vld [vmem:[%s2505_s28 + $0x22] sm:$0xff] }
 0x1f7   : > { %v3741_v39 = vadd.f32 %v1386_v55, %v3651_v11  ;;  %v1374_v32 = vpop.permute.xlu0 %1373  ;;  %v3841_v55 = vld [vmem:[%s2505_s28 + $0x2a] sm:$0x3f]  ;;  %v1902_v62 = vmul.f32 %v3829_v13, %v1901_v28  ;;  %s3857_s28 = sld [smem:[#allocation2 + $0x85]] }
 0x1f8   : > { %v3747_v26 = vadd.f32 %v1374_v32, %v3653_v25 }
 0x1f9   : > { %v1454_v53 = vadd.f32 %v1452_v1, %v3741_v39  ;;  %v1985_v1 = vstv %s3901_s11  ;;  %s2364_s11 = sld [smem:[#allocation4 + $0x3]] }
 0x1fb   : > { %1784 = vrot.lane.b32.xlu2 %v1780_v14, %s2459_s9  ;;  %v1887_v14 = vstv %s3809_s6 }
 0x1fc   : > { %1772 = vrot.lane.b32.xlu1 %v1767_v38, %s2459_s9  ;;  %v1457_v38 = vstv %s3813_s7  ;;  %s4071_s7 = scalar_lea.vmem %s4191_s3, %s2376_s30 }
 0x1fd   : > { %v1511_v11 = vpop.permute.xlu2 %1510  ;;  %1770 = vrot.lane.b32.xlu0 %v1766_v30, %s2459_s9  ;;  %v1459_v39 = vmul.f32 %v3449_v17, %v1457_v38 }
 0x1fe   : > { %v3761_v25 = vadd.f32 %v1511_v11, %v1455_v50  ;;  %v1402_v24 = vpop.permute.xlu1 %1401  ;;  %v1888_v11 = vmul.f32 %v3829_v13, %v1887_v14 }
 0x1ff   : > { %v3765_v2 = vadd.f32 %v1402_v24, %v3671_v58  ;;  %v1400_v43 = vpop.permute.xlu0 %1399  ;;  %v1458_v24 = vmul.f32 %v3437_v21, %v1457_v38 }
 0x200   : > { %v3771_v23 = vadd.f32 %v1400_v43, %v3673_v48 }
 0x201   : > { %v1461_v8 = vadd.f32 %v1459_v39, %v3765_v2  ;;  %v1465_v2 = vmul.f32 %v3449_v17, %v1463_v19 }
 0x203   : > { %1800 = vrot.lane.b32.xlu2 %v1795_v22, %s2459_s9  ;;  %v1915_v22 = vstv %s3832_s8  ;;  %s2340_s8 = sld [smem:[#allocation2 + $0x18]] }
 0x204   : > { %1798 = vrot.lane.b32.xlu1 %v1794_v5, %s2459_s9 }
 0x205   : > { %v1537_v58 = vpop.permute.xlu2 %1536  ;;  %1786 = vrot.lane.b32.xlu0 %v1781_v40, %s2459_s9  ;;  %v1460_v40 = vadd.f32 %v1458_v24, %v3771_v23  ;;  %v1943_v23 = vstv %s3857_s28  ;;  %s4085_s28 = sld [smem:[#allocation4 + $0x4]] }
 0x206   : > { %v3783_v48 = vadd.f32 %v1537_v58, %v1466_v59  ;;  %v1428_v35 = vpop.permute.xlu1 %1427  ;;  %v1917_v59 = vmul.f32 %v3841_v55, %v1915_v22  ;;  %v1944_v19 = vmul.f32 %v3829_v13, %v1943_v23 }
 0x207   : > { %v3787_v52 = vadd.f32 %v1428_v35, %v3697_v16  ;;  %v1416_v20 = vpop.permute.xlu0 %1415  ;;  %v1473_v16 = vadd.f32 %v1471_v31, %v3713_v44  ;;  %v1442_v44 = vadd.f32 %v1440_v61, %v3723_v51  ;;  %v1447_v51 = vmul.f32 %v3449_v17, %v1445_v37 }
 0x208   : > { %v3793_v33 = vadd.f32 %v1416_v20, %v3699_v36  ;;  %v1916_v35 = vmul.f32 %v3829_v13, %v1915_v22 }
 0x209   : > { %v1449_v32 = vadd.f32 %v1447_v51, %v3747_v26  ;;  %v1657_v51 = vstv %s3905_s17 }
 0x20a   : > { %v1467_v17 = vadd.f32 %v1465_v2, %v3793_v33  ;;  %v1651_v33 = vstv %s3884_s15  ;;  %s4121_s15 = sld [smem:[#allocation2 + $0x69]] }
 0x20b   : > { %1826 = vrot.lane.b32.xlu2 %v1822_v7, %s2459_s9  ;;  %v1903_v7 = vmul.f32 %v3841_v55, %v1901_v28  ;;  %v1971_v28 = vstv %s2352_s18 }
 0x20c   : > { %1814 = vrot.lane.b32.xlu1 %v1809_v63, %s2459_s9  ;;  %v1972_v38 = vmul.f32 %v3829_v13, %v1971_v28 }
 0x20d   : > { %v1553_v36 = vpop.permute.xlu2 %1552  ;;  %1812 = vrot.lane.b32.xlu0 %v1808_v34, %s2459_s9 }
 0x20e   : > { %v3806_v4 = vadd.f32 %v1553_v36, %v1473_v16  ;;  %v1483_v15 = vpop.permute.xlu1 %1482  ;;  %v1957_v16 = vstv %s3881_s14  ;;  %s2054_s14 = sld [smem:[#allocation4]] }
 0x20f   : > { %v3815_v57 = vadd.f32 %v1483_v15, %v1443_v10  ;;  %v1481_v60 = vpop.permute.xlu0 %1480  ;;  %v1959_v10 = vmul.f32 %v3841_v55, %v1957_v16 }
 0x210   : > { %v3817_v12 = vadd.f32 %v1481_v60, %v1442_v44 }
 0x213   : > { %1842 = vrot.lane.b32.xlu2 %v1837_v45, %s2459_s9  ;;  %v1652_v45 = vmul.f32 %v3633_v27, %v1651_v33 }
 0x214   : > { %1840 = vrot.lane.b32.xlu1 %v1836_v49, %s2459_s9  ;;  %v1958_v49 = vmul.f32 %v3829_v13, %v1957_v16 }
 0x215   : > { %v1579_v46 = vpop.permute.xlu2 %1578  ;;  %1828 = vrot.lane.b32.xlu0 %v1823_v6, %s2459_s9 }
 0x216   : > { %v3837_v56 = vadd.f32 %v1579_v46, %v3737_v0  ;;  %v1509_v37 = vpop.permute.xlu1 %1508  ;;  %v1889_v0 = vmul.f32 %v3841_v55, %v1887_v14 }
 0x217   : > { %v3847_v30 = vadd.f32 %v1509_v37, %v1454_v53  ;;  %v1497_v50 = vpop.permute.xlu0 %1496  ;;  %v1986_v53 = vmul.f32 %v3829_v13, %v1985_v1  ;;  %v1659_v37 = vmul.f32 %v3645_v54, %v1657_v51 }
 0x218   : > { %v3849_v18 = vadd.f32 %v1497_v50, %v1449_v32  ;;  %v1654_v6 = vadd.f32 %v1652_v45, %v3837_v56 }
 0x21b   : > { %1906 = vrot.lane.b32.xlu2 %v1902_v62, %s2458_s29  ;;  %v1973_v62 = vmul.f32 %v3841_v55, %v1971_v28 }
 0x21c   : > { %1894 = vrot.lane.b32.xlu1 %v1889_v0, %s2458_s29  ;;  %v1999_v0 = vstv %s3926_s16 }
 0x21d   : > { %v1595_v26 = vpop.permute.xlu2 %1594  ;;  %1892 = vrot.lane.b32.xlu0 %v1888_v11, %s2458_s29  ;;  %v1669_v11 = vstv %s3930_s19  ;;  %v2001_v24 = vmul.f32 %v3841_v55, %v1999_v0 }
 0x21e   : > { %v3862_v43 = vadd.f32 %v1595_v26, %v3761_v25  ;;  %v1525_v5 = vpop.permute.xlu1 %1524  ;;  %v1470_v25 = vmul.f32 %v3437_v21, %v1469_v9  ;;  %v1929_v9 = vstv %s2349_s10  ;;  %s4101_s10 = sld [smem:[#allocation4 + $0x5]] }
 0x21f   : > { %v3867_v42 = vadd.f32 %v1525_v5, %v1461_v8  ;;  %v1523_v58 = vpop.permute.xlu0 %1522  ;;  %v1931_v61 = vmul.f32 %v3841_v55, %v1929_v9  ;;  %v2000_v5 = vmul.f32 %v3829_v13, %v1999_v0 }
 0x220   : > { %v3869_v41 = vadd.f32 %v1523_v58, %v1460_v40  ;;  %v1472_v21 = vadd.f32 %v1470_v25, %v3787_v52  ;;  %v1661_v50 = vadd.f32 %v1659_v37, %v3862_v43  ;;  %v1670_v43 = vmul.f32 %v3633_v27, %v1669_v11 }
 0x221   : > { %v1987_v40 = vmul.f32 %v3841_v55, %v1985_v1 }
 0x223   : > { %1922 = vrot.lane.b32.xlu2 %v1917_v59, %s2458_s29 }
 0x224   : > { %1920 = vrot.lane.b32.xlu1 %v1916_v35, %s2458_s29  ;;  %v1675_v35 = vstv %s3954_s20 }
 0x225   : > { %v1621_v29 = vpop.permute.xlu2 %1620  ;;  %1908 = vrot.lane.b32.xlu0 %v1903_v7, %s2458_s29 }
 0x226   : > { %v3888_v20 = vadd.f32 %v1621_v29, %v3783_v48  ;;  %v1551_v31 = vpop.permute.xlu1 %1550  ;;  %v1930_v48 = vmul.f32 %v3829_v13, %v1929_v9 }
 0x227   : > { %v3893_v63 = vadd.f32 %v1551_v31, %v1472_v21  ;;  %v1539_v34 = vpop.permute.xlu0 %1538  ;;  %v1677_v21 = vmul.f32 %v3645_v54, %v1675_v35 }
 0x228   : > { %v3895_v47 = vadd.f32 %v1539_v34, %v1467_v17  ;;  %v1672_v59 = vadd.f32 %v1670_v43, %v3888_v20 }
 0x22b   : > { %1948 = vrot.lane.b32.xlu2 %v1944_v19, %s2458_s29 }
 0x22c   : > { %1936 = vrot.lane.b32.xlu1 %v1931_v61, %s2458_s29 }
 0x22d   : > { %v1637_v52 = vpop.permute.xlu2 %1636  ;;  %1934 = vrot.lane.b32.xlu0 %v1930_v48, %s2458_s29  ;;  %v2041_v48 = vstv %s3970_s23 }
 0x22e   : > { %v3909_v3 = vadd.f32 %v1637_v52, %v3806_v4  ;;  %v1567_v36 = vpop.permute.xlu1 %1566  ;;  %v1945_v4 = vmul.f32 %v3841_v55, %v1943_v23  ;;  %v1645_v23 = vstv %s2320_s21 }
 0x22f   : > { %v3913_v15 = vadd.f32 %v1567_v36, %v3815_v57  ;;  %v1565_v44 = vpop.permute.xlu0 %1564  ;;  %v1647_v19 = vmul.f32 %v3645_v54, %v1645_v23  ;;  %v1646_v34 = vmul.f32 %v3633_v27, %v1645_v23 }
 0x230   : > { %v3919_v60 = vadd.f32 %v1565_v44, %v3817_v12  ;;  %v1679_v61 = vadd.f32 %v1677_v21, %v3909_v3 }
 0x231   : > { %v1649_v16 = vadd.f32 %v1647_v19, %v3913_v15  ;;  %v1653_v15 = vmul.f32 %v3645_v54, %v1651_v33 }
 0x232   : > { %v1648_v36 = vadd.f32 %v1646_v34, %v3919_v60 }
 0x233   : > { %1964 = vrot.lane.b32.xlu2 %v1959_v10, %s2458_s29  ;;  %v2043_v10 = vmul.f32 %v3841_v55, %v2041_v48 }
 0x234   : > { %1962 = vrot.lane.b32.xlu1 %v1958_v49, %s2458_s29  ;;  %v2042_v49 = vmul.f32 %v3829_v13, %v2041_v48  ;;  %v1863_v48 = vstv %s4049_s25 }
 0x235   : > { %v1701_v57 = vpop.permute.xlu2 %1700  ;;  %1950 = vrot.lane.b32.xlu0 %v1945_v4, %s2458_s29  ;;  %s3950_s29 = sld [smem:[#allocation2 + $0x86]] }
 0x236   : > { %v3933_v12 = vadd.f32 %v1701_v57, %v1654_v6  ;;  %v1593_v46 = vpop.permute.xlu1 %1592  ;;  %v1658_v6 = vmul.f32 %v3633_v27, %v1657_v51 }
 0x237   : > { %v3937_v56 = vadd.f32 %v1593_v46, %v3847_v30  ;;  %v1581_v14 = vpop.permute.xlu0 %1580  ;;  %v1663_v46 = vstv %s2323_s24 }
 0x238   : > { %v3943_v32 = vadd.f32 %v1581_v14, %v3849_v18  ;;  %v1665_v37 = vmul.f32 %v3645_v54, %v1663_v46  ;;  %v1664_v33 = vmul.f32 %v3633_v27, %v1663_v46 }
 0x239   : > { %v1660_v1 = vadd.f32 %v1658_v6, %v3937_v56  ;;  %v1875_v6 = vstv %s4058_s27 }
 0x23a   : > { %v1655_v28 = vadd.f32 %v1653_v15, %v3943_v32  ;;  %v1676_v32 = vmul.f32 %v3633_v27, %v1675_v35 }
 0x23b   : > { %1990 = vrot.lane.b32.xlu2 %v1986_v53, %s2459_s9  ;;  %v2027_v58 = vstv %s3950_s29 }
 0x23c   : > { %1978 = vrot.lane.b32.xlu1 %v1973_v62, %s2459_s9  ;;  %v2028_v2 = vmul.f32 %v3829_v13, %v2027_v58  ;;  %v2029_v4 = vmul.f32 %v3841_v55, %v2027_v58 }
 0x23d   : > { %v1717_v30 = vpop.permute.xlu2 %1716  ;;  %1976 = vrot.lane.b32.xlu0 %v1972_v38, %s2459_s9 }
 0x23e   : > { %v3957_v18 = vadd.f32 %v1717_v30, %v1661_v50  ;;  %v1609_v39 = vpop.permute.xlu1 %1608 }
 0x23f   : > { %v1613_v22 = vadd.f32 %v1609_v39, %v3867_v42  ;;  %v1607_v26 = vpop.permute.xlu0 %1606 }
 0x240   : > { %v1612_v8 = vadd.f32 %v1607_v26, %v3869_v41  ;;  %v2013_v41 = vstv %s2355_s22 }
 0x241   : > { %v2015_v31 = vmul.f32 %v3841_v55, %v2013_v41  ;;  %v2014_v17 = vmul.f32 %v3829_v13, %v2013_v41  ;;  %v1667_v38 = vadd.f32 %v1665_v37, %v1613_v22 }
 0x242   : > { %v1666_v0 = vadd.f32 %v1664_v33, %v1612_v8 }
 0x243   : > { %2006 = vrot.lane.b32.xlu2 %v2001_v24, %s2459_s9  ;;  %v1671_v24 = vmul.f32 %v3645_v54, %v1669_v11 }
 0x244   : > { %2004 = vrot.lane.b32.xlu1 %v2000_v5, %s2459_s9 }
 0x245   : > { %v1743_v42 = vpop.permute.xlu2 %1742  ;;  %1992 = vrot.lane.b32.xlu0 %v1987_v40, %s2459_s9 }
 0x246   : > { %v3975_v7 = vadd.f32 %v1743_v42, %v1672_v59  ;;  %v1635_v25 = vpop.permute.xlu1 %1634 }
 0x247   : > { %v1640_v29 = vadd.f32 %v1635_v25, %v3893_v63  ;;  %v1623_v20 = vpop.permute.xlu0 %1622 }
 0x248   : > { %v1627_v9 = vadd.f32 %v1623_v20, %v3895_v47 }
 0x249   : > { %v1678_v43 = vadd.f32 %v1676_v32, %v1640_v29 }
 0x24a   : > { %v1673_v40 = vadd.f32 %v1671_v24, %v1627_v9 }
 0x24b   : > { %2032 = vrot.lane.b32.xlu2 %v2028_v2, %s2459_s9 }
 0x24c   : > { %2020 = vrot.lane.b32.xlu1 %v2015_v31, %s2459_s9 }
 0x24d   : > { %v1759_v63 = vpop.permute.xlu2 %1758  ;;  %2018 = vrot.lane.b32.xlu0 %v2014_v17, %s2459_s9 }
 0x24e   : > { %v3990_v47 = vadd.f32 %v1759_v63, %v1679_v61  ;;  %v1689_v52 = vpop.permute.xlu1 %1688 }
 0x24f   : > { %v3995_v44 = vadd.f32 %v1689_v52, %v1649_v16  ;;  %v1687_v3 = vpop.permute.xlu0 %1686  ;;  %v2063_v16 = vstv %s4051_s26 }
 0x250   : > { %v3997_v45 = vadd.f32 %v1687_v3, %v1648_v36  ;;  %v1865_v36 = vmul.f32 %v3841_v55, %v1863_v48 }
 0x253   : > { %2048 = vrot.lane.b32.xlu2 %v2043_v10, %s2459_s9 }
 0x254   : > { %2046 = vrot.lane.b32.xlu1 %v2042_v49, %s2459_s9 }
 0x255   : > { %v1785_v60 = vpop.permute.xlu2 %1784  ;;  %2034 = vrot.lane.b32.xlu0 %v2029_v4, %s2459_s9  ;;  %s4042_s9 = sld [smem:[#allocation2 + $0x33]] }
 0x256   : > { %v1715_v57 = vpop.permute.xlu1 %1714  ;;  %v1790_v31 = vadd.f32 %v1785_v60, %v3933_v12  ;;  %v2070_v60 = vstv %s4062_s4 }
 0x257   : > { %v4012_v53 = vadd.f32 %v1715_v57, %v1660_v1  ;;  %v1703_v51 = vpop.permute.xlu0 %1702 }
 0x258   : > { %v4014_v14 = vadd.f32 %v1703_v51, %v1655_v28  ;;  %v1876_v28 = vmul.f32 %v3829_v13, %v1875_v6 }
 0x25b   : > { %v1857_v21 = vstv %s4042_s9 }
 0x25c   : > { %v1858_v17 = vmul.f32 %v3829_v13, %v1857_v21 }
 0x25d   : > { %v1801_v62 = vpop.permute.xlu2 %1800 }
 0x25e   : > { %v1731_v50 = vpop.permute.xlu1 %1730  ;;  %v1860_v61 = vadd.f32 %v1858_v17, %v1790_v31  ;;  %v1805_v12 = vadd.f32 %v1801_v62, %v3957_v18 }
 0x25f   : > { %v4018_v30 = vadd.f32 %v1731_v50, %v1667_v38  ;;  %v1729_v56 = vpop.permute.xlu0 %1728  ;;  %v1881_v38 = vstv %s4082_s13 }
 0x260   : > { %v4020_v39 = vadd.f32 %v1729_v56, %v1666_v0  ;;  %v1867_v18 = vadd.f32 %v1865_v36, %v1805_v12  ;;  %v1851_v0 = vstv %s2340_s8  ;;  %v1883_v24 = vmul.f32 %v3841_v55, %v1881_v38 }
 0x265   : > { %v1827_v26 = vpop.permute.xlu2 %1826 }
 0x266   : > { %v1757_v5 = vpop.permute.xlu1 %1756  ;;  %v1832_v57 = vadd.f32 %v1827_v26, %v3975_v7  ;;  %v2084_v7 = vstv %s4085_s28 }
 0x267   : > { %v4026_v59 = vadd.f32 %v1757_v5, %v1678_v43  ;;  %v1745_v58 = vpop.permute.xlu0 %1744 }
 0x268   : > { %v4028_v22 = vadd.f32 %v1745_v58, %v1673_v40  ;;  %v1878_v62 = vadd.f32 %v1876_v28, %v1832_v57  ;;  %v1853_v40 = vmul.f32 %v3841_v55, %v1851_v0 }
 0x26d   : > { %v1843_v8 = vpop.permute.xlu2 %1842 }
 0x26e   : > { %v4030_v42 = vpop.permute.xlu1 %1772  ;;  %v1847_v32 = vadd.f32 %v1843_v8, %v3990_v47  ;;  %v1852_v8 = vmul.f32 %v3829_v13, %v1851_v0 }
 0x26f   : > { %v4032_v41 = vpop.permute.xlu0 %1770  ;;  %v1777_v5 = vadd.f32 %v4030_v42, %v3995_v44  ;;  %v2091_v42 = vstv %s4101_s10 }
 0x270   : > { %v1776_v47 = vadd.f32 %v4032_v41, %v3997_v45  ;;  %v2055_v41 = vstv %s2054_s14 }
 0x271   : > { %v1855_v31 = vadd.f32 %v1853_v40, %v1777_v5 }
 0x272   : > { %v1854_v44 = vadd.f32 %v1852_v8, %v1776_v47 }
 0x275   : > { %v1907_v25 = vpop.permute.xlu2 %1906 }
 0x276   : > { %v4034_v2 = vpop.permute.xlu1 %1798  ;;  %v1912_v63 = vadd.f32 %v1907_v25, %v1860_v61 }
 0x277   : > { %v4036_v27 = vpop.permute.xlu0 %1786  ;;  %v1804_v12 = vadd.f32 %v4034_v2, %v4012_v53  ;;  %v1869_v2 = vstv %s4121_s15 }
 0x278   : > { %v1871_v28 = vmul.f32 %v3841_v55, %v1869_v2 }
 0x27d   : > { %v1923_v54 = vpop.permute.xlu2 %1922 }
 0x27e   : > { %v4038_v11 = vpop.permute.xlu1 %1814  ;;  %v1927_v15 = vadd.f32 %v1923_v54, %v1867_v18  ;;  %v1885_v54 = vadd.f32 %v1883_v24, %v1847_v32 }
 0x27f   : > { %v4040_v35 = vpop.permute.xlu0 %1812 }
 0x285   : > { %v1949_v23 = vpop.permute.xlu2 %1948 }
 0x286   : > { %v4044_v29 = vpop.permute.xlu1 %1840  ;;  %v1954_v50 = vadd.f32 %v1949_v23, %v1878_v62  ;;  %v1818_v62 = vadd.f32 %v4040_v35, %v4020_v39  ;;  %v2077_v35 = vstv %s2364_s11 }
 0x287   : > { %v4046_v20 = vpop.permute.xlu0 %1828  ;;  %v1846_v24 = vadd.f32 %v4044_v29, %v4026_v59 }
 0x288   : > { %v1833_v5 = vadd.f32 %v4046_v20, %v4028_v22 }
 0x28d   : > { %v1965_v9 = vpop.permute.xlu2 %1964 }
 0x28e   : > { %v1895_v19 = vpop.permute.xlu1 %1894  ;;  %v1969_v23 = vadd.f32 %v1965_v9, %v1885_v54  ;;  %v1864_v9 = vmul.f32 %v3829_v13, %v1863_v48  ;;  %v1819_v48 = vadd.f32 %v4038_v11, %v4018_v30 }
 0x28f   : > { %v1893_v34 = vpop.permute.xlu0 %1892  ;;  %v1899_v61 = vadd.f32 %v1895_v19, %v1855_v31  ;;  %v1791_v19 = vadd.f32 %v4036_v27, %v4014_v14 }
 0x290   : > { %v1898_v45 = vadd.f32 %v1893_v34, %v1854_v44  ;;  %v1859_v34 = vmul.f32 %v3841_v55, %v1857_v21  ;;  %v1866_v57 = vadd.f32 %v1864_v9, %v1804_v12 }
 0x292   : > { %v1861_v53 = vadd.f32 %v1859_v34, %v1791_v19 }
 0x295   : > { %v1991_v52 = vpop.permute.xlu2 %1990 }
 0x296   : > { %v1996_v10 = vadd.f32 %v1991_v52, %v1912_v63  ;;  %v4073_v3 = vpop.permute.xlu1 %1920 }
 0x297   : > { %v4077_v4 = vpop.permute.xlu0 %1908  ;;  %v1926_v14 = vadd.f32 %v4073_v3, %v1866_v57 }
 0x298   : > { %v2064_v49 = vadd.f32 %v2063_v16, %v1996_v10  ;;  %v1913_v27 = vadd.f32 %v4077_v4, %v1861_v53 }
 0x29a   : > { %2359 = vst.msk [vmem:[%s4071_s7 + $0x10] sm:$0xff] %vm2058_vm0, %v2064_v49 }
 0x29d   : > { %v2007_v1 = vpop.permute.xlu2 %2006 }
 0x29e   : > { %v2011_v46 = vadd.f32 %v2007_v1, %v1927_v15  ;;  %v4091_v51 = vpop.permute.xlu1 %1936 }
 0x29f   : > { %v4095_v33 = vpop.permute.xlu0 %1934 }
 0x2a0   : > { %v2072_v37 = vadd.f32 %v2070_v60, %v2011_v46 }
 0x2a2   : > { %2363 = vst.msk [vmem:[%s4071_s7 + $0x28] sm:$0x3f] %vm2060_vm1, %v2072_v37 }
 0x2a5   : > { %v2033_v56 = vpop.permute.xlu2 %2032 }
 0x2a6   : > { %v2038_v26 = vadd.f32 %v2033_v56, %v1954_v50  ;;  %v4107_v43 = vpop.permute.xlu1 %1962  ;;  %v1870_v50 = vmul.f32 %v3829_v13, %v1869_v2  ;;  %v1873_v56 = vadd.f32 %v1871_v28, %v1819_v48 }
 0x2a7   : > { %v4114_v25 = vpop.permute.xlu0 %1950 }
 0x2a8   : > { %v2085_v58 = vadd.f32 %v2084_v7, %v2038_v26  ;;  %v1872_v30 = vadd.f32 %v1870_v50, %v1818_v62  ;;  %v1941_v11 = vadd.f32 %v4091_v51, %v1873_v56  ;;  %v1877_v51 = vmul.f32 %v3841_v55, %v1875_v6 }
 0x2aa   : > { %2368 = vst.msk [vmem:[%s4071_s7 + $0x40] sm:$0xff] %vm2058_vm0, %v2085_v58  ;;  %v1940_v39 = vadd.f32 %v4095_v33, %v1872_v30  ;;  %v1879_v59 = vadd.f32 %v1877_v51, %v1833_v5 }
 0x2ac   : > { %v1955_v29 = vadd.f32 %v4114_v25, %v1879_v59 }
 0x2ad   : > { %v2049_v17 = vpop.permute.xlu2 %2048 }
 0x2ae   : > { %v2053_v63 = vadd.f32 %v2049_v17, %v1969_v23  ;;  %v1979_v52 = vpop.permute.xlu1 %1978 }
 0x2af   : > { %v1983_v10 = vadd.f32 %v1979_v52, %v1899_v61  ;;  %v1977_v49 = vpop.permute.xlu0 %1976 }
 0x2b0   : > { %v2093_v36 = vadd.f32 %v2091_v42, %v2053_v63  ;;  %v1982_v18 = vadd.f32 %v1977_v49, %v1898_v45 }
 0x2b1   : > { %v2057_v15 = vadd.f32 %v2055_v41, %v1983_v10 }
 0x2b2   : > { %2372 = vst.msk [vmem:[%s4071_s7 + $0x58] sm:$0x3f] %vm2060_vm1, %v2093_v36  ;;  %v2056_v1 = vadd.f32 %v2055_v41, %v1982_v18 }
 0x2b3   : > { %2061 = vst.msk [vmem:[%s4071_s7 + $0x8] sm:$0x3f] %vm2060_vm1, %v2057_v15 }
 0x2b4   : > { %2059 = vst.msk [vmem:[%s4071_s7] sm:$0xff] %vm2058_vm0, %v2056_v1 }
 0x2b6   : > { %v2005_v21 = vpop.permute.xlu1 %2004 }
 0x2b7   : > { %v2010_v46 = vadd.f32 %v2005_v21, %v1926_v14  ;;  %v1993_v37 = vpop.permute.xlu0 %1992 }
 0x2b8   : > { %v1997_v0 = vadd.f32 %v1993_v37, %v1913_v27 }
 0x2b9   : > { %v2071_v3 = vadd.f32 %v2070_v60, %v2010_v46 }
 0x2ba   : > { %v2065_v4 = vadd.f32 %v2063_v16, %v1997_v0  ;;  %v1882_v16 = vmul.f32 %v3829_v13, %v1881_v38 }
 0x2bb   : > { %2362 = vst.msk [vmem:[%s4071_s7 + $0x20] sm:$0xff] %vm2058_vm0, %v2071_v3 }
 0x2bc   : > { %2360 = vst.msk [vmem:[%s4071_s7 + $0x18] sm:$0x3f] %vm2060_vm1, %v2065_v4  ;;  %v1884_v47 = vadd.f32 %v1882_v16, %v1846_v24 }
 0x2be   : > { %v2021_v32 = vpop.permute.xlu1 %2020  ;;  %v1968_v13 = vadd.f32 %v4107_v43, %v1884_v47 }
 0x2bf   : > { %v2025_v60 = vadd.f32 %v2021_v32, %v1941_v11  ;;  %v2019_v26 = vpop.permute.xlu0 %2018 }
 0x2c0   : > { %v2024_v33 = vadd.f32 %v2019_v26, %v1940_v39 }
 0x2c1   : > { %v2079_v40 = vadd.f32 %v2077_v35, %v2025_v60 }
 0x2c2   : > { %v2078_v58 = vadd.f32 %v2077_v35, %v2024_v33 }
 0x2c3   : > { %2366 = vst.msk [vmem:[%s4071_s7 + $0x38] sm:$0x3f] %vm2060_vm1, %v2079_v40 }
 0x2c4   : > { %2365 = vst.msk [vmem:[%s4071_s7 + $0x30] sm:$0xff] %vm2058_vm0, %v2078_v58 }
 0x2c6   : > { %v2047_v22 = vpop.permute.xlu1 %2046 }
 0x2c7   : > { %v2052_v20 = vadd.f32 %v2047_v22, %v1968_v13  ;;  %v2035_v38 = vpop.permute.xlu0 %2034 }
 0x2c8   : > { %v2039_v8 = vadd.f32 %v2035_v38, %v1955_v29 }
 0x2c9   : > { %v2092_v55 = vadd.f32 %v2091_v42, %v2052_v20 }
 0x2ca   : > { %v2086_v6 = vadd.f32 %v2084_v7, %v2039_v8 }
 0x2cb   : > { %2371 = vst.msk [vmem:[%s4071_s7 + $0x50] sm:$0xff] %vm2058_vm0, %v2092_v55 }
 0x2cc   : > { %2369 = vst.msk [vmem:[%s4071_s7 + $0x48] sm:$0x3f] %vm2060_vm1, %v2086_v6 }
 0x2cd PF: > { %s15_s12 = sadd.s32 1, %s2454_s12  }
 0x2ce   : > { %p12_p7 = scmp.ge.s32.totalorder %s15_s12, 4  }
 0x2d0   :  { %14 = sbr.rel (!%p12_p7) target bundleno = 2 (0x2), region = 78 }
 0x2d5   :  { %2118 = vsyncpa [#allocation3], 1 }
 0x2d6   :  { %2120 = vsyncpa [#allocation3 + $0x1], 1 }
 0x2d7   :  { %2121 = vsyncpa [#allocation5], 1 }

</bundles_post_ra>
